<compile_context>
chip_gen: v7x
topology: tpu7x:2x2x1
jax: 0.10.0
libtpu: 0.0.40
codegen_flags: <defaults>
</compile_context>

<pallas_src>
import numpy as np
import jax
import jax.numpy as jnp
from jax import lax
from jax.experimental import pallas as pl
from jax.experimental.pallas import tpu as pltpu

EPS = 1e-5
_HP = lax.Precision.HIGHEST


def _round_up(a, m):
    return m * ((a + m - 1) // m)


def _pad_rows(a, n_pad):
    pad = n_pad - a.shape[0]
    if pad == 0:
        return a
    return jnp.pad(a, ((0, pad), (0, 0)))


def _dot(a, b):
    return jnp.dot(a, b, preferred_element_type=jnp.float32, precision=_HP)


# -----------------------------------------------------------------------------
# Kernel A: linear1 (+folded bn1) + ReLU fused with q/k/v projections.
# -----------------------------------------------------------------------------
def _qkv_kernel(x_ref, w1_ref, b1_ref, wq_ref, bq_ref, wk_ref, bk_ref,
                wv_ref, bv_ref, q_ref, k_ref, v_ref):
    x1 = jnp.maximum(_dot(x_ref[...], w1_ref[...]) + b1_ref[...], 0.0)
    q_ref[...] = _dot(x1, wq_ref[...]) + bq_ref[...]
    # k / v are stored as bf16 so the downstream neighbor gather streams bf16.
    k_ref[...] = (_dot(x1, wk_ref[...]) + bk_ref[...]).astype(k_ref.dtype)
    v_ref[...] = (_dot(x1, wv_ref[...]) + bv_ref[...]).astype(v_ref.dtype)


def qkv_project(x, P, tn):
    n, c_in = x.shape
    C = P["w1"].shape[1]
    tn = min(tn, _round_up(n, 128))
    n_pad = _round_up(n, tn)
    x_p = _pad_rows(x, n_pad)
    w1f = P["w1"] * P["bn1_s"]          # fold bn1 scale into linear1 weight

    row = lambda bs: pl.BlockSpec(bs, lambda i: (i, 0))
    rep = lambda a: pl.BlockSpec(a.shape, lambda i: (0, 0))

    q, k, v = pl.pallas_call(
        _qkv_kernel,
        out_shape=(jax.ShapeDtypeStruct((n_pad, C), jnp.float32),
                   jax.ShapeDtypeStruct((n_pad, C), jnp.bfloat16),
                   jax.ShapeDtypeStruct((n_pad, C), jnp.bfloat16)),
        grid=(n_pad // tn,),
        in_specs=[row((tn, c_in)), rep(w1f), rep(P["bn1_b"]),
                  rep(P["wq"]), rep(P["bq"]), rep(P["wk"]), rep(P["bk"]),
                  rep(P["wv"]), rep(P["bv"])],
        out_specs=(row((tn, C)), row((tn, C)), row((tn, C))),
        compiler_params=pltpu.CompilerParams(dimension_semantics=("parallel",)),
    )(x_p, w1f, P["bn1_b"], P["wq"], P["bq"], P["wk"], P["bk"], P["wv"], P["bv"])
    return q[:n], k[:n], v[:n]


# -----------------------------------------------------------------------------
# Kernel B: PointTransformerLayer core + bn2 + ReLU + linear3/bn3 + residual.
#
# Flat lane layouts (per point row):
#   xk / xv / p_r / v : (ns*C,)  index = t*C + c        (t = neighbor)
#   pr (offsets)      : (3*ns,)  index = k*ns + t       (k = coordinate)
#   H (linear_p hid)  : (3*ns,)  index = j*ns + t       (j = hidden channel)
#   u / w / a (attn)  : (ns*Cs,) index = t*Cs + j
# -----------------------------------------------------------------------------
def _pt_core_kernel(xq_ref, xk_ref, xv_ref, pr_ref, id_ref,
                    m1_ref, c1_ref, wp2_ref, tq_ref, vnc_ref,
                    wu_ref, vcs_ref, ww2_ref, ssum_ref, ea_ref,
                    ragg_ref, vc_ref, w3_ref, o_ref):
    f32 = jnp.float32
    vnc = vnc_ref[...]          # (3, ns*C)  : bp2 | wbn1_s | wbn1_b (tiled)
    vcs = vcs_ref[...]          # (3, ns*Cs) : wbn2_s | wbn2_s*bw1+wbn2_b | bw2
    vc = vc_ref[...]            # (3, C)     : bn2_s | bn2_b | bn3_b

    # linear_p stage 1: Linear(3,3) + folded BN(3) + ReLU, coordinate-major.
    h = jnp.maximum(_dot(pr_ref[...], m1_ref[...]) + c1_ref[...], 0.0)   # (tn, 3ns)
    # linear_p stage 2: Linear(3,C) per neighbor (block-structured MXU matmul).
    p_r = _dot(h, wp2_ref[...]) + vnc[0:1, :]                            # (tn, ns*C)

    # v = x_v + p_r (consume x_v immediately to bound live temporaries).
    v = xv_ref[...].astype(f32) + p_r                                    # (tn, ns*C)

    # r_qk = x_k - x_q + p_r ; x_q is broadcast over neighbors on the MXU.
    xq_t = _dot(xq_ref[...], tq_ref[...])                                # (tn, ns*C)
    h2 = jnp.maximum((xk_ref[...].astype(f32) - xq_t + p_r) * vnc[1:2, :]
                     + vnc[2:3, :], 0.0)                                 # (tn, ns*C)

    # linear_w: Linear(C,Cs) per neighbor as one block-diagonal MXU matmul,
    # folded BN(Cs)+bias+ReLU, then Linear(Cs,Cs) per neighbor.
    u = _dot(h2, wu_ref[...])                                            # (tn, ns*Cs)
    u2 = jnp.maximum(u * vcs[0:1, :] + vcs[1:2, :], 0.0)
    w = _dot(u2, ww2_ref[...]) + vcs[2:3, :]                             # (tn, ns*Cs)

    # Softmax over neighbors.  The per-row max is constant within every
    # softmax group (n, j), so subtracting it is mathematically exact; the
    # group-sum denominator is a 0/1 MXU matmul (no lane-sparse reductions).
    m = jnp.max(w, axis=-1, keepdims=True)
    e = jnp.exp(w - m)
    a = e / _dot(e, ssum_ref[...])                                       # (tn, ns*Cs)

    # Aggregation: expand attention to ns*C lanes, weight v, reduce over t.
    agg = _dot(v * _dot(a, ea_ref[...]), ragg_ref[...])                  # (tn, C)

    # Bottleneck tail: bn2 + ReLU, linear3 (+folded bn3) + residual + ReLU.
    x2 = jnp.maximum(agg * vc[0:1, :] + vc[1:2, :], 0.0)
    o_ref[...] = jnp.maximum(_dot(x2, w3_ref[...]) + vc[2:3, :] + id_ref[...], 0.0)


def pt_core(xq, xk_g, xv_g, pr_flat, ident, P, ns, share, tn):
    n, C = xq.shape
    Cs = C // share
    NC = ns * C
    NCs = ns * Cs
    f32 = jnp.float32
    tn = min(tn, _round_up(n, 128))
    n_pad = _round_up(n, tn)

    I_ns = jnp.eye(ns, dtype=f32)

    # linear_p stage 1: wp1 with BN scale folded, coordinate-major in/out.
    wp1s = P["wp1"] * P["pbn_s"]                                   # (3, 3)
    m1 = jnp.kron(wp1s, I_ns)                                      # (3ns, 3ns)
    c1 = jnp.kron(P["pbn_s"] * P["bp1"] + P["pbn_b"],
                  jnp.ones((1, ns), f32))                          # (1, 3ns)

    # linear_p stage 2: per-neighbor Linear(3, C) as a block-structured matmul.
    wp2x = jnp.einsum("jc,tu->jtuc", P["wp2"], I_ns).reshape(3 * ns, NC)

    # Parameter-independent 0/1 constants (broadcast / expand / reduce).
    tq = jnp.asarray(np.tile(np.eye(C, dtype=np.float32), (1, ns)))      # (C, NC)
    ragg = jnp.asarray(np.tile(np.eye(C, dtype=np.float32), (ns, 1)))    # (NC, C)
    mmask = (np.arange(C)[None, :] % Cs ==
             np.arange(Cs)[:, None]).astype(np.float32)                  # (Cs, C)
    ea = jnp.asarray(np.kron(np.eye(ns, dtype=np.float32), mmask))       # (NCs, NC)
    ssum = jnp.asarray(np.tile(np.eye(Cs, dtype=np.float32), (ns, ns)))  # (NCs, NCs)

    # linear_w as block-diagonal (per-neighbor) matmuls.
    wu = jnp.kron(I_ns, P["ww1"])                                  # (NC, NCs)
    ww2x = jnp.kron(I_ns, P["ww2"])                                # (NCs, NCs)

    # Packed bias / scale rows (tiled to the flat lane layouts).
    tile_n = lambda a: jnp.tile(a, (1, ns))
    vnc = jnp.concatenate(
        [tile_n(P["bp2"]), tile_n(P["wbn1_s"]), tile_n(P["wbn1_b"])], 0)
    vcs = jnp.concatenate(
        [tile_n(P["wbn2_s"]),
         tile_n(P["wbn2_s"] * P["bw1"] + P["wbn2_b"]),
         tile_n(P["bw2"])], 0)
    vc = jnp.concatenate([P["bn2_s"], P["bn2_b"], P["bn3_b"]], 0)
    w3f = P["w3"] * P["bn3_s"]                                     # fold bn3 scale

    xq_p = _pad_rows(xq, n_pad)
    xk_p = _pad_rows(xk_g, n_pad)
    xv_p = _pad_rows(xv_g, n_pad)
    pr_p = _pad_rows(pr_flat, n_pad)
    id_p = _pad_rows(ident, n_pad)

    row = lambda bs: pl.BlockSpec(bs, lambda i: (i, 0))
    rep = lambda a: pl.BlockSpec(a.shape, lambda i: (0, 0))

    out = pl.pallas_call(
        _pt_core_kernel,
        out_shape=jax.ShapeDtypeStruct((n_pad, C), f32),
        grid=(n_pad // tn,),
        in_specs=[row((tn, C)), row((tn, NC)), row((tn, NC)), row((tn, 3 * ns)),
                  row((tn, C)),
                  rep(m1), rep(c1), rep(wp2x), rep(tq), rep(vnc),
                  rep(wu), rep(vcs), rep(ww2x), rep(ssum), rep(ea),
                  rep(ragg), rep(vc), rep(w3f)],
        out_specs=row((tn, C)),
        compiler_params=pltpu.CompilerParams(
            dimension_semantics=("parallel",),
            vmem_limit_bytes=48 * 1024 * 1024),
    )(xq_p, xk_p, xv_p, pr_p, id_p,
      m1, c1, wp2x, tq, vnc, wu, vcs, ww2x, ssum, ea, ragg, vc, w3f)
    return out[:n]


# -----------------------------------------------------------------------------
# Glue: KNN (pointops.knn_query_and_group equivalent) in plain JAX
# -----------------------------------------------------------------------------
def knn_group_idx(p, o, nsample):
    n = p.shape[0]
    batch_idx = jnp.searchsorted(o, jnp.arange(n), side="right")
    d2 = jnp.sum((p[:, None, :] - p[None, :, :]) ** 2, axis=-1)
    d2 = jnp.where(batch_idx[:, None] == batch_idx[None, :], d2, jnp.inf)
    _, idx = jax.lax.top_k(-d2, nsample)
    return idx


# -----------------------------------------------------------------------------
# Bottleneck forward
# -----------------------------------------------------------------------------
def bottleneck_forward(p, x, o, P, nsample=16, share=8, tn_lin=512, tn_core=256):
    n = x.shape[0]
    C = P["w1"].shape[1]
    ns = nsample

    # Stage A: linear1+bn1+ReLU fused with q/k/v (single launch; k/v bf16).
    xq, xk_b, xv_b = qkv_project(x, P, tn_lin)

    # Stage B (XLA glue): KNN + row gather, lane-dense flattening.
    idx = knn_group_idx(p, o, ns)                                  # (n, ns)
    xk_g = jnp.take(xk_b, idx, axis=0).reshape(n, ns * C)          # bf16
    xv_g = jnp.take(xv_b, idx, axis=0).reshape(n, ns * C)          # bf16
    pr = p[idx] - p[:, None, :]                                    # (n, ns, 3)
    pr_flat = jnp.transpose(pr, (0, 2, 1)).reshape(n, 3 * ns)      # coord-major

    # Stage C: transformer core + bn2/ReLU + linear3/bn3 + residual + ReLU.
    x3 = pt_core(xq, xk_g, xv_g, pr_flat, x, P, ns, share, tn_core)
    return p, x3, o


# -----------------------------------------------------------------------------
# Pure-JAX reference (same math, no Pallas) for the correctness check
# -----------------------------------------------------------------------------
def reference_forward(p, x, o, P, nsample=16, share=8):
    bn = lambda a, s, b: a * s + b
    identity = x
    x1 = jnp.maximum(bn(x @ P["w1"], P["bn1_s"], P["bn1_b"]), 0.0)
    xq = x1 @ P["wq"] + P["bq"]
    # mirror the bf16 streaming of k / v applied on the Pallas path
    xk = (x1 @ P["wk"] + P["bk"]).astype(jnp.bfloat16).astype(jnp.float32)
    xv = (x1 @ P["wv"] + P["bv"]).astype(jnp.bfloat16).astype(jnp.float32)
    idx = knn_group_idx(p, o, nsample)
    xk_g, xv_g = xk[idx], xv[idx]
    pr = p[idx] - p[:, None, :]
    h = jnp.maximum(bn(pr @ P["wp1"] + P["bp1"], P["pbn_s"], P["pbn_b"]), 0.0)
    p_r = h @ P["wp2"] + P["bp2"]
    r_qk = xk_g - xq[:, None, :] + p_r
    h = jnp.maximum(bn(r_qk, P["wbn1_s"], P["wbn1_b"]), 0.0)
    h = h @ P["ww1"] + P["bw1"]
    h = jnp.maximum(bn(h, P["wbn2_s"], P["wbn2_b"]), 0.0)
    w = h @ P["ww2"] + P["bw2"]
    w = jax.nn.softmax(w, axis=1)
    n, C = xq.shape
    Cs = C // share
    v = (xv_g + p_r).reshape(n, nsample, share, Cs)
    agg = jnp.einsum("ntsi,nti->nsi", v, w).reshape(n, C)
    x2 = jnp.maximum(bn(agg, P["bn2_s"], P["bn2_b"]), 0.0)
    x3 = jnp.maximum(bn(x2 @ P["w3"], P["bn3_s"], P["bn3_b"]) + identity, 0.0)
    return x3


# -----------------------------------------------------------------------------
# Deterministic parameter construction (BN in eval mode, folded scale/bias)
# -----------------------------------------------------------------------------
def make_params(key, in_planes, planes, share_planes):
    Cs = planes // share_planes
    keys = iter(jax.random.split(key, 64))

    def lin_w(cin, cout, s=0.2):
        return (jax.random.normal(next(keys), (cin, cout)) * s).astype(jnp.float32)

    def lin_b(cout, s=0.05):
        return (jax.random.normal(next(keys), (1, cout)) * s).astype(jnp.float32)

    def bn_fold(c):
        gamma = jax.random.uniform(next(keys), (c,), minval=0.5, maxval=1.5)
        beta = jax.random.normal(next(keys), (c,)) * 0.1
        mean = jax.random.normal(next(keys), (c,)) * 0.1
        var = jax.random.uniform(next(keys), (c,), minval=0.5, maxval=1.5)
        scale = gamma / jnp.sqrt(var + EPS)
        bias = beta - mean * scale
        return (scale.reshape(1, c).astype(jnp.float32),
                bias.reshape(1, c).astype(jnp.float32))

    P = {}
    P["w1"] = lin_w(in_planes, planes)                      # linear1 (no bias)
    P["bn1_s"], P["bn1_b"] = bn_fold(planes)
    P["wq"], P["bq"] = lin_w(planes, planes), lin_b(planes)
    P["wk"], P["bk"] = lin_w(planes, planes), lin_b(planes)
    P["wv"], P["bv"] = lin_w(planes, planes), lin_b(planes)
    P["wp1"], P["bp1"] = lin_w(3, 3), lin_b(3)
    P["pbn_s"], P["pbn_b"] = bn_fold(3)
    P["wp2"], P["bp2"] = lin_w(3, planes), lin_b(planes)
    P["wbn1_s"], P["wbn1_b"] = bn_fold(planes)
    P["ww1"], P["bw1"] = lin_w(planes, Cs), lin_b(Cs)
    P["wbn2_s"], P["wbn2_b"] = bn_fold(Cs)
    P["ww2"], P["bw2"] = lin_w(Cs, Cs), lin_b(Cs)
    P["bn2_s"], P["bn2_b"] = bn_fold(planes)
    P["w3"] = lin_w(planes, planes)                         # linear3 (no bias)
    P["bn3_s"], P["bn3_b"] = bn_fold(planes)
    return P


if __name__ == "__main__":
    # Make the XLA-side reference / glue matmuls f32-exact so the comparison
    # only reflects the intentional bf16 streaming (mirrored in the reference).
    jax.config.update("jax_default_matmul_precision", "highest")

    key = jax.random.PRNGKey(0)
    n, in_planes, planes = 192, 32, 32      # residual requires in_planes == planes
    share_planes, nsample = 8, 16
    k_param, k_p, k_x = jax.random.split(key, 3)

    P = make_params(k_param, in_planes, planes, share_planes)
    p = jax.random.normal(k_p, (n, 3)).astype(jnp.float32)
    x = jax.random.normal(k_x, (n, in_planes)).astype(jnp.float32)
    o = jnp.array([96, 192], dtype=jnp.int32)   # two batches of 96 points

    p_out, x_out, o_out = bottleneck_forward(
        p, x, o, P, nsample=nsample, share=share_planes,
        tn_lin=512, tn_core=256)
    x_out = jax.block_until_ready(x_out)

    ref = reference_forward(p, x, o, P, nsample=nsample, share=share_planes)
    err = float(jnp.max(jnp.abs(x_out - ref)))
    if err < 1e-2:
        print("KERNEL_OK")
    else:
        print(f"MISMATCH max_abs_err={err}")
</pallas_src>

<mosaic_0001>
module attributes {stable_mosaic.version = 11 : i64} {
  func.func @_qkv_kernel(%arg0: i32, %arg1: memref<256x32xf32, #tpu.memory_space<vmem>>, %arg2: memref<32x32xf32, #tpu.memory_space<vmem>>, %arg3: memref<1x32xf32, #tpu.memory_space<vmem>>, %arg4: memref<32x32xf32, #tpu.memory_space<vmem>>, %arg5: memref<1x32xf32, #tpu.memory_space<vmem>>, %arg6: memref<32x32xf32, #tpu.memory_space<vmem>>, %arg7: memref<1x32xf32, #tpu.memory_space<vmem>>, %arg8: memref<32x32xf32, #tpu.memory_space<vmem>>, %arg9: memref<1x32xf32, #tpu.memory_space<vmem>>, %arg10: memref<256x32xf32, #tpu.memory_space<vmem>>, %arg11: memref<256x32xbf16, #tpu.memory_space<vmem>>, %arg12: memref<256x32xbf16, #tpu.memory_space<vmem>>) attributes {dimension_semantics = [#tpu.dimension_semantics<parallel>], iteration_bounds = array<i64: 1>, scalar_prefetch = 0 : i64, scratch_operands = 0 : i64, tpu.core_type = #tpu.core_type<tc>, window_params = [{transform_indices = @transform_0, window_bounds = array<i64: 256, 32>}, {pipeline_mode = #tpu.pipeline_mode<synchronous>, transform_indices = @transform_1, window_bounds = array<i64: 32, 32>}, {pipeline_mode = #tpu.pipeline_mode<synchronous>, transform_indices = @transform_2, window_bounds = array<i64: 1, 32>}, {pipeline_mode = #tpu.pipeline_mode<synchronous>, transform_indices = @transform_3, window_bounds = array<i64: 32, 32>}, {pipeline_mode = #tpu.pipeline_mode<synchronous>, transform_indices = @transform_4, window_bounds = array<i64: 1, 32>}, {pipeline_mode = #tpu.pipeline_mode<synchronous>, transform_indices = @transform_5, window_bounds = array<i64: 32, 32>}, {pipeline_mode = #tpu.pipeline_mode<synchronous>, transform_indices = @transform_6, window_bounds = array<i64: 1, 32>}, {pipeline_mode = #tpu.pipeline_mode<synchronous>, transform_indices = @transform_7, window_bounds = array<i64: 32, 32>}, {pipeline_mode = #tpu.pipeline_mode<synchronous>, transform_indices = @transform_8, window_bounds = array<i64: 1, 32>}, {transform_indices = @transform_9, window_bounds = array<i64: 256, 32>}, {transform_indices = @transform_10, window_bounds = array<i64: 256, 32>}, {transform_indices = @transform_11, window_bounds = array<i64: 256, 32>}]} {
    %c0 = arith.constant 0 : index
    %c0_0 = arith.constant 0 : index
    %0 = vector.load %arg1[%c0, %c0_0] : memref<256x32xf32, #tpu.memory_space<vmem>>, vector<256x32xf32>
    %c0_1 = arith.constant 0 : index
    %c0_2 = arith.constant 0 : index
    %1 = vector.load %arg2[%c0_1, %c0_2] : memref<32x32xf32, #tpu.memory_space<vmem>>, vector<32x32xf32>
    %cst = arith.constant dense<0.000000e+00> : vector<256x32xf32>
    %2 = tpu.matmul %0, %1, %cst {dimension_numbers = #tpu.dot_dimension_numbers<[1], [0], [0], [1], [0, 0, 1, 1], [], []>, precision = #tpu.contract_precision<fp32>} : vector<256x32xf32>, vector<32x32xf32>, vector<256x32xf32> -> vector<256x32xf32>
    %c0_3 = arith.constant 0 : index
    %c0_4 = arith.constant 0 : index
    %3 = vector.load %arg3[%c0_3, %c0_4] : memref<1x32xf32, #tpu.memory_space<vmem>>, vector<1x32xf32>
    %4 = vector.broadcast %3 : vector<1x32xf32> to vector<256x32xf32>
    %5 = arith.addf %2, %4 : vector<256x32xf32>
    %cst_5 = arith.constant 0.000000e+00 : f32
    %6 = vector.broadcast %cst_5 : f32 to vector<256x32xf32>
    %7 = arith.maximumf %5, %6 : vector<256x32xf32>
    %c0_6 = arith.constant 0 : index
    %c0_7 = arith.constant 0 : index
    %8 = vector.load %arg4[%c0_6, %c0_7] : memref<32x32xf32, #tpu.memory_space<vmem>>, vector<32x32xf32>
    %cst_8 = arith.constant dense<0.000000e+00> : vector<256x32xf32>
    %9 = tpu.matmul %7, %8, %cst_8 {dimension_numbers = #tpu.dot_dimension_numbers<[1], [0], [0], [1], [0, 0, 1, 1], [], []>, precision = #tpu.contract_precision<fp32>} : vector<256x32xf32>, vector<32x32xf32>, vector<256x32xf32> -> vector<256x32xf32>
    %c0_9 = arith.constant 0 : index
    %c0_10 = arith.constant 0 : index
    %10 = vector.load %arg5[%c0_9, %c0_10] : memref<1x32xf32, #tpu.memory_space<vmem>>, vector<1x32xf32>
    %11 = vector.broadcast %10 : vector<1x32xf32> to vector<256x32xf32>
    %12 = arith.addf %9, %11 : vector<256x32xf32>
    %c0_11 = arith.constant 0 : index
    %c0_12 = arith.constant 0 : index
    %13 = vector.load %arg10[%c0_11, %c0_12] : memref<256x32xf32, #tpu.memory_space<vmem>>, vector<256x32xf32>
    tpu.vector_store %arg10[%c0_11, %c0_12], %12 {strides = array<i32>} : memref<256x32xf32, #tpu.memory_space<vmem>>, vector<256x32xf32>,
    %c0_13 = arith.constant 0 : index
    %c0_14 = arith.constant 0 : index
    %14 = vector.load %arg6[%c0_13, %c0_14] : memref<32x32xf32, #tpu.memory_space<vmem>>, vector<32x32xf32>
    %cst_15 = arith.constant dense<0.000000e+00> : vector<256x32xf32>
    %15 = tpu.matmul %7, %14, %cst_15 {dimension_numbers = #tpu.dot_dimension_numbers<[1], [0], [0], [1], [0, 0, 1, 1], [], []>, precision = #tpu.contract_precision<fp32>} : vector<256x32xf32>, vector<32x32xf32>, vector<256x32xf32> -> vector<256x32xf32>
    %c0_16 = arith.constant 0 : index
    %c0_17 = arith.constant 0 : index
    %16 = vector.load %arg7[%c0_16, %c0_17] : memref<1x32xf32, #tpu.memory_space<vmem>>, vector<1x32xf32>
    %17 = vector.broadcast %16 : vector<1x32xf32> to vector<256x32xf32>
    %18 = arith.addf %15, %17 : vector<256x32xf32>
    %19 = arith.truncf %18 : vector<256x32xf32> to vector<256x32xbf16>
    %c0_18 = arith.constant 0 : index
    %c0_19 = arith.constant 0 : index
    %20 = vector.load %arg11[%c0_18, %c0_19] : memref<256x32xbf16, #tpu.memory_space<vmem>>, vector<256x32xbf16>
    tpu.vector_store %arg11[%c0_18, %c0_19], %19 {strides = array<i32>} : memref<256x32xbf16, #tpu.memory_space<vmem>>, vector<256x32xbf16>,
    %c0_20 = arith.constant 0 : index
    %c0_21 = arith.constant 0 : index
    %21 = vector.load %arg8[%c0_20, %c0_21] : memref<32x32xf32, #tpu.memory_space<vmem>>, vector<32x32xf32>
    %cst_22 = arith.constant dense<0.000000e+00> : vector<256x32xf32>
    %22 = tpu.matmul %7, %21, %cst_22 {dimension_numbers = #tpu.dot_dimension_numbers<[1], [0], [0], [1], [0, 0, 1, 1], [], []>, precision = #tpu.contract_precision<fp32>} : vector<256x32xf32>, vector<32x32xf32>, vector<256x32xf32> -> vector<256x32xf32>
    %c0_23 = arith.constant 0 : index
    %c0_24 = arith.constant 0 : index
    %23 = vector.load %arg9[%c0_23, %c0_24] : memref<1x32xf32, #tpu.memory_space<vmem>>, vector<1x32xf32>
    %24 = vector.broadcast %23 : vector<1x32xf32> to vector<256x32xf32>
    %25 = arith.addf %22, %24 : vector<256x32xf32>
    %26 = arith.truncf %25 : vector<256x32xf32> to vector<256x32xbf16>
    %c0_25 = arith.constant 0 : index
    %c0_26 = arith.constant 0 : index
    %27 = vector.load %arg12[%c0_25, %c0_26] : memref<256x32xbf16, #tpu.memory_space<vmem>>, vector<256x32xbf16>
    tpu.vector_store %arg12[%c0_25, %c0_26], %26 {strides = array<i32>} : memref<256x32xbf16, #tpu.memory_space<vmem>>, vector<256x32xbf16>,
    return
  }
  func.func @transform_0(%arg0: i32) -> (i32, i32) {
    %c0_i32 = arith.constant 0 : i32
    %c0_i32_0 = arith.constant 0 : i32
    return %arg0, %c0_i32 : i32, i32
  }
  func.func @transform_1(%arg0: i32) -> (i32, i32) {
    %c0_i32 = arith.constant 0 : i32
    %c0_i32_0 = arith.constant 0 : i32
    %c0_i32_1 = arith.constant 0 : i32
    return %c0_i32, %c0_i32_0 : i32, i32
  }
  func.func @transform_2(%arg0: i32) -> (i32, i32) {
    %c0_i32 = arith.constant 0 : i32
    %c0_i32_0 = arith.constant 0 : i32
    %c0_i32_1 = arith.constant 0 : i32
    return %c0_i32, %c0_i32_0 : i32, i32
  }
  func.func @transform_3(%arg0: i32) -> (i32, i32) {
    %c0_i32 = arith.constant 0 : i32
    %c0_i32_0 = arith.constant 0 : i32
    %c0_i32_1 = arith.constant 0 : i32
    return %c0_i32, %c0_i32_0 : i32, i32
  }
  func.func @transform_4(%arg0: i32) -> (i32, i32) {
    %c0_i32 = arith.constant 0 : i32
    %c0_i32_0 = arith.constant 0 : i32
    %c0_i32_1 = arith.constant 0 : i32
    return %c0_i32, %c0_i32_0 : i32, i32
  }
  func.func @transform_5(%arg0: i32) -> (i32, i32) {
    %c0_i32 = arith.constant 0 : i32
    %c0_i32_0 = arith.constant 0 : i32
    %c0_i32_1 = arith.constant 0 : i32
    return %c0_i32, %c0_i32_0 : i32, i32
  }
  func.func @transform_6(%arg0: i32) -> (i32, i32) {
    %c0_i32 = arith.constant 0 : i32
    %c0_i32_0 = arith.constant 0 : i32
    %c0_i32_1 = arith.constant 0 : i32
    return %c0_i32, %c0_i32_0 : i32, i32
  }
  func.func @transform_7(%arg0: i32) -> (i32, i32) {
    %c0_i32 = arith.constant 0 : i32
    %c0_i32_0 = arith.constant 0 : i32
    %c0_i32_1 = arith.constant 0 : i32
    return %c0_i32, %c0_i32_0 : i32, i32
  }
  func.func @transform_8(%arg0: i32) -> (i32, i32) {
    %c0_i32 = arith.constant 0 : i32
    %c0_i32_0 = arith.constant 0 : i32
    %c0_i32_1 = arith.constant 0 : i32
    return %c0_i32, %c0_i32_0 : i32, i32
  }
  func.func @transform_9(%arg0: i32) -> (i32, i32) {
    %c0_i32 = arith.constant 0 : i32
    %c0_i32_0 = arith.constant 0 : i32
    return %arg0, %c0_i32 : i32, i32
  }
  func.func @transform_10(%arg0: i32) -> (i32, i32) {
    %c0_i32 = arith.constant 0 : i32
    %c0_i32_0 = arith.constant 0 : i32
    return %arg0, %c0_i32 : i32, i32
  }
  func.func @transform_11(%arg0: i32) -> (i32, i32) {
    %c0_i32 = arith.constant 0 : i32
    %c0_i32_0 = arith.constant 0 : i32
    return %arg0, %c0_i32 : i32, i32
  }
}

</mosaic_0001>

<bundles_post_ra>
// kernel: tpu_custom_call.1
= control target key start
LH: loop header
LB: loop body
LE: loop exit
PB: predicated region body
PF: predicated region fallthrough
CT: control target
= control target key end

     0   :  { %vm78_vm0 = vcmask 261120   ;;  %vm5939_vm1 = vcmask 257024   ;;  %s13793_s1 = inlined_call_operand.vmem [shape: f32[32,32], index: 1, kind: input, shape index: {}]   ;;  %s13794_s0 = inlined_call_operand.vmem [shape: f32[256,32], index: 0, kind: input, shape index: {}]   ;;  %s13795_s3 = inlined_call_operand.vmem [shape: f32[32,32], index: 3, kind: input, shape index: {}]   ;;  %s13796_s5 = inlined_call_operand.vmem [shape: f32[32,32], index: 5, kind: input, shape index: {}]   ;;  %s13797_s2 = inlined_call_operand.vmem [shape: f32[1,32], index: 2, kind: input, shape index: {}]   ;;  %s13798_s7 = inlined_call_operand.vmem [shape: f32[32,32], index: 7, kind: input, shape index: {}]   ;;  %s13799_s4 = inlined_call_operand.vmem [shape: f32[1,32], index: 4, kind: input, shape index: {}]   ;;  %s13800_s6 = inlined_call_operand.vmem [shape: f32[1,32], index: 6, kind: input, shape index: {}]   ;;  %s13801_s9 = inlined_call_operand.vmem [shape: f32[256,32], index: 9, kind: output, shape index: {0}]   ;;  %s13802_s10 = inlined_call_operand.vmem [shape: bf16[256,32], index: 10, kind: output, shape index: {1}]   ;;  %s13803_s8 = inlined_call_operand.vmem [shape: f32[1,32], index: 8, kind: input, shape index: {}]   ;;  %s13804_s11 = inlined_call_operand.vmem [shape: bf16[256,32], index: 11, kind: output, shape index: {2}]  }
   0x1   :  { %v67_v0 = vld [vmem:[%s13793_s1] sm:$0xff]  ;;  %v68_v1 = vld [vmem:[%s13793_s1 + $0x8] sm:$0xff]  ;;  %v11342_v2 = vld [vmem:[%s13793_s1 + $0x10] sm:$0xff] }
   0x2   :  { %v176_v3 = vand.u32 4294901760, %v67_v0  ;;  %v179_v4 = vand.u32 4294901760, %v68_v1  ;;  %v11347_v5 = vld [vmem:[%s13793_s1 + $0x18] sm:$0xff]  ;;  %v182_v6 = vand.u32 4294901760, %v11342_v2  ;;  %v35_v7 = vld [vmem:[%s13794_s0] sm:$0xff]  ;;  %v36_v8 = vld [vmem:[%s13794_s0 + $0x8] sm:$0xff] }
   0x3   :  { %v185_v9 = vand.u32 4294901760, %v11347_v5  ;;  %v80_v10 = vsel %vm78_vm0, %v35_v7, 0  ;;  %v83_v11 = vsel %vm78_vm0, %v36_v8, 0  ;;  %v37_v12 = vld [vmem:[%s13794_s0 + $0x10] sm:$0xff]  ;;  %v38_v13 = vld [vmem:[%s13794_s0 + $0x18] sm:$0xff]  ;;  %v39_v18 = vld [vmem:[%s13794_s0 + $0x20] sm:$0xff] }
   0x4   :  { %v11365_v14 = vpack.c.bf16 %v179_v4, %v176_v3  ;;  %v11367_v15 = vand.u32 4294901760, %v80_v10  ;;  %v11369_v16 = vand.u32 4294901760, %v83_v11  ;;  %v11371_v17 = vsub.f32 %v67_v0, %v176_v3  ;;  %v40_v19 = vld [vmem:[%s13794_s0 + $0x28] sm:$0xff]  ;;  %v41_v40 = vld [vmem:[%s13794_s0 + $0x30] sm:$0xff]  ;;  %v42_v49 = vld [vmem:[%s13794_s0 + $0x38] sm:$0xff] }
   0x5   :  { %v11383_v20 = vpack.c.bf16 %v185_v9, %v182_v6  ;;  %v11385_v21 = vsub.f32 %v68_v1, %v179_v4  ;;  %v86_v22 = vsel %vm78_vm0, %v37_v12, 0  ;;  %v89_v23 = vsel %vm78_vm0, %v38_v13, 0  ;;  %v43_v50 = vld [vmem:[%s13794_s0 + $0x40] sm:$0xff]  ;;  %v44_v59 = vld [vmem:[%s13794_s0 + $0x48] sm:$0xff]  ;;  %v45_v60 = vld [vmem:[%s13794_s0 + $0x50] sm:$0xff] }
   0x6   :  { %10314 = vmatprep.subr.bf16.mxu0 %v11365_v14  ;;  %v11391_v24 = vsub.f32 %v80_v10, %v11367_v15  ;;  %v11394_v25 = vsub.f32 %v83_v11, %v11369_v16  ;;  %v13825_v26 = vand.u32 4294901760, %v11371_v17  ;;  %v11397_v27 = vand.u32 4294901760, %v86_v22  ;;  %v46_v8 = vld [vmem:[%s13794_s0 + $0x58] sm:$0xff] }
   0x7   :  { %10316 = vmatpush3.bf16.msra.mxu0 %v11365_v14  ;;  %v13822_v28 = vand.u32 4294901760, %v11385_v21  ;;  %v11401_v29 = vand.u32 4294901760, %v89_v23  ;;  %v92_v30 = vsel %vm78_vm0, %v39_v18, 0  ;;  %v95_v31 = vsel %vm78_vm0, %v40_v19, 0  ;;  %v47_v18 = vld [vmem:[%s13794_s0 + $0x60] sm:$0xff] }
   0x8   :  { %10318 = vmatprep.subr.bf16.mxu0 %v11383_v20  ;;  %v13821_v32 = vand.u32 4294901760, %v11391_v24  ;;  %v13818_v33 = vand.u32 4294901760, %v11394_v25  ;;  %v568_v34 = vsub.f32 %v11371_v17, %v13825_v26  ;;  %v11412_v35 = vsub.f32 %v86_v22, %v11397_v27 }
   0x9   :  { %v575_v36 = vsub.f32 %v11385_v21, %v13822_v28  ;;  %v11418_v37 = vsub.f32 %v89_v23, %v11401_v29  ;;  %v11420_v38 = vand.u32 4294901760, %v92_v30  ;;  %v11422_v39 = vand.u32 4294901760, %v95_v31 }
   0xa   :  { %v247_v41 = vsub.f32 %v11391_v24, %v13821_v32  ;;  %v257_v42 = vsub.f32 %v11394_v25, %v13818_v33  ;;  %v569_v43 = vand.u32 4294901760, %v568_v34  ;;  %v13817_v44 = vand.u32 4294901760, %v11412_v35 }
   0xb   :  { %10320 = vmatpush3.bf16.msra.mxu0 %v11383_v20  ;;  %v576_v45 = vand.u32 4294901760, %v575_v36  ;;  %v13816_v46 = vand.u32 4294901760, %v11418_v37  ;;  %v11437_v47 = vsub.f32 %v92_v30, %v11420_v38  ;;  %v11440_v48 = vsub.f32 %v95_v31, %v11422_v39 }
   0xc   :  { %v248_v51 = vand.u32 4294901760, %v247_v41  ;;  %v258_v52 = vand.u32 4294901760, %v257_v42  ;;  %v267_v53 = vsub.f32 %v11412_v35, %v13817_v44  ;;  %v98_v54 = vsel %vm78_vm0, %v41_v40, 0  ;;  %v48_v41 = vld [vmem:[%s13794_s0 + $0x68] sm:$0xff] }
   0xd   :  { %v10321_v55 = vpack.c.bf16 %v576_v45, %v569_v43  ;;  %v277_v56 = vsub.f32 %v11418_v37, %v13816_v46  ;;  %v13813_v57 = vand.u32 4294901760, %v11437_v47  ;;  %v13812_v58 = vand.u32 4294901760, %v11440_v48 }
   0xe   :  { %8977 = vmatprep.mubr.f32.mxu0 %v248_v51  ;;  %v268_v61 = vand.u32 4294901760, %v267_v53  ;;  %v11463_v62 = vand.u32 4294901760, %v98_v54  ;;  %v101_v63 = vsel %vm78_vm0, %v42_v49, 0  ;;  %v104_v0 = vsel %vm78_vm0, %v43_v50, 0 }
   0xf   :  { %8978 = vmatmul.mubr.f32.vlgmr.msra.gmra.mrb[0].mxu0 %v258_v52  ;;  %10322 = vmatprep.subr.bf16.mxu0 %v10321_v55  ;;  %v278_v1 = vand.u32 4294901760, %v277_v56  ;;  %v287_v3 = vsub.f32 %v11437_v47, %v13813_v57  ;;  %v297_v4 = vsub.f32 %v11440_v48, %v13812_v58  ;;  %v11473_v7 = vand.u32 4294901760, %v101_v63 }
  0x10   :  { %10324 = vmatpush3.bf16.msra.mxu0 %v10321_v55  ;;  %8980 = vmatprep.mubr.f32.mxu0 %v268_v61  ;;  %v11479_v10 = vsub.f32 %v98_v54, %v11463_v62  ;;  %v11481_v11 = vand.u32 4294901760, %v104_v0  ;;  %v107_v12 = vsel %vm78_vm0, %v44_v59, 0  ;;  %v110_v13 = vsel %vm78_vm0, %v45_v60, 0  ;;  %v49_v60 = vld [vmem:[%s13794_s0 + $0x70] sm:$0xff] }
  0x11   :  { %v288_v19 = vand.u32 4294901760, %v287_v3  ;;  %v298_v22 = vand.u32 4294901760, %v297_v4  ;;  %v11489_v23 = vsub.f32 %v101_v63, %v11473_v7  ;;  %v11491_v30 = vand.u32 4294901760, %v107_v12 }
  0x12   :  { %14097 = vst [vmem:[#allocation2_spill] sm:$0xff] %v11479_v10  ;;  %v13810_v31 = vand.u32 4294901760, %v11479_v10  ;;  %v11495_v34 = vsub.f32 %v104_v0, %v11481_v11  ;;  %v11497_v36 = vand.u32 4294901760, %v110_v13  ;;  %v113_v40 = vsel %vm78_vm0, %v46_v8, 0 }
  0x13   :  { %14098 = vst [vmem:[#allocation3_spill] sm:$0xff] %v11489_v23  ;;  %8981 = vmatmul.mubr.f32.gmra.mrb[2].mxu0 %v278_v1  ;;  %v13809_v42 = vand.u32 4294901760, %v11489_v23  ;;  %v11505_v43 = vsub.f32 %v107_v12, %v11491_v30  ;;  %v11507_v45 = vand.u32 4294901760, %v113_v40  ;;  %v116_v49 = vsel %vm78_vm0, %v47_v18, 0  ;;  %v51_v18 = vld [vmem:[%s13794_s0 + $0x80] sm:$0xff] }
  0x14   :  { %14099 = vst [vmem:[#allocation4_spill] sm:$0xff] %v11495_v34  ;;  %8983 = vmatprep.mubr.f32.mxu0 %v288_v19  ;;  %v307_v50 = vsub.f32 %v11479_v10, %v13810_v31  ;;  %v13808_v51 = vand.u32 4294901760, %v11495_v34  ;;  %v11515_v52 = vsub.f32 %v110_v13, %v11497_v36  ;;  %v11517_v53 = vand.u32 4294901760, %v116_v49  ;;  %v50_v13 = vld [vmem:[%s13794_s0 + $0x78] sm:$0xff] }
  0x15   :  { %14100 = vst [vmem:[#allocation5_spill] sm:$0xff] %v11505_v43  ;;  %v317_v54 = vsub.f32 %v11489_v23, %v13809_v42  ;;  %v13806_v55 = vand.u32 4294901760, %v11505_v43  ;;  %v11524_v56 = vsub.f32 %v113_v40, %v11507_v45  ;;  %v119_v59 = vsel %vm78_vm0, %v48_v41, 0 }
  0x16   :  { %14101 = vst [vmem:[#allocation6_spill] sm:$0xff] %v11515_v52  ;;  %v308_v61 = vand.u32 4294901760, %v307_v50  ;;  %v327_v63 = vsub.f32 %v11495_v34, %v13808_v51  ;;  %v13805_v0 = vand.u32 4294901760, %v11515_v52  ;;  %v11535_v1 = vsub.f32 %v116_v49, %v11517_v53 }
  0x17   :  { %14102 = vst [vmem:[#allocation7_spill] sm:$0xff] %v11524_v56  ;;  %8984 = vmatmul.mubr.f32.gmra.mrb[4].mxu0 %v298_v22  ;;  %v318_v3 = vand.u32 4294901760, %v317_v54  ;;  %v337_v4 = vsub.f32 %v11505_v43, %v13806_v55  ;;  %v13807_v8 = vand.u32 4294901760, %v11524_v56  ;;  %v11541_v12 = vand.u32 4294901760, %v119_v59 }
  0x18   :  { %14103 = vst [vmem:[#allocation8_spill] sm:$0xff] %v11535_v1  ;;  %8986 = vmatprep.mubr.f32.mxu0 %v308_v61  ;;  %v328_v19 = vand.u32 4294901760, %v327_v63  ;;  %v347_v22 = vsub.f32 %v11515_v52, %v13805_v0  ;;  %v13811_v40 = vand.u32 4294901760, %v11535_v1  ;;  %v122_v41 = vsel %vm78_vm0, %v49_v60, 0  ;;  %v52_v61 = vld [vmem:[%s13794_s0 + $0x88] sm:$0xff] }
  0x19   :  { %v357_v49 = vsub.f32 %v11524_v56, %v13807_v8  ;;  %v11558_v50 = vsub.f32 %v119_v59, %v11541_v12  ;;  %v11560_v54 = vand.u32 4294901760, %v122_v41  ;;  %v338_v63 = vand.u32 4294901760, %v337_v4  ;;  %v53_v4 = vld [vmem:[%s13794_s0 + $0x90] sm:$0xff] }
  0x1a   :  { %v367_v0 = vsub.f32 %v11535_v1, %v13811_v40  ;;  %v125_v60 = vsel %vm78_vm0, %v50_v13, 0  ;;  %v128_v55 = vsel %vm78_vm0, %v51_v18, 0  ;;  %v348_v8 = vand.u32 4294901760, %v347_v22 }
  0x1b   :  { %14104 = vst [vmem:[#allocation9_spill] sm:$0xff] %v11558_v50  ;;  %8987 = vmatmul.mubr.f32.gmra.mrb[6].mxu0 %v318_v3  ;;  %v13815_v59 = vand.u32 4294901760, %v11558_v50  ;;  %v11572_v51 = vsub.f32 %v122_v41, %v11560_v54  ;;  %v11574_v42 = vand.u32 4294901760, %v125_v60  ;;  %v358_v31 = vand.u32 4294901760, %v357_v49 }
  0x1c   :  { %8989 = vmatprep.mubr.f32.mxu0 %v328_v19  ;;  %v11579_v40 = vand.u32 4294901760, %v128_v55  ;;  %v131_v13 = vsel %vm78_vm0, %v52_v61, 0  ;;  %v11585_v3 = vsub.f32 %v11342_v2, %v182_v6  ;;  %v368_v18 = vand.u32 4294901760, %v367_v0  ;;  %v54_v6 = vld [vmem:[%s13794_s0 + $0x98] sm:$0xff] }
  0x1d   :  { %14105 = vst [vmem:[#allocation10_spill] sm:$0xff] %v11572_v51  ;;  %v13814_v22 = vand.u32 4294901760, %v11572_v51  ;;  %v11589_v41 = vsub.f32 %v125_v60, %v11574_v42  ;;  %v11591_v58 = vand.u32 4294901760, %v131_v13  ;;  %v11600_v61 = vsub.f32 %v11347_v5, %v185_v9 }
  0x1e   :  { %v11594_v19 = vsub.f32 %v128_v55, %v11579_v40  ;;  %v13819_v49 = vand.u32 4294901760, %v11585_v3  ;;  %v134_v2 = vsel %vm78_vm0, %v53_v4, 0  ;;  %v377_v0 = vsub.f32 %v11558_v50, %v13815_v59  ;;  %v60_v50 = vld [vmem:[%s13794_s0 + $0xc8] sm:$0xff] }
  0x1f   :  { %14106 = vst [vmem:[#allocation11_spill] sm:$0xff] %v11589_v41  ;;  %8990 = vmatmul.mubr.f32.gmra.mrb[8].mxu0 %v338_v63  ;;  %v387_v55 = vsub.f32 %v11572_v51, %v13814_v22  ;;  %v13820_v60 = vand.u32 4294901760, %v11589_v41  ;;  %v11614_v5 = vsub.f32 %v131_v13, %v11591_v58  ;;  %v13824_v4 = vand.u32 4294901760, %v11600_v61  ;;  %v55_v22 = vld [vmem:[%s13794_s0 + $0xa0] sm:$0xff] }
  0x20   :  { %14107 = vst [vmem:[#allocation12_spill] sm:$0xff] %v11594_v19  ;;  %8992 = vmatprep.mubr.f32.mxu0 %v348_v8  ;;  %v13823_v9 = vand.u32 4294901760, %v11594_v19  ;;  %v582_v63 = vsub.f32 %v11585_v3, %v13819_v49  ;;  %v11621_v57 = vand.u32 4294901760, %v134_v2  ;;  %v137_v59 = vsel %vm78_vm0, %v54_v6, 0  ;;  %v57_v6 = vld [vmem:[%s13794_s0 + $0xb0] sm:$0xff] }
  0x21   :  { %14108 = vst [vmem:[#allocation13_spill] sm:$0xff] %v11614_v5  ;;  %v397_v13 = vsub.f32 %v11589_v41, %v13820_v60  ;;  %v589_v33 = vsub.f32 %v11600_v61, %v13824_v4  ;;  %v56_v60 = vld [vmem:[%s13794_s0 + $0xa8] sm:$0xff]  ;;  %v378_v32 = vand.u32 4294901760, %v377_v0  ;;  %v388_v28 = vand.u32 4294901760, %v387_v55 }
  0x22   :  { %v407_v46 = vsub.f32 %v11594_v19, %v13823_v9  ;;  %v583_v44 = vand.u32 4294901760, %v582_v63  ;;  %v11638_v49 = vsub.f32 %v134_v2, %v11621_v57  ;;  %v11646_v9 = vand.u32 4294901760, %v137_v59  ;;  %v58_v19 = vld [vmem:[%s13794_s0 + $0xb8] sm:$0xff] }
  0x23   :  { %8993 = vmatmul.mubr.f32.gmra.mrb[10].mxu0 %v358_v31  ;;  %v140_v63 = vsel %vm78_vm0, %v55_v22, 0  ;;  %v398_v4 = vand.u32 4294901760, %v397_v13  ;;  %v590_v26 = vand.u32 4294901760, %v589_v33  ;;  %v59_v31 = vld [vmem:[%s13794_s0 + $0xc0] sm:$0xff]  ;;  %v14112_v0 = vand.u32 4294901760, %v11614_v5 }
  0x24   :  { %14109 = vst [vmem:[#allocation14_spill] sm:$0xff] %v11638_v49  ;;  %14110 = vst [vmem:[#allocation15_spill] sm:$0xff] %v11646_v9  ;;  %8995 = vmatprep.mubr.f32.mxu0 %v368_v18  ;;  %v11650_v8 = vand.u32 4294901760, %v140_v63  ;;  %v11662_v18 = vsub.f32 %v137_v59, %v11646_v9  ;;  %v143_v33 = vsel %vm78_vm0, %v56_v60, 0  ;;  %v146_v22 = vsel %vm78_vm0, %v57_v6, 0 }
  0x25   :  { %v417_v55 = vsub.f32 %v11614_v5, %v14112_v0  ;;  %v408_v13 = vand.u32 4294901760, %v407_v46  ;;  %v10325_v2 = vpack.c.bf16 %v590_v26, %v583_v44  ;;  %v11669_v51 = vand.u32 4294901760, %v143_v33  ;;  %v61_v0 = vld [vmem:[%s13794_s0 + $0xd0] sm:$0xff]  ;;  %v62_v5 = vld [vmem:[%s13794_s0 + $0xd8] sm:$0xff] }
  0x26   :  { %14111 = vst [vmem:[#allocation16_spill] sm:$0xff] %v11650_v8  ;;  %14113 = vst [vmem:[#allocation17_spill] sm:$0xff] %v11662_v18  ;;  %v11667_v41 = vsub.f32 %v140_v63, %v11650_v8  ;;  %v11675_v59 = vand.u32 4294901760, %v146_v22  ;;  %v149_v60 = vsel %vm78_vm0, %v58_v19, 0  ;;  %v152_v6 = vsel %vm78_vm0, %v59_v31, 0 }
  0x27   :  { %14115 = vst [vmem:[#allocation19_spill] sm:$0xff] %v11669_v51  ;;  %8996 = vmatmul.mubr.f32.gmra.mrb[12].mxu0 %v378_v32  ;;  %10326 = vmatprep.subr.bf16.mxu0 %v10325_v2  ;;  %v14117_v26 = vand.u32 4294901760, %v11638_v49  ;;  %v11684_v63 = vsub.f32 %v143_v33, %v11669_v51  ;;  %v11686_v32 = vand.u32 4294901760, %v149_v60  ;;  %v155_v31 = vsel %vm78_vm0, %v60_v50, 0 }
  0x28   :  { %14114 = vst [vmem:[#allocation18_spill] sm:$0xff] %v11667_v41  ;;  %14116 = vst [vmem:[#allocation20_spill] sm:$0xff] %v11675_v59  ;;  %8998 = vmatprep.mubr.f32.mxu0 %v388_v28  ;;  %10328 = vmatpush3.bf16.msra.mxu0 %v10325_v2  ;;  %v11692_v19 = vsub.f32 %v146_v22, %v11675_v59  ;;  %v11694_v28 = vand.u32 4294901760, %v152_v6  ;;  %v14124_v2 = vand.u32 4294901760, %v11662_v18  ;;  %v14126_v46 = vand.u32 4294901760, %v11667_v41 }
  0x29   :  { %v427_v44 = vsub.f32 %v11638_v49, %v14117_v26  ;;  %14118 = vst [vmem:[#allocation21_spill] sm:$0xff] %v11684_v63  ;;  %14119 = vst [vmem:[#allocation22_spill] sm:$0xff] %v11686_v32  ;;  %v418_v26 = vand.u32 4294901760, %v417_v55  ;;  %v11699_v33 = vsub.f32 %v149_v60, %v11686_v32  ;;  %v11701_v49 = vand.u32 4294901760, %v155_v31 }
  0x2a   :  { %14120 = vst [vmem:[#allocation23_spill] sm:$0xff] %v11692_v19  ;;  %14121 = vst [vmem:[#allocation24_spill] sm:$0xff] %v11694_v28  ;;  %v437_v22 = vsub.f32 %v11662_v18, %v14124_v2  ;;  %v11711_v50 = vsub.f32 %v152_v6, %v11694_v28  ;;  %v158_v55 = vsel %vm78_vm0, %v61_v0, 0  ;;  %v447_v56 = vsub.f32 %v11667_v41, %v14126_v46  ;;  %v64_v41 = vld [vmem:[%s13794_s0 + $0xe8] sm:$0xff] }
  0x2b   :  { %14122 = vst [vmem:[#allocation25_spill] sm:$0xff] %v11699_v33  ;;  %14123 = vst [vmem:[#allocation26_spill] sm:$0xff] %v11701_v49  ;;  %8999 = vmatmul.mubr.f32.gmra.mrb[14].mxu0 %v398_v4  ;;  %v428_v60 = vand.u32 4294901760, %v427_v44  ;;  %v63_v4 = vld [vmem:[%s13794_s0 + $0xe0] sm:$0xff]  ;;  %v11720_v52 = vand.u32 4294901760, %v158_v55  ;;  %v161_v2 = vsel %vm78_vm0, %v62_v5, 0  ;;  %v11731_v46 = vsub.f32 %v155_v31, %v11701_v49 }
  0x2c   :  { %14125 = vst [vmem:[#allocation27_spill] sm:$0xff] %v11711_v50  ;;  %9001 = vmatprep.mubr.f32.mxu0 %v408_v13  ;;  %v14128_v1 = vand.u32 4294901760, %v11684_v63  ;;  %v14129_v0 = vand.u32 4294901760, %v11692_v19  ;;  %v65_v5 = vld [vmem:[%s13794_s0 + $0xf0] sm:$0xff]  ;;  %v438_v18 = vand.u32 4294901760, %v437_v22  ;;  %v448_v44 = vand.u32 4294901760, %v447_v56 }
  0x2d   :  { %14127 = vst [vmem:[#allocation28_spill] sm:$0xff] %v11720_v52  ;;  %14130 = vst [vmem:[#allocation29_spill] sm:$0xff] %v11731_v46  ;;  %v11744_v31 = vsub.f32 %v158_v55, %v11720_v52  ;;  %v167_v43 = vsel %vm78_vm0, %v64_v41, 0  ;;  %v170_v34 = vsel %vm78_vm0, %v65_v5, 0  ;;  %v14133_v23 = vand.u32 4294901760, %v11699_v33 }
  0x2e   :  { %v457_v6 = vsub.f32 %v11684_v63, %v14128_v1  ;;  %v467_v13 = vsub.f32 %v11692_v19, %v14129_v0  ;;  %v11740_v63 = vand.u32 4294901760, %v161_v2  ;;  %v164_v0 = vsel %vm78_vm0, %v63_v4, 0 }
  0x2f   :  { %9002 = vmatmul.mubr.f32.gmra.mrb[16].mxu0 %v418_v26  ;;  %v11746_v19 = vand.u32 4294901760, %v164_v0  ;;  %v66_v26 = vld [vmem:[%s13794_s0 + $0xf8] sm:$0xff]  ;;  %v14134_v55 = vand.u32 4294901760, %v11711_v50  ;;  %v11763_v5 = vand.u32 4294901760, %v167_v43  ;;  %v11771_v56 = vand.u32 4294901760, %v170_v34 }
  0x30   :  { %14131 = vst [vmem:[#allocation30_spill] sm:$0xff] %v11740_v63  ;;  %9004 = vmatprep.mubr.f32.mxu0 %v428_v60  ;;  %v458_v22 = vand.u32 4294901760, %v457_v6  ;;  %v468_v1 = vand.u32 4294901760, %v467_v13  ;;  %v477_v60 = vsub.f32 %v11699_v33, %v14133_v23  ;;  %v11761_v41 = vsub.f32 %v161_v2, %v11740_v63 }
  0x31   :  { %14132 = vst [vmem:[#allocation31_spill] sm:$0xff] %v11746_v19  ;;  %v487_v4 = vsub.f32 %v11711_v50, %v14134_v55  ;;  %14136 = vst [vmem:[#allocation33_spill] sm:$0xff] %v11763_v5  ;;  %v10329_v6 = vpack.c.bf16 %v11385_v21, %v11371_v17  ;;  %v11769_v23 = vsub.f32 %v164_v0, %v11746_v19  ;;  %v14138_v2 = vand.u32 4294901760, %v11731_v46 }
  0x32   :  { %14135 = vst [vmem:[#allocation32_spill] sm:$0xff] %v11761_v41  ;;  %14137 = vst [vmem:[#allocation34_spill] sm:$0xff] %v11771_v56  ;;  %v478_v55 = vand.u32 4294901760, %v477_v60  ;;  %v13866_v33 = vand.u32 4294901760, %v11761_v41  ;;  %v14140_v10 = vand.u32 4294901760, %v11744_v31 }
  0x33   :  { %9005 = vmatmul.mubr.f32.gmra.mrb[18].mxu0 %v438_v18  ;;  %v173_v18 = vsel %vm78_vm0, %v66_v26, 0  ;;  %10330 = vmatprep.subr.bf16.mxu0 %v10329_v6  ;;  %v497_v50 = vsub.f32 %v11731_v46, %v14138_v2  ;;  %v488_v0 = vand.u32 4294901760, %v487_v4  ;;  %v13872_v60 = vand.u32 4294901760, %v11769_v23 }
  0x34   :  { %9007 = vmatprep.mubr.f32.mxu0 %v448_v44  ;;  %v11779_v44 = vsub.f32 %v167_v43, %v11763_v5  ;;  %v11781_v13 = vand.u32 4294901760, %v173_v18  ;;  %v507_v26 = vsub.f32 %v11744_v31, %v14140_v10  ;;  %v517_v43 = vsub.f32 %v11761_v41, %v13866_v33 }
  0x35   :  { %v498_v2 = vand.u32 4294901760, %v497_v50  ;;  %v527_v10 = vsub.f32 %v11769_v23, %v13872_v60  ;;  %v14158_v60 = vld [vmem:[#allocation21_spill] sm:$0xff] }
  0x36   :  { %14139 = vst [vmem:[#allocation35_spill] sm:$0xff] %v11781_v13  ;;  %v13871_v46 = vand.u32 4294901760, %v11779_v44  ;;  %v508_v4 = vand.u32 4294901760, %v507_v26 }
  0x37   :  { %9008 = vmatmul.mubr.f32.gmra.mrb[20].mxu0 %v458_v22  ;;  %v11788_v22 = vsub.f32 %v170_v34, %v11771_v56  ;;  %v528_v41 = vand.u32 4294901760, %v527_v10 }
  0x38   :  { %9010 = vmatprep.mubr.f32.mxu0 %v468_v1  ;;  %v11795_v1 = vsub.f32 %v173_v18, %v11781_v13  ;;  %v537_v50 = vsub.f32 %v11779_v44, %v13871_v46  ;;  %v14157_v46 = vld [vmem:[#allocation18_spill] sm:$0xff] }
  0x39   :  { %v13870_v34 = vand.u32 4294901760, %v11788_v22 }
  0x3a   :  { %v13869_v33 = vand.u32 4294901760, %v11795_v1 }
  0x3b   :  { %9011 = vmatmul.mubr.f32.gmra.mrb[22].mxu0 %v478_v55  ;;  %v518_v55 = vand.u32 4294901760, %v517_v43  ;;  %v547_v18 = vsub.f32 %v11788_v22, %v13870_v34  ;;  %v14156_v34 = vld [vmem:[#allocation17_spill] sm:$0xff] }
  0x3c   :  { %9013 = vmatprep.mubr.f32.mxu0 %v488_v0  ;;  %v538_v0 = vand.u32 4294901760, %v537_v50  ;;  %v557_v26 = vsub.f32 %v11795_v1, %v13869_v33  ;;  %v14144_v50 = vld [vmem:[#allocation3_spill] sm:$0xff]  ;;  %v14155_v33 = vld [vmem:[#allocation14_spill] sm:$0xff] }
  0x3e   :  { %v558_v43 = vand.u32 4294901760, %v557_v26  ;;  %v14149_v26 = vld [vmem:[#allocation8_spill] sm:$0xff] }
  0x3f   :  { %9014 = vmatmul.mubr.f32.gmra.mrb[24].mxu0 %v498_v2  ;;  %v548_v2 = vand.u32 4294901760, %v547_v18  ;;  %v14145_v18 = vld [vmem:[#allocation4_spill] sm:$0xff] }
  0x40   :  { %9016 = vmatprep.mubr.f32.mxu0 %v508_v4  ;;  %v10333_v4 = vpack.c.bf16 %v11600_v61, %v11585_v3 }
  0x43   :  { %9017 = vmatmul.mubr.f32.gmra.mrb[26].mxu0 %v518_v55  ;;  %v14143_v55 = vld [vmem:[#allocation2_spill] sm:$0xff] }
  0x44   :  { %9019 = vmatprep.mubr.f32.mxu0 %v528_v41  ;;  %v14141_v41 = vand.u32 4294901760, %v11371_v17  ;;  %v14147_v17 = vld [vmem:[#allocation6_spill] sm:$0xff] }
  0x47   :  { %9020 = vmatmul.mubr.f32.gmra.mrb[28].mxu0 %v538_v0  ;;  %v14146_v0 = vld [vmem:[#allocation5_spill] sm:$0xff] }
  0x48   :  { %9022 = vmatprep.mubr.f32.mxu0 %v548_v2  ;;  %v14150_v2 = vld [vmem:[#allocation9_spill] sm:$0xff] }
  0x4b   :  { %9023 = vmatmul.mubr.f32.gmra.mrb[30].mxu0 %v558_v43  ;;  %v14151_v43 = vld [vmem:[#allocation10_spill] sm:$0xff] }
  0x4c   :  { %9033 = vmatprep.mubr.f32.mxu0 %v11367_v15 }
  0x4f   :  { %9034 = vmatmul.mubr.f32.vlgmr.msra.gmra.mrb[0].mxu0 %v11369_v16 }
  0x50   :  { %10332 = vmatpush3.bf16.msra.mxu0 %v10329_v6  ;;  %9036 = vmatprep.mubr.f32.mxu0 %v11397_v27  ;;  %v14142_v6 = vand.u32 4294901760, %v11385_v21  ;;  %v14148_v21 = vld [vmem:[#allocation7_spill] sm:$0xff] }
  0x51   :  { %10334 = vmatprep.subr.bf16.mxu0 %v10333_v4 }
  0x52   :  { %v10345_v10 = vpack.c.bf16 %v14142_v6, %v14141_v41  ;;  %v14153_v41 = vld [vmem:[#allocation12_spill] sm:$0xff]  ;;  %v14154_v6 = vld [vmem:[#allocation13_spill] sm:$0xff] }
  0x53   :  { %9037 = vmatmul.mubr.f32.gmra.mrb[2].mxu0 %v11401_v29 }
  0x54   :  { %9039 = vmatprep.mubr.f32.mxu0 %v11420_v38  ;;  %10336 = vmatpush3.bf16.msra.mxu0 %v10333_v4  ;;  %v14152_v4 = vld [vmem:[#allocation11_spill] sm:$0xff] }
  0x55   :  { %10338 = vmatprep.subr.bf16.mxu0 %v11365_v14 }
  0x57   :  { %9040 = vmatmul.mubr.f32.gmra.mrb[4].mxu0 %v11422_v39 }
  0x58   :  { %9042 = vmatprep.mubr.f32.mxu0 %v11463_v62 }
  0x5b   :  { %9043 = vmatmul.mubr.f32.gmra.mrb[6].mxu0 %v11473_v7 }
  0x5c   :  { %9045 = vmatprep.mubr.f32.mxu0 %v11481_v11 }
  0x5f   :  { %9046 = vmatmul.mubr.f32.gmra.mrb[8].mxu0 %v11491_v30 }
  0x60   :  { %9048 = vmatprep.mubr.f32.mxu0 %v11497_v36 }
  0x63   :  { %9049 = vmatmul.mubr.f32.gmra.mrb[10].mxu0 %v11507_v45 }
  0x64   :  { %9051 = vmatprep.mubr.f32.mxu0 %v11517_v53 }
  0x67   :  { %9052 = vmatmul.mubr.f32.gmra.mrb[12].mxu0 %v11541_v12 }
  0x68   :  { %9054 = vmatprep.mubr.f32.mxu0 %v11560_v54 }
  0x6b   :  { %9055 = vmatmul.mubr.f32.gmra.mrb[14].mxu0 %v11574_v42 }
  0x6c   :  { %9057 = vmatprep.mubr.f32.mxu0 %v11579_v40 }
  0x6f   :  { %9058 = vmatmul.mubr.f32.gmra.mrb[16].mxu0 %v11591_v58 }
  0x70   :  { %9060 = vmatprep.mubr.f32.mxu0 %v11621_v57 }
  0x73   :  { %9061 = vmatmul.mubr.f32.gmra.mrb[18].mxu0 %v11646_v9  ;;  %v14170_v9 = vand.u32 4294901760, %v11437_v47 }
  0x74   :  { %9063 = vmatprep.mubr.f32.mxu0 %v11650_v8  ;;  %v14169_v8 = vand.u32 4294901760, %v11418_v37 }
  0x77   :  { %9064 = vmatmul.mubr.f32.gmra.mrb[20].mxu0 %v11669_v51  ;;  %v14168_v51 = vand.u32 4294901760, %v11412_v35 }
  0x78   :  { %9066 = vmatprep.mubr.f32.mxu0 %v11675_v59  ;;  %v14167_v59 = vand.u32 4294901760, %v11394_v25 }
  0x7b   :  { %9067 = vmatmul.mubr.f32.gmra.mrb[22].mxu0 %v11686_v32 }
  0x7c   :  { %9069 = vmatprep.mubr.f32.mxu0 %v11694_v28  ;;  %v14166_v28 = vand.u32 4294901760, %v11600_v61  ;;  %v14181_v61 = vand.u32 4294901760, %v14152_v4 }
  0x7f   :  { %9070 = vmatmul.mubr.f32.gmra.mrb[24].mxu0 %v11701_v49  ;;  %v14165_v49 = vand.u32 4294901760, %v11585_v3  ;;  %v14179_v3 = vand.u32 4294901760, %v14150_v2 }
  0x80   :  { %9072 = vmatprep.mubr.f32.mxu0 %v11720_v52  ;;  %v14164_v52 = vand.u32 4294901760, %v11391_v24 }
  0x81   :  { %v10349_v32 = vpack.c.bf16 %v14166_v28, %v14165_v49  ;;  %v14180_v49 = vand.u32 4294901760, %v14151_v43  ;;  %v14186_v28 = vand.u32 4294901760, %v14157_v46 }
  0x83   :  { %9073 = vmatmul.mubr.f32.gmra.mrb[26].mxu0 %v11740_v63  ;;  %v14163_v63 = vld [vmem:[#allocation32_spill] sm:$0xff] }
  0x84   :  { %9075 = vmatprep.mubr.f32.mxu0 %v11746_v19  ;;  %v14162_v19 = vld [vmem:[#allocation29_spill] sm:$0xff] }
  0x87   :  { %9076 = vmatmul.mubr.f32.gmra.mrb[28].mxu0 %v11763_v5  ;;  %v14161_v5 = vld [vmem:[#allocation27_spill] sm:$0xff] }
  0x88   :  { %9078 = vmatprep.mubr.f32.mxu0 %v11771_v56  ;;  %v14160_v56 = vld [vmem:[#allocation25_spill] sm:$0xff] }
  0x8b   :  { %9079 = vmatmul.mubr.f32.gmra.mrb[30].mxu0 %v11781_v13  ;;  %v14159_v13 = vld [vmem:[#allocation23_spill] sm:$0xff] }
  0x8c   :  { %9089 = vmatprep.mubr.f32.mxu0 %v11391_v24  ;;  %v14171_v24 = vand.u32 4294901760, %v11440_v48 }
  0x8f   :  { %9090 = vmatmul.mubr.f32.vlgmr.msra.gmra.mrb[0].mxu0 %v11394_v25  ;;  %v14172_v25 = vand.u32 4294901760, %v14143_v55 }
  0x90   :  { %10340 = vmatpush3.bf16.msra.mxu0 %v11365_v14  ;;  %9092 = vmatprep.mubr.f32.mxu0 %v11412_v35  ;;  %v14174_v35 = vand.u32 4294901760, %v14145_v18 }
  0x91   :  { %10342 = vmatprep.subr.bf16.mxu0 %v11383_v20 }
  0x93   :  { %9093 = vmatmul.mubr.f32.gmra.mrb[2].mxu0 %v11418_v37  ;;  %v14175_v37 = vand.u32 4294901760, %v14146_v0 }
  0x94   :  { %9095 = vmatprep.mubr.f32.mxu0 %v11437_v47  ;;  %10344 = vmatpush3.bf16.msra.mxu0 %v11383_v20  ;;  %v14176_v47 = vand.u32 4294901760, %v14147_v17 }
  0x95   :  { %10346 = vmatprep.subr.bf16.mxu0 %v10345_v10 }
  0x97   :  { %9096 = vmatmul.mubr.f32.gmra.mrb[4].mxu0 %v11440_v48  ;;  %v14178_v48 = vand.u32 4294901760, %v14149_v26 }
  0x98   :  { %9098 = vmatprep.mubr.f32.mxu0 %v14143_v55  ;;  %v14188_v55 = vand.u32 4294901760, %v14159_v13 }
  0x9b   :  { %9099 = vmatmul.mubr.f32.gmra.mrb[6].mxu0 %v14144_v50 }
  0x9c   :  { %9101 = vmatprep.mubr.f32.mxu0 %v14145_v18  ;;  %v14190_v18 = vand.u32 4294901760, %v14161_v5 }
  0x9f   :  { %9102 = vmatmul.mubr.f32.gmra.mrb[8].mxu0 %v14146_v0  ;;  %v14207_v0 = vld [vmem:[#allocation31_spill] sm:$0xff] }
  0xa0   :  { %9104 = vmatprep.mubr.f32.mxu0 %v14147_v17  ;;  %v14208_v17 = vld [vmem:[#allocation33_spill] sm:$0xff] }
  0xa3   :  { %9105 = vmatmul.mubr.f32.gmra.mrb[10].mxu0 %v14148_v21 }
  0xa4   :  { %9107 = vmatprep.mubr.f32.mxu0 %v14149_v26  ;;  %v14210_v26 = vld [vmem:[#allocation35_spill] sm:$0xff] }
  0xa7   :  { %9108 = vmatmul.mubr.f32.gmra.mrb[12].mxu0 %v14150_v2 }
  0xa8   :  { %9110 = vmatprep.mubr.f32.mxu0 %v14151_v43 }
  0xab   :  { %9111 = vmatmul.mubr.f32.gmra.mrb[14].mxu0 %v14152_v4 }
  0xac   :  { %9113 = vmatprep.mubr.f32.mxu0 %v14153_v41 }
  0xaf   :  { %9114 = vmatmul.mubr.f32.gmra.mrb[16].mxu0 %v14154_v6 }
  0xb0   :  { %9116 = vmatprep.mubr.f32.mxu0 %v14155_v33 }
  0xb3   :  { %9117 = vmatmul.mubr.f32.gmra.mrb[18].mxu0 %v14156_v34 }
  0xb4   :  { %9119 = vmatprep.mubr.f32.mxu0 %v14157_v46  ;;  %v14193_v46 = vand.u32 4294901760, %v14163_v63 }
  0xb7   :  { %9120 = vmatmul.mubr.f32.gmra.mrb[20].mxu0 %v14158_v60 }
  0xb8   :  { %9122 = vmatprep.mubr.f32.mxu0 %v14159_v13  ;;  %v14195_v13 = vand.u32 4294901760, %v11779_v44 }
  0xbb   :  { %9123 = vmatmul.mubr.f32.gmra.mrb[22].mxu0 %v14160_v56 }
  0xbc   :  { %9125 = vmatprep.mubr.f32.mxu0 %v14161_v5  ;;  %v14197_v5 = vand.u32 4294901760, %v11795_v1 }
  0xbf   :  { %9126 = vmatmul.mubr.f32.gmra.mrb[24].mxu0 %v14162_v19 }
  0xc0   :  { %9128 = vmatprep.mubr.f32.mxu0 %v11744_v31 }
  0xc3   :  { %9129 = vmatmul.mubr.f32.gmra.mrb[26].mxu0 %v14163_v63  ;;  %v14200_v63 = vld [vmem:[#allocation19_spill] sm:$0xff] }
  0xc4   :  { %9131 = vmatprep.mubr.f32.mxu0 %v11769_v23 }
  0xc7   :  { %9132 = vmatmul.mubr.f32.gmra.mrb[28].mxu0 %v11779_v44  ;;  %v14204_v44 = vld [vmem:[#allocation26_spill] sm:$0xff] }
  0xc8   :  { %9134 = vmatprep.mubr.f32.mxu0 %v11788_v22 }
  0xcb   :  { %9135 = vmatmul.mubr.f32.gmra.mrb[30].mxu0 %v11795_v1  ;;  %v14206_v1 = vld [vmem:[#allocation30_spill] sm:$0xff] }
  0xcc   :  { %9145 = vmatprep.mubr.f32.mxu0 %v14164_v52  ;;  %v14173_v52 = vand.u32 4294901760, %v14144_v50  ;;  %v14189_v50 = vand.u32 4294901760, %v14160_v56  ;;  %v14196_v56 = vand.u32 4294901760, %v11788_v22  ;;  %v14205_v22 = vld [vmem:[#allocation28_spill] sm:$0xff] }
  0xcf   :  { %9146 = vmatmul.mubr.f32.vlgmr.msra.gmra.mrb[0].mxu0 %v14167_v59  ;;  %v14184_v59 = vand.u32 4294901760, %v14155_v33  ;;  %v14191_v33 = vand.u32 4294901760, %v14162_v19  ;;  %v14201_v19 = vld [vmem:[#allocation20_spill] sm:$0xff] }
  0xd0   :  { %10348 = vmatpush3.bf16.msra.mxu0 %v10345_v10  ;;  %9148 = vmatprep.mubr.f32.mxu0 %v14168_v51  ;;  %v14177_v51 = vand.u32 4294901760, %v14148_v21  ;;  %v14187_v10 = vand.u32 4294901760, %v14158_v60  ;;  %v14194_v60 = vand.u32 4294901760, %v11769_v23  ;;  %v14203_v23 = vld [vmem:[#allocation24_spill] sm:$0xff]  ;;  %v14209_v21 = vld [vmem:[#allocation34_spill] sm:$0xff] }
  0xd1   :  { %10350 = vmatprep.subr.bf16.mxu0 %v10349_v32 }
  0xd3   :  { %9149 = vmatmul.mubr.f32.gmra.mrb[2].mxu0 %v14169_v8  ;;  %v14183_v8 = vand.u32 4294901760, %v14154_v6 }
  0xd4   :  { %9151 = vmatprep.mubr.f32.mxu0 %v14170_v9  ;;  %10352 = vmatpush3.bf16.msra.mxu0 %v10349_v32  ;;  %v14182_v9 = vand.u32 4294901760, %v14153_v41  ;;  %v14185_v32 = vand.u32 4294901760, %v14156_v34  ;;  %v14192_v34 = vand.u32 4294901760, %v11744_v31  ;;  %v14202_v31 = vld [vmem:[#allocation22_spill] sm:$0xff] }
  0xd5   :  { %10354 = vmatprep.subr.bf16.mxu0 %v11365_v14 }
  0xd7   :  { %9152 = vmatmul.mubr.f32.gmra.mrb[4].mxu0 %v14171_v24 }
  0xd8   :  { %9154 = vmatprep.mubr.f32.mxu0 %v14172_v25 }
  0xdb   :  { %9155 = vmatmul.mubr.f32.gmra.mrb[6].mxu0 %v14173_v52 }
  0xdc   :  { %9157 = vmatprep.mubr.f32.mxu0 %v14174_v35 }
  0xdf   :  { %9158 = vmatmul.mubr.f32.gmra.mrb[8].mxu0 %v14175_v37 }
  0xe0   :  { %9160 = vmatprep.mubr.f32.mxu0 %v14176_v47 }
  0xe3   :  { %9161 = vmatmul.mubr.f32.gmra.mrb[10].mxu0 %v14177_v51 }
  0xe4   :  { %9163 = vmatprep.mubr.f32.mxu0 %v14178_v48 }
  0xe7   :  { %9164 = vmatmul.mubr.f32.gmra.mrb[12].mxu0 %v14179_v3 }
  0xe8   :  { %9166 = vmatprep.mubr.f32.mxu0 %v14180_v49 }
  0xeb   :  { %9167 = vmatmul.mubr.f32.gmra.mrb[14].mxu0 %v14181_v61 }
  0xec   :  { %9169 = vmatprep.mubr.f32.mxu0 %v14182_v9 }
  0xef   :  { %9170 = vmatmul.mubr.f32.gmra.mrb[16].mxu0 %v14183_v8 }
  0xf0   :  { %9172 = vmatprep.mubr.f32.mxu0 %v14184_v59 }
  0xf3   :  { %9173 = vmatmul.mubr.f32.gmra.mrb[18].mxu0 %v14185_v32 }
  0xf4   :  { %9175 = vmatprep.mubr.f32.mxu0 %v14186_v28 }
  0xf7   :  { %9176 = vmatmul.mubr.f32.gmra.mrb[20].mxu0 %v14187_v10 }
  0xf8   :  { %9178 = vmatprep.mubr.f32.mxu0 %v14188_v55 }
  0xfb   :  { %9179 = vmatmul.mubr.f32.gmra.mrb[22].mxu0 %v14189_v50 }
  0xfc   :  { %9181 = vmatprep.mubr.f32.mxu0 %v14190_v18 }
  0xff   :  { %9182 = vmatmul.mubr.f32.gmra.mrb[24].mxu0 %v14191_v33 }
 0x100   :  { %9184 = vmatprep.mubr.f32.mxu0 %v14192_v34 }
 0x103   :  { %9185 = vmatmul.mubr.f32.gmra.mrb[26].mxu0 %v14193_v46 }
 0x104   :  { %9187 = vmatprep.mubr.f32.mxu0 %v14194_v60 }
 0x107   :  { %9188 = vmatmul.mubr.f32.gmra.mrb[28].mxu0 %v14195_v13 }
 0x108   :  { %9190 = vmatprep.mubr.f32.mxu0 %v14196_v56 }
 0x10b   :  { %9191 = vmatmul.mubr.f32.gmra.mrb[30].mxu0 %v14197_v5 }
 0x10c   :  { %9201 = vmatprep.mubr.f32.mxu0 %v11367_v15 }
 0x10f   :  { %9202 = vmatmul.mubr.f32.vlgmr.msra.gmra.mrb[0].mxu0 %v11369_v16 }
 0x110   :  { %10356 = vmatpush3.bf16.msra.mxu0 %v11365_v14  ;;  %9204 = vmatprep.mubr.f32.mxu0 %v11397_v27  ;;  %v14198_v14 = vld [vmem:[#allocation15_spill] sm:$0xff] }
 0x111   :  { %10358 = vmatprep.subr.bf16.mxu0 %v11383_v20 }
 0x113   :  { %9205 = vmatmul.mubr.f32.gmra.mrb[2].mxu0 %v11401_v29 }
 0x114   :  { %9207 = vmatprep.mubr.f32.mxu0 %v11420_v38  ;;  %10360 = vmatpush3.bf16.msra.mxu0 %v11383_v20  ;;  %v14199_v20 = vld [vmem:[#allocation16_spill] sm:$0xff] }
 0x117   :  { %9208 = vmatmul.mubr.f32.gmra.mrb[4].mxu0 %v11422_v39 }
 0x118   :  { %9210 = vmatprep.mubr.f32.mxu0 %v11463_v62 }
 0x11b   :  { %9211 = vmatmul.mubr.f32.gmra.mrb[6].mxu0 %v11473_v7 }
 0x11c   :  { %9213 = vmatprep.mubr.f32.mxu0 %v11481_v11 }
 0x11f   :  { %9214 = vmatmul.mubr.f32.gmra.mrb[8].mxu0 %v11491_v30 }
 0x120   :  { %9216 = vmatprep.mubr.f32.mxu0 %v11497_v36 }
 0x123   :  { %9217 = vmatmul.mubr.f32.gmra.mrb[10].mxu0 %v11507_v45 }
 0x124   :  { %9219 = vmatprep.mubr.f32.mxu0 %v11517_v53 }
 0x127   :  { %9220 = vmatmul.mubr.f32.gmra.mrb[12].mxu0 %v11541_v12 }
 0x128   :  { %9222 = vmatprep.mubr.f32.mxu0 %v11560_v54 }
 0x12b   :  { %9223 = vmatmul.mubr.f32.gmra.mrb[14].mxu0 %v11574_v42 }
 0x12c   :  { %9225 = vmatprep.mubr.f32.mxu0 %v11579_v40 }
 0x12f   :  { %9226 = vmatmul.mubr.f32.gmra.mrb[16].mxu0 %v11591_v58 }
 0x130   :  { %9228 = vmatprep.mubr.f32.mxu0 %v11621_v57 }
 0x133   :  { %9229 = vmatmul.mubr.f32.gmra.mrb[18].mxu0 %v14198_v14 }
 0x134   :  { %9231 = vmatprep.mubr.f32.mxu0 %v14199_v20 }
 0x137   :  { %9232 = vmatmul.mubr.f32.gmra.mrb[20].mxu0 %v14200_v63 }
 0x138   :  { %9234 = vmatprep.mubr.f32.mxu0 %v14201_v19 }
 0x13b   :  { %9235 = vmatmul.mubr.f32.gmra.mrb[22].mxu0 %v14202_v31 }
 0x13c   :  { %9237 = vmatprep.mubr.f32.mxu0 %v14203_v23 }
 0x13f   :  { %9238 = vmatmul.mubr.f32.gmra.mrb[24].mxu0 %v14204_v44 }
 0x140   :  { %9240 = vmatprep.mubr.f32.mxu0 %v14205_v22 }
 0x143   :  { %9241 = vmatmul.mubr.f32.gmra.mrb[26].mxu0 %v14206_v1 }
 0x144   :  { %9243 = vmatprep.mubr.f32.mxu0 %v14207_v0 }
 0x147   :  { %9244 = vmatmul.mubr.f32.gmra.mrb[28].mxu0 %v14208_v17 }
 0x148   :  { %9246 = vmatprep.mubr.f32.mxu0 %v14209_v21 }
 0x14b   :  { %9247 = vmatmul.mubr.f32.gmra.mrb[30].mxu0 %v14210_v26 }
 0x14c   :  { %9257 = vmatprep.mubr.f32.mxu0 %v11367_v15  ;;  %v2025_v15 = vld [vmem:[%s13795_s3] sm:$0xff] }
 0x14f   :  { %9258 = vmatmul.mubr.f32.vlgmr.msra.gmra.mrb[0].mxu0 %v11369_v16  ;;  %v2026_v16 = vld [vmem:[%s13795_s3 + $0x8] sm:$0xff] }
 0x150   :  { %9260 = vmatprep.mubr.f32.mxu0 %v11397_v27  ;;  %v3982_v27 = vld [vmem:[%s13796_s5] sm:$0xff] }
 0x153   :  { %9261 = vmatmul.mubr.f32.gmra.mrb[2].mxu0 %v11401_v29  ;;  %v2133_v29 = vand.u32 4294901760, %v2025_v15 }
 0x154   :  { %9263 = vmatprep.mubr.f32.mxu0 %v11420_v38  ;;  %v2136_v38 = vand.u32 4294901760, %v2026_v16 }
 0x155   :  { %v12061_v43 = vsub.f32 %v2025_v15, %v2133_v29 }
 0x156   :  { %v12063_v4 = vsub.f32 %v2026_v16, %v2136_v38 }
 0x157   :  { %9264 = vmatmul.mubr.f32.gmra.mrb[4].mxu0 %v11422_v39  ;;  %v3983_v39 = vld [vmem:[%s13796_s5 + $0x8] sm:$0xff]  ;;  %v13906_v41 = vand.u32 4294901760, %v12061_v43 }
 0x158   :  { %9266 = vmatprep.mubr.f32.mxu0 %v11463_v62  ;;  %v12033_v62 = vpack.c.bf16 %v2136_v38, %v2133_v29  ;;  %v13905_v6 = vand.u32 4294901760, %v12063_v4  ;;  %v12111_v56 = vpack.c.bf16 %v12063_v4, %v12061_v43 }
 0x159   :  { %v2525_v24 = vsub.f32 %v12061_v43, %v13906_v41 }
 0x15a   :  { %10362 = vmatprep.subr.bf16.mxu1 %v12033_v62  ;;  %v2532_v25 = vsub.f32 %v12063_v4, %v13905_v6 }
 0x15b   :  { %9267 = vmatmul.mubr.f32.gmra.mrb[6].mxu0 %v11473_v7  ;;  %10364 = vmatpush3.bf16.msra.mxu1 %v12033_v62  ;;  %v2526_v52 = vand.u32 4294901760, %v2525_v24 }
 0x15c   :  { %9269 = vmatprep.mubr.f32.mxu0 %v11481_v11  ;;  %v2027_v11 = vld [vmem:[%s13795_s3 + $0x10] sm:$0xff]  ;;  %v2533_v35 = vand.u32 4294901760, %v2532_v25 }
 0x15e   :  { %v12073_v37 = vpack.c.bf16 %v2533_v35, %v2526_v52 }
 0x15f   :  { %9270 = vmatmul.mubr.f32.gmra.mrb[8].mxu0 %v11491_v30  ;;  %v2028_v30 = vld [vmem:[%s13795_s3 + $0x18] sm:$0xff] }
 0x160   :  { %9272 = vmatprep.mubr.f32.mxu0 %v11497_v36  ;;  %v3984_v36 = vld [vmem:[%s13796_s5 + $0x10] sm:$0xff] }
 0x163   :  { %9273 = vmatmul.mubr.f32.gmra.mrb[10].mxu0 %v11507_v45  ;;  %v2142_v45 = vand.u32 4294901760, %v2028_v30 }
 0x164   :  { %9275 = vmatprep.mubr.f32.mxu0 %v11517_v53  ;;  %v3985_v53 = vld [vmem:[%s13796_s5 + $0x18] sm:$0xff] }
 0x165   :  { %v12078_v51 = vsub.f32 %v2028_v30, %v2142_v45 }
 0x167   :  { %9276 = vmatmul.mubr.f32.gmra.mrb[12].mxu0 %v11541_v12  ;;  %v4000_v12 = vand.u32 4294901760, %v3984_v36  ;;  %14212 = vst [vmem:[#allocation3_spill] sm:$0xff] %v12078_v51  ;;  %v13901_v3 = vand.u32 4294901760, %v12078_v51 }
 0x168   :  { %9278 = vmatprep.mubr.f32.mxu0 %v11560_v54 }
 0x169   :  { %v2546_v61 = vsub.f32 %v12078_v51, %v13901_v3  ;;  %v12102_v33 = vsub.f32 %v3984_v36, %v4000_v12 }
 0x16b   :  { %9279 = vmatmul.mubr.f32.gmra.mrb[14].mxu0 %v11574_v42  ;;  %v2139_v42 = vand.u32 4294901760, %v2027_v11  ;;  %v2547_v8 = vand.u32 4294901760, %v2546_v61 }
 0x16c   :  { %9281 = vmatprep.mubr.f32.mxu0 %v11579_v40  ;;  %v4003_v40 = vand.u32 4294901760, %v3985_v53 }
 0x16d   :  { %v12053_v54 = vpack.c.bf16 %v2142_v45, %v2139_v42  ;;  %v12076_v47 = vsub.f32 %v2027_v11, %v2139_v42 }
 0x16e   :  { %v12055_v2 = vpack.c.bf16 %v4003_v40, %v4000_v12  ;;  %v12104_v34 = vsub.f32 %v3985_v53, %v4003_v40 }
 0x16f   :  { %9282 = vmatmul.mubr.f32.gmra.mrb[16].mxu0 %v11591_v58  ;;  %v3997_v58 = vand.u32 4294901760, %v3983_v39  ;;  %10366 = vmatprep.subr.bf16.mxu1 %v12053_v54  ;;  %14211 = vst [vmem:[#allocation2_spill] sm:$0xff] %v12076_v47  ;;  %v13902_v48 = vand.u32 4294901760, %v12076_v47  ;;  %v12115_v5 = vpack.c.bf16 %v12078_v51, %v12076_v47 }
 0x170   :  { %9284 = vmatprep.mubr.f32.mxu0 %v11621_v57  ;;  %v3994_v57 = vand.u32 4294901760, %v3982_v27  ;;  %10368 = vmatpush3.bf16.msra.mxu1 %v12053_v54 }
 0x171   :  { %10370 = vmatprep.subr.bf16.mxu1 %v12073_v37  ;;  %v2539_v49 = vsub.f32 %v12076_v47, %v13902_v48  ;;  %v12092_v28 = vsub.f32 %v3983_v39, %v3997_v58 }
 0x172   :  { %v12035_v7 = vpack.c.bf16 %v3997_v58, %v3994_v57  ;;  %v12090_v32 = vsub.f32 %v3982_v27, %v3994_v57 }
 0x173   :  { %9285 = vmatmul.mubr.f32.gmra.mrb[18].mxu0 %v14198_v14  ;;  %v2540_v9 = vand.u32 4294901760, %v2539_v49  ;;  %14214 = vst [vmem:[#allocation5_spill] sm:$0xff] %v12092_v28  ;;  %v13903_v55 = vand.u32 4294901760, %v12092_v28  ;;  %v12120_v14 = vld [vmem:[%s13797_s2] ss:$0 sm:$0xff] }
 0x174   :  { %9287 = vmatprep.mubr.f32.mxu0 %v14199_v20  ;;  %10410 = vmatprep.subr.bf16.mxu0 %v12035_v7  ;;  %14213 = vst [vmem:[#allocation4_spill] sm:$0xff] %v12090_v32  ;;  %v13904_v10 = vand.u32 4294901760, %v12090_v32 }
 0x175   :  { %10412 = vmatpush3.bf16.msra.mxu0 %v12035_v7  ;;  %v12088_v59 = vpack.c.bf16 %v2547_v8, %v2540_v9  ;;  %v4393_v18 = vsub.f32 %v12092_v28, %v13903_v55 }
 0x176   :  { %10414 = vmatprep.subr.bf16.mxu0 %v12055_v2  ;;  %v4386_v50 = vsub.f32 %v12090_v32, %v13904_v10 }
 0x177   :  { %9288 = vmatmul.mubr.f32.gmra.mrb[20].mxu0 %v14200_v63  ;;  %v4394_v60 = vand.u32 4294901760, %v4393_v18  ;;  %v13900_v63 = vand.u32 4294901760, %v12102_v33 }
 0x178   :  { %9290 = vmatprep.mubr.f32.mxu0 %v14201_v19  ;;  %v4387_v46 = vand.u32 4294901760, %v4386_v50  ;;  %v13899_v19 = vand.u32 4294901760, %v12104_v34 }
 0x179   :  { %10416 = vmatpush3.bf16.msra.mxu0 %v12055_v2 }
 0x17a   :  { %v12106_v13 = vpack.c.bf16 %v4394_v60, %v4387_v46 }
 0x17b   :  { %9291 = vmatmul.mubr.f32.gmra.mrb[22].mxu0 %v14202_v31 }
 0x17c   :  { %9293 = vmatprep.mubr.f32.mxu0 %v14203_v23  ;;  %10418 = vmatprep.subr.bf16.mxu0 %v12106_v13 }
 0x17f   :  { %9294 = vmatmul.mubr.f32.gmra.mrb[24].mxu0 %v14204_v44 }
 0x180   :  { %9296 = vmatprep.mubr.f32.mxu0 %v14205_v22 }
 0x183   :  { %9297 = vmatmul.mubr.f32.gmra.mrb[26].mxu0 %v14206_v1 }
 0x184   :  { %9299 = vmatprep.mubr.f32.mxu0 %v14207_v0 }
 0x187   :  { %9300 = vmatmul.mubr.f32.gmra.mrb[28].mxu0 %v14208_v17  ;;  %v4400_v17 = vsub.f32 %v12102_v33, %v13900_v63 }
 0x188   :  { %9302 = vmatprep.mubr.f32.mxu0 %v14209_v21  ;;  %v4407_v21 = vsub.f32 %v12104_v34, %v13899_v19 }
 0x189   :  { %v4401_v36 = vand.u32 4294901760, %v4400_v17 }
 0x18a   :  { %v4408_v42 = vand.u32 4294901760, %v4407_v21  ;;  %v12178_v21 = vpack.c.bf16 %v12092_v28, %v12090_v32 }
 0x18b   :  { %9303 = vmatmul.mubr.f32.gmra.mrb[30].mxu0 %v14210_v26 }
 0x18c   :  { %v10421_v60 = vpack.c.bf16 %v4408_v42, %v4401_v36 }
 0x222   :  { %v9259_v20 = vpop.f32.mrb[0].mxu0 }
 0x223   :  { %v10505_v31 = vadd.f32 %v9259_v20, %v12120_v14  ;;  %v1803_v23 = vpop.f32.mrb[1].mxu0 }
 0x224   :  { %v10506_v44 = vadd.f32 %v12120_v14, %v1803_v23 }
 0x225   :  { %v1994_v22 = vmax.f32 %v10505_v31, 0.0 }
 0x226   :  { %v1993_v1 = vmax.f32 %v10506_v44, 0.0  ;;  %v9262_v0 = vpop.f32.mrb[2].mxu0 }
 0x227   :  { %v2040_v26 = vsel %vm78_vm0, %v1994_v22, 0  ;;  %v10507_v15 = vadd.f32 %v9262_v0, %v12120_v14  ;;  %v1815_v16 = vpop.f32.mrb[3].mxu0 }
 0x228   :  { %v12134_v27 = vand.u32 4294901760, %v2040_v26  ;;  %v2037_v29 = vsel %vm78_vm0, %v1993_v1, 0  ;;  %v10508_v38 = vadd.f32 %v12120_v14, %v1815_v16 }
 0x229   :  { %v12138_v39 = vand.u32 4294901760, %v2037_v29  ;;  %v1996_v57 = vmax.f32 %v10507_v15, 0.0 }
 0x22a   :  { %v12141_v58 = vsub.f32 %v2040_v26, %v12134_v27  ;;  %v1995_v11 = vmax.f32 %v10508_v38, 0.0  ;;  %v9265_v30 = vpop.f32.mrb[4].mxu0 }
 0x22b   :  { %v12144_v45 = vsub.f32 %v2037_v29, %v12138_v39  ;;  %v2046_v53 = vsel %vm78_vm0, %v1996_v57, 0  ;;  %v10509_v12 = vadd.f32 %v9265_v30, %v12120_v14  ;;  %v1827_v40 = vpop.f32.mrb[5].mxu0 }
 0x22c   :  { %v12148_v24 = vand.u32 4294901760, %v2046_v53  ;;  %v2043_v25 = vsel %vm78_vm0, %v1995_v11, 0  ;;  %v10510_v52 = vadd.f32 %v12120_v14, %v1827_v40  ;;  %v12153_v35 = vand.u32 4294901760, %v12141_v58 }
 0x22d   :  { %v12155_v49 = vand.u32 4294901760, %v2043_v25  ;;  %v1998_v61 = vmax.f32 %v10509_v12, 0.0  ;;  %v12158_v9 = vand.u32 4294901760, %v12144_v45 }
 0x22e   :  { %14215 = vst [vmem:[#allocation6_spill] sm:$0xff] %v12153_v35  ;;  %v12161_v8 = vsub.f32 %v2046_v53, %v12148_v24  ;;  %v1997_v50 = vmax.f32 %v10510_v52, 0.0  ;;  %v9268_v18 = vpop.f32.mrb[6].mxu0  ;;  %v2214_v46 = vsub.f32 %v12141_v58, %v12153_v35 }
 0x22f   :  { %14216 = vst [vmem:[#allocation7_spill] sm:$0xff] %v12158_v9  ;;  %v12166_v20 = vsub.f32 %v2043_v25, %v12155_v49  ;;  %v2052_v31 = vsel %vm78_vm0, %v1998_v61, 0  ;;  %v10511_v23 = vadd.f32 %v9268_v18, %v12120_v14  ;;  %v1839_v44 = vpop.f32.mrb[7].mxu0  ;;  %v2204_v22 = vsub.f32 %v12144_v45, %v12158_v9 }
 0x230   :  { %v12172_v1 = vand.u32 4294901760, %v2052_v31  ;;  %v2049_v0 = vsel %vm78_vm0, %v1997_v50, 0  ;;  %v10512_v17 = vadd.f32 %v12120_v14, %v1839_v44  ;;  %v12190_v30 = vand.u32 4294901760, %v2214_v46 }
 0x231   :  { %14217 = vst [vmem:[#allocation8_spill] sm:$0xff] %v12166_v20  ;;  %v12180_v26 = vand.u32 4294901760, %v2049_v0  ;;  %v2000_v15 = vmax.f32 %v10511_v23, 0.0  ;;  %v12182_v16 = vand.u32 4294901760, %v2204_v22  ;;  %v12185_v29 = vand.u32 4294901760, %v12166_v20 }
 0x232   :  { %v12188_v38 = vsub.f32 %v2052_v31, %v12172_v1  ;;  %v1999_v57 = vmax.f32 %v10512_v17, 0.0  ;;  %v9271_v11 = vpop.f32.mrb[8].mxu0  ;;  %14221 = vst [vmem:[#allocation12_spill] sm:$0xff] %v12190_v30  ;;  %v12193_v36 = vand.u32 4294901760, %v12161_v8 }
 0x233   :  { %14218 = vst [vmem:[#allocation9_spill] sm:$0xff] %v12182_v16  ;;  %14219 = vst [vmem:[#allocation10_spill] sm:$0xff] %v12185_v29  ;;  %v12196_v42 = vsub.f32 %v2049_v0, %v12180_v26  ;;  %v2058_v53 = vsel %vm78_vm0, %v2000_v15, 0  ;;  %v10513_v12 = vadd.f32 %v9271_v11, %v12120_v14  ;;  %v1851_v40 = vpop.f32.mrb[9].mxu0  ;;  %9313 = vmatprep.mubr.f32.mxu1 %v12182_v16  ;;  %9649 = vmatprep.mubr.f32.mxu0 %v12182_v16 }
 0x234   :  { %14220 = vst [vmem:[#allocation11_spill] sm:$0xff] %v12188_v38  ;;  %14222 = vst [vmem:[#allocation13_spill] sm:$0xff] %v12193_v36  ;;  %v2224_v25 = vsub.f32 %v12166_v20, %v12185_v29  ;;  %v12204_v52 = vand.u32 4294901760, %v2058_v53  ;;  %v2055_v61 = vsel %vm78_vm0, %v1999_v57, 0  ;;  %v10514_v50 = vadd.f32 %v12120_v14, %v1851_v40  ;;  %9314 = vmatmul.mubr.f32.vlgmr.msra.gmra.mrb[0].mxu1 %v12190_v30 }
 0x235   :  { %9650 = vmatmul.mubr.f32.vlgmr.msra.gmra.mrb[32].mxu0 %v12190_v30  ;;  %v2234_v18 = vsub.f32 %v12161_v8, %v12193_v36  ;;  %v12212_v46 = vand.u32 4294901760, %v2055_v61  ;;  %v2002_v31 = vmax.f32 %v10513_v12, 0.0  ;;  %10372 = vmatpush3.bf16.msra.mxu1 %v12073_v37  ;;  %v12218_v44 = vand.u32 4294901760, %v12196_v42 }
 0x236   :  { %v12215_v23 = vand.u32 4294901760, %v2224_v25  ;;  %10420 = vmatpush3.bf16.msra.mxu0 %v12106_v13  ;;  %v12222_v22 = vsub.f32 %v2058_v53, %v12204_v52  ;;  %v2001_v0 = vmax.f32 %v10514_v50, 0.0  ;;  %v9274_v17 = vpop.f32.mrb[10].mxu0  ;;  %v12227_v57 = vand.u32 4294901760, %v12188_v38  ;;  %10374 = vmatprep.subr.bf16.mxu1 %v12088_v59 }
 0x237   :  { %14224 = vst [vmem:[#allocation17_spill] sm:$0xff] %v12218_v44  ;;  %v12224_v15 = vand.u32 4294901760, %v2234_v18  ;;  %10422 = vmatprep.subr.bf16.mxu0 %v10421_v60  ;;  %v12231_v37 = vsub.f32 %v2055_v61, %v12212_v46  ;;  %v2064_v11 = vsel %vm78_vm0, %v2002_v31, 0  ;;  %v10515_v13 = vadd.f32 %v9274_v17, %v12120_v14  ;;  %v1863_v12 = vpop.f32.mrb[11].mxu0 }
 0x238   :  { %14223 = vst [vmem:[#allocation14_spill] sm:$0xff] %v12215_v23  ;;  %14225 = vst [vmem:[#allocation18_spill] sm:$0xff] %v12222_v22  ;;  %9316 = vmatprep.mubr.f32.mxu1 %v12215_v23  ;;  %9652 = vmatprep.mubr.f32.mxu0 %v12215_v23  ;;  %v2244_v53 = vsub.f32 %v12196_v42, %v12218_v44  ;;  %v12239_v40 = vand.u32 4294901760, %v2064_v11  ;;  %v2061_v25 = vsel %vm78_vm0, %v2001_v0, 0  ;;  %v12261_v48 = vand.u32 4294901760, %v12222_v22 }
 0x239   :  { %14226 = vst [vmem:[#allocation21_spill] sm:$0xff] %v12224_v15  ;;  %14227 = vst [vmem:[#allocation23_spill] sm:$0xff] %v12227_v57  ;;  %v10516_v50 = vadd.f32 %v12120_v14, %v1863_v12  ;;  %9317 = vmatmul.mubr.f32.gmra.mrb[2].mxu1 %v12224_v15  ;;  %9653 = vmatmul.mubr.f32.gmra.mrb[34].mxu0 %v12224_v15  ;;  %v2254_v61 = vsub.f32 %v12188_v38, %v12227_v57  ;;  %v12247_v18 = vand.u32 4294901760, %v2061_v25 }
 0x23a   :  { %14228 = vst [vmem:[#allocation25_spill] sm:$0xff] %v12231_v37  ;;  %v2004_v31 = vmax.f32 %v10515_v13, 0.0  ;;  %v12249_v17 = vand.u32 4294901760, %v2244_v53  ;;  %v12252_v19 = vand.u32 4294901760, %v12231_v37  ;;  %10376 = vmatpush3.bf16.msra.mxu1 %v12088_v59  ;;  %10424 = vmatpush3.bf16.msra.mxu0 %v10421_v60  ;;  %v12256_v0 = vsub.f32 %v2064_v11, %v12239_v40  ;;  %v9277_v63 = vpop.f32.mrb[12].mxu0  ;;  %14233 = vst [vmem:[#allocation16_spill] sm:$0xff] %v12261_v48 }
 0x23b   :  { %v2003_v12 = vmax.f32 %v10516_v50, 0.0  ;;  %v12258_v3 = vand.u32 4294901760, %v2254_v61  ;;  %10378 = vmatprep.subr.bf16.mxu1 %v12111_v56  ;;  %10426 = vmatprep.subr.bf16.mxu0 %v12178_v21  ;;  %v12266_v13 = vsub.f32 %v2061_v25, %v12247_v18  ;;  %v10517_v60 = vadd.f32 %v9277_v63, %v12120_v14  ;;  %v1875_v11 = vpop.f32.mrb[13].mxu0 }
 0x23c   :  { %14229 = vst [vmem:[#allocation27_spill] sm:$0xff] %v12249_v17  ;;  %14230 = vst [vmem:[#allocation29_spill] sm:$0xff] %v12252_v19  ;;  %v2070_v59 = vsel %vm78_vm0, %v2004_v31, 0  ;;  %9319 = vmatprep.mubr.f32.mxu1 %v12249_v17  ;;  %9655 = vmatprep.mubr.f32.mxu0 %v12249_v17  ;;  %v2264_v53 = vsub.f32 %v12231_v37, %v12252_v19  ;;  %v10518_v55 = vadd.f32 %v12120_v14, %v1875_v11 }
 0x23d   :  { %14231 = vst [vmem:[#allocation32_spill] sm:$0xff] %v12256_v0  ;;  %14232 = vst [vmem:[#allocation15_spill] sm:$0xff] %v12258_v3  ;;  %v12274_v50 = vand.u32 4294901760, %v2070_v59  ;;  %v2067_v61 = vsel %vm78_vm0, %v2003_v12, 0  ;;  %9320 = vmatmul.mubr.f32.gmra.mrb[4].mxu1 %v12258_v3  ;;  %9656 = vmatmul.mubr.f32.gmra.mrb[36].mxu0 %v12258_v3  ;;  %v2274_v63 = vsub.f32 %v12222_v22, %v12261_v48  ;;  %v2006_v31 = vmax.f32 %v10517_v60, 0.0 }
 0x23e   :  { %14234 = vst [vmem:[#allocation19_spill] sm:$0xff] %v12266_v13  ;;  %v12282_v25 = vand.u32 4294901760, %v2067_v61  ;;  %v12284_v10 = vand.u32 4294901760, %v2264_v53  ;;  %v12287_v6 = vand.u32 4294901760, %v12266_v13  ;;  %v2005_v12 = vmax.f32 %v10518_v55, 0.0  ;;  %v9280_v11 = vpop.f32.mrb[14].mxu0 }
 0x23f   :  { %v12290_v41 = vsub.f32 %v2070_v59, %v12274_v50  ;;  %v12292_v17 = vand.u32 4294901760, %v2274_v63  ;;  %v12295_v3 = vand.u32 4294901760, %v12256_v0  ;;  %v2076_v60 = vsel %vm78_vm0, %v2006_v31, 0  ;;  %v1887_v23 = vpop.f32.mrb[15].mxu0 }
 0x240   :  { %14235 = vst [vmem:[#allocation20_spill] sm:$0xff] %v12284_v10  ;;  %14236 = vst [vmem:[#allocation22_spill] sm:$0xff] %v12287_v6  ;;  %v12298_v15 = vsub.f32 %v2067_v61, %v12282_v25  ;;  %v10519_v53 = vadd.f32 %v9280_v11, %v12120_v14  ;;  %9322 = vmatprep.mubr.f32.mxu1 %v12284_v10  ;;  %9658 = vmatprep.mubr.f32.mxu0 %v12284_v10  ;;  %v12306_v59 = vand.u32 4294901760, %v2076_v60 }
 0x241   :  { %14237 = vst [vmem:[#allocation24_spill] sm:$0xff] %v12290_v41  ;;  %14238 = vst [vmem:[#allocation26_spill] sm:$0xff] %v12292_v17  ;;  %v2284_v55 = vsub.f32 %v12266_v13, %v12287_v6  ;;  %v2073_v63 = vsel %vm78_vm0, %v2005_v12, 0  ;;  %v10520_v30 = vadd.f32 %v12120_v14, %v1887_v23  ;;  %9323 = vmatmul.mubr.f32.gmra.mrb[6].mxu1 %v12292_v17  ;;  %9659 = vmatmul.mubr.f32.gmra.mrb[38].mxu0 %v12292_v17 }
 0x242   :  { %14239 = vst [vmem:[#allocation28_spill] sm:$0xff] %v12295_v3  ;;  %14240 = vst [vmem:[#allocation30_spill] sm:$0xff] %v12298_v15  ;;  %v2294_v61 = vsub.f32 %v12256_v0, %v12295_v3  ;;  %v12314_v31 = vand.u32 4294901760, %v2073_v63  ;;  %v2008_v11 = vmax.f32 %v10519_v53, 0.0  ;;  %v12319_v16 = vand.u32 4294901760, %v12298_v15  ;;  %v9283_v23 = vpop.f32.mrb[16].mxu0 }
 0x243   :  { %v12316_v10 = vand.u32 4294901760, %v2284_v55  ;;  %v12322_v6 = vsub.f32 %v2076_v60, %v12306_v59  ;;  %v2007_v12 = vmax.f32 %v10520_v30, 0.0  ;;  %v12327_v17 = vand.u32 4294901760, %v12290_v41  ;;  %v1899_v19 = vpop.f32.mrb[17].mxu0 }
 0x244   :  { %14242 = vst [vmem:[#allocation33_spill] sm:$0xff] %v12319_v16  ;;  %v12324_v48 = vand.u32 4294901760, %v2294_v61  ;;  %v12330_v3 = vsub.f32 %v2073_v63, %v12314_v31  ;;  %v2082_v53 = vsel %vm78_vm0, %v2008_v11, 0  ;;  %v10521_v55 = vadd.f32 %v9283_v23, %v12120_v14 }
 0x245   :  { %14241 = vst [vmem:[#allocation31_spill] sm:$0xff] %v12316_v10  ;;  %14243 = vst [vmem:[#allocation34_spill] sm:$0xff] %v12322_v6  ;;  %9325 = vmatprep.mubr.f32.mxu1 %v12316_v10  ;;  %9661 = vmatprep.mubr.f32.mxu0 %v12316_v10  ;;  %v2304_v30 = vsub.f32 %v12298_v15, %v12319_v16  ;;  %v12338_v60 = vand.u32 4294901760, %v2082_v53  ;;  %v2079_v61 = vsel %vm78_vm0, %v2007_v12, 0 }
 0x246   :  { %14244 = vst [vmem:[#allocation35_spill] sm:$0xff] %v12324_v48  ;;  %14245 = vst [vmem:[#allocation36_spill] sm:$0xff] %v12327_v17  ;;  %v10522_v57 = vadd.f32 %v12120_v14, %v1899_v19  ;;  %9326 = vmatmul.mubr.f32.gmra.mrb[8].mxu1 %v12324_v48  ;;  %9662 = vmatmul.mubr.f32.gmra.mrb[40].mxu0 %v12324_v48  ;;  %v2314_v63 = vsub.f32 %v12290_v41, %v12327_v17  ;;  %v12346_v11 = vand.u32 4294901760, %v2079_v61  ;;  %v9286_v19 = vpop.f32.mrb[18].mxu0 }
 0x247   :  { %14246 = vst [vmem:[#allocation37_spill] sm:$0xff] %v12330_v3  ;;  %v2010_v23 = vmax.f32 %v10521_v55, 0.0  ;;  %v12348_v10 = vand.u32 4294901760, %v2304_v30  ;;  %v12351_v16 = vand.u32 4294901760, %v12330_v3  ;;  %v12354_v44 = vsub.f32 %v2082_v53, %v12338_v60  ;;  %v1911_v29 = vpop.f32.mrb[19].mxu0 }
 0x248   :  { %v2009_v12 = vmax.f32 %v10522_v57, 0.0  ;;  %v12356_v36 = vand.u32 4294901760, %v2314_v63  ;;  %v12359_v48 = vand.u32 4294901760, %v12322_v6  ;;  %v12362_v17 = vsub.f32 %v2079_v61, %v12346_v11 }
 0x249   :  { %14247 = vst [vmem:[#allocation38_spill] sm:$0xff] %v12348_v10  ;;  %14248 = vst [vmem:[#allocation39_spill] sm:$0xff] %v12351_v16  ;;  %v2088_v55 = vsel %vm78_vm0, %v2010_v23, 0  ;;  %v10523_v30 = vadd.f32 %v9286_v19, %v12120_v14  ;;  %9328 = vmatprep.mubr.f32.mxu1 %v12348_v10  ;;  %9664 = vmatprep.mubr.f32.mxu0 %v12348_v10  ;;  %v2324_v57 = vsub.f32 %v12330_v3, %v12351_v16 }
 0x24a   :  { %14249 = vst [vmem:[#allocation40_spill] sm:$0xff] %v12354_v44  ;;  %14250 = vst [vmem:[#allocation41_spill] sm:$0xff] %v12356_v36  ;;  %v12370_v53 = vand.u32 4294901760, %v2088_v55  ;;  %v2085_v63 = vsel %vm78_vm0, %v2009_v12, 0  ;;  %v10524_v35 = vadd.f32 %v12120_v14, %v1911_v29  ;;  %9329 = vmatmul.mubr.f32.gmra.mrb[10].mxu1 %v12356_v36  ;;  %9665 = vmatmul.mubr.f32.gmra.mrb[42].mxu0 %v12356_v36  ;;  %v12383_v16 = vand.u32 4294901760, %v12362_v17  ;;  %v9289_v29 = vpop.f32.mrb[20].mxu0 }
 0x24b   :  { %14251 = vst [vmem:[#allocation42_spill] sm:$0xff] %v12359_v48  ;;  %14252 = vst [vmem:[#allocation43_spill] sm:$0xff] %v12362_v17  ;;  %v2334_v61 = vsub.f32 %v12322_v6, %v12359_v48  ;;  %v12378_v23 = vand.u32 4294901760, %v2085_v63  ;;  %v2012_v19 = vmax.f32 %v10523_v30, 0.0  ;;  %v12380_v10 = vand.u32 4294901760, %v2324_v57  ;;  %v1923_v9 = vpop.f32.mrb[21].mxu0 }
 0x24c   :  { %14254 = vst [vmem:[#allocation45_spill] sm:$0xff] %v12383_v16  ;;  %v12386_v51 = vsub.f32 %v2088_v55, %v12370_v53  ;;  %v2011_v12 = vmax.f32 %v10524_v35, 0.0  ;;  %v12391_v36 = vand.u32 4294901760, %v12354_v44  ;;  %v10525_v57 = vadd.f32 %v9289_v29, %v12120_v14 }
 0x24d   :  { %14253 = vst [vmem:[#allocation44_spill] sm:$0xff] %v12380_v10  ;;  %v12388_v47 = vand.u32 4294901760, %v2334_v61  ;;  %v12394_v48 = vsub.f32 %v2085_v63, %v12378_v23  ;;  %v2094_v30 = vsel %vm78_vm0, %v2012_v19, 0  ;;  %9331 = vmatprep.mubr.f32.mxu1 %v12380_v10  ;;  %9667 = vmatprep.mubr.f32.mxu0 %v12380_v10  ;;  %v2344_v35 = vsub.f32 %v12362_v17, %v12383_v16 }
 0x24e   :  { %14255 = vst [vmem:[#allocation46_spill] sm:$0xff] %v12386_v51  ;;  %14257 = vst [vmem:[#allocation48_spill] sm:$0xff] %v12391_v36  ;;  %v12402_v55 = vand.u32 4294901760, %v2094_v30  ;;  %v2091_v61 = vsel %vm78_vm0, %v2011_v12, 0  ;;  %v10526_v6 = vadd.f32 %v12120_v14, %v1923_v9  ;;  %v2354_v63 = vsub.f32 %v12354_v44, %v12391_v36  ;;  %v9292_v9 = vpop.f32.mrb[22].mxu0 }
 0x24f   :  { %14256 = vst [vmem:[#allocation47_spill] sm:$0xff] %v12388_v47  ;;  %14258 = vst [vmem:[#allocation49_spill] sm:$0xff] %v12394_v48  ;;  %9332 = vmatmul.mubr.f32.gmra.mrb[12].mxu1 %v12388_v47  ;;  %9668 = vmatmul.mubr.f32.gmra.mrb[44].mxu0 %v12388_v47  ;;  %v12410_v19 = vand.u32 4294901760, %v2091_v61  ;;  %v2014_v29 = vmax.f32 %v10525_v57, 0.0  ;;  %v12412_v10 = vand.u32 4294901760, %v2344_v35  ;;  %v12415_v16 = vand.u32 4294901760, %v12394_v48 }
 0x250   :  { %v12418_v17 = vsub.f32 %v2094_v30, %v12402_v55  ;;  %v2013_v12 = vmax.f32 %v10526_v6, 0.0  ;;  %v12420_v3 = vand.u32 4294901760, %v2354_v63  ;;  %v12423_v47 = vand.u32 4294901760, %v12386_v51  ;;  %v1935_v44 = vpop.f32.mrb[23].mxu0 }
 0x251   :  { %14259 = vst [vmem:[#allocation50_spill] sm:$0xff] %v12412_v10  ;;  %14260 = vst [vmem:[#allocation51_spill] sm:$0xff] %v12415_v16  ;;  %v12426_v36 = vsub.f32 %v2091_v61, %v12410_v19  ;;  %v2100_v57 = vsel %vm78_vm0, %v2014_v29, 0  ;;  %v10527_v35 = vadd.f32 %v9292_v9, %v12120_v14  ;;  %9334 = vmatprep.mubr.f32.mxu1 %v12412_v10  ;;  %9670 = vmatprep.mubr.f32.mxu0 %v12412_v10 }
 0x252   :  { %14261 = vst [vmem:[#allocation52_spill] sm:$0xff] %v12418_v17  ;;  %14262 = vst [vmem:[#allocation53_spill] sm:$0xff] %v12420_v3  ;;  %v2364_v6 = vsub.f32 %v12394_v48, %v12415_v16  ;;  %v12434_v30 = vand.u32 4294901760, %v2100_v57  ;;  %v2097_v63 = vsel %vm78_vm0, %v2013_v12, 0  ;;  %v10528_v41 = vadd.f32 %v12120_v14, %v1935_v44  ;;  %v9295_v44 = vpop.f32.mrb[24].mxu0 }
 0x253   :  { %14263 = vst [vmem:[#allocation54_spill] sm:$0xff] %v12423_v47  ;;  %14264 = vst [vmem:[#allocation55_spill] sm:$0xff] %v12426_v36  ;;  %9335 = vmatmul.mubr.f32.gmra.mrb[14].mxu1 %v12420_v3  ;;  %9671 = vmatmul.mubr.f32.gmra.mrb[46].mxu0 %v12420_v3  ;;  %v2374_v61 = vsub.f32 %v12386_v51, %v12423_v47  ;;  %v12442_v29 = vand.u32 4294901760, %v2097_v63  ;;  %v2016_v9 = vmax.f32 %v10527_v35, 0.0  ;;  %v12447_v16 = vand.u32 4294901760, %v12426_v36  ;;  %v1947_v51 = vpop.f32.mrb[25].mxu0 }
 0x254   :  { %v12444_v10 = vand.u32 4294901760, %v2364_v6  ;;  %v12450_v48 = vsub.f32 %v2100_v57, %v12434_v30  ;;  %v2015_v12 = vmax.f32 %v10528_v41, 0.0  ;;  %v12455_v3 = vand.u32 4294901760, %v12418_v17 }
 0x255   :  { %14266 = vst [vmem:[#allocation57_spill] sm:$0xff] %v12447_v16  ;;  %v12452_v15 = vand.u32 4294901760, %v2374_v61  ;;  %v12458_v47 = vsub.f32 %v2097_v63, %v12442_v29  ;;  %v2106_v35 = vsel %vm78_vm0, %v2016_v9, 0  ;;  %v10529_v6 = vadd.f32 %v9295_v44, %v12120_v14 }
 0x256   :  { %14265 = vst [vmem:[#allocation56_spill] sm:$0xff] %v12444_v10  ;;  %14267 = vst [vmem:[#allocation58_spill] sm:$0xff] %v12450_v48  ;;  %9337 = vmatprep.mubr.f32.mxu1 %v12444_v10  ;;  %9673 = vmatprep.mubr.f32.mxu0 %v12444_v10  ;;  %v2384_v41 = vsub.f32 %v12426_v36, %v12447_v16  ;;  %v12466_v57 = vand.u32 4294901760, %v2106_v35  ;;  %v2103_v61 = vsel %vm78_vm0, %v2015_v12, 0 }
 0x257   :  { %14268 = vst [vmem:[#allocation59_spill] sm:$0xff] %v12452_v15  ;;  %14269 = vst [vmem:[#allocation60_spill] sm:$0xff] %v12455_v3  ;;  %v10530_v0 = vadd.f32 %v12120_v14, %v1947_v51  ;;  %9338 = vmatmul.mubr.f32.gmra.mrb[16].mxu1 %v12452_v15  ;;  %9674 = vmatmul.mubr.f32.gmra.mrb[48].mxu0 %v12452_v15  ;;  %v2394_v63 = vsub.f32 %v12418_v17, %v12455_v3  ;;  %v12474_v9 = vand.u32 4294901760, %v2103_v61  ;;  %v9298_v51 = vpop.f32.mrb[26].mxu0 }
 0x258   :  { %14270 = vst [vmem:[#allocation61_spill] sm:$0xff] %v12458_v47  ;;  %v2018_v44 = vmax.f32 %v10529_v6, 0.0  ;;  %v12476_v10 = vand.u32 4294901760, %v2384_v41  ;;  %v12479_v16 = vand.u32 4294901760, %v12458_v47  ;;  %v12482_v36 = vsub.f32 %v2106_v35, %v12466_v57  ;;  %v1959_v17 = vpop.f32.mrb[27].mxu0 }
 0x259   :  { %v2017_v12 = vmax.f32 %v10530_v0, 0.0  ;;  %v12484_v13 = vand.u32 4294901760, %v2394_v63  ;;  %v12487_v15 = vand.u32 4294901760, %v12450_v48  ;;  %v12490_v3 = vsub.f32 %v2103_v61, %v12474_v9 }
 0x25a   :  { %14271 = vst [vmem:[#allocation62_spill] sm:$0xff] %v12476_v10  ;;  %14272 = vst [vmem:[#allocation63_spill] sm:$0xff] %v12479_v16  ;;  %v2112_v6 = vsel %vm78_vm0, %v2018_v44, 0  ;;  %v10531_v41 = vadd.f32 %v9298_v51, %v12120_v14  ;;  %9340 = vmatprep.mubr.f32.mxu1 %v12476_v10  ;;  %9676 = vmatprep.mubr.f32.mxu0 %v12476_v10  ;;  %v2404_v0 = vsub.f32 %v12458_v47, %v12479_v16 }
 0x25b   :  { %14273 = vst [vmem:[#allocation64_spill] sm:$0xff] %v12482_v36  ;;  %14274 = vst [vmem:[#allocation65_spill] sm:$0xff] %v12484_v13  ;;  %v12498_v35 = vand.u32 4294901760, %v2112_v6  ;;  %v2109_v63 = vsel %vm78_vm0, %v2017_v12, 0  ;;  %v10532_v22 = vadd.f32 %v12120_v14, %v1959_v17  ;;  %9341 = vmatmul.mubr.f32.gmra.mrb[18].mxu1 %v12484_v13  ;;  %9677 = vmatmul.mubr.f32.gmra.mrb[50].mxu0 %v12484_v13  ;;  %v12511_v16 = vand.u32 4294901760, %v12490_v3  ;;  %v9301_v17 = vpop.f32.mrb[28].mxu0 }
 0x25c   :  { %14275 = vst [vmem:[#allocation66_spill] sm:$0xff] %v12487_v15  ;;  %14276 = vst [vmem:[#allocation67_spill] sm:$0xff] %v12490_v3  ;;  %v2414_v61 = vsub.f32 %v12450_v48, %v12487_v15  ;;  %v12506_v44 = vand.u32 4294901760, %v2109_v63  ;;  %v2020_v51 = vmax.f32 %v10531_v41, 0.0  ;;  %v12508_v10 = vand.u32 4294901760, %v2404_v0  ;;  %v1971_v48 = vpop.f32.mrb[29].mxu0 }
 0x25d   :  { %14278 = vst [vmem:[#allocation69_spill] sm:$0xff] %v12511_v16  ;;  %v12514_v47 = vsub.f32 %v2112_v6, %v12498_v35  ;;  %v2019_v12 = vmax.f32 %v10532_v22, 0.0  ;;  %v12519_v13 = vand.u32 4294901760, %v12482_v36  ;;  %v10533_v0 = vadd.f32 %v9301_v17, %v12120_v14 }
 0x25e   :  { %14277 = vst [vmem:[#allocation68_spill] sm:$0xff] %v12508_v10  ;;  %v12516_v37 = vand.u32 4294901760, %v2414_v61  ;;  %v12522_v15 = vsub.f32 %v2109_v63, %v12506_v44  ;;  %v2118_v41 = vsel %vm78_vm0, %v2020_v51, 0  ;;  %9343 = vmatprep.mubr.f32.mxu1 %v12508_v10  ;;  %9679 = vmatprep.mubr.f32.mxu0 %v12508_v10  ;;  %v2424_v22 = vsub.f32 %v12490_v3, %v12511_v16 }
 0x25f   :  { %14279 = vst [vmem:[#allocation70_spill] sm:$0xff] %v12514_v47  ;;  %14281 = vst [vmem:[#allocation72_spill] sm:$0xff] %v12519_v13  ;;  %v12530_v6 = vand.u32 4294901760, %v2118_v41  ;;  %v2115_v61 = vsel %vm78_vm0, %v2019_v12, 0  ;;  %v10534_v38 = vadd.f32 %v12120_v14, %v1971_v48  ;;  %v2434_v63 = vsub.f32 %v12482_v36, %v12519_v13  ;;  %v9304_v48 = vpop.f32.mrb[30].mxu0 }
 0x260   :  { %14280 = vst [vmem:[#allocation71_spill] sm:$0xff] %v12516_v37  ;;  %14282 = vst [vmem:[#allocation73_spill] sm:$0xff] %v12522_v15  ;;  %9344 = vmatmul.mubr.f32.gmra.mrb[20].mxu1 %v12516_v37  ;;  %9680 = vmatmul.mubr.f32.gmra.mrb[52].mxu0 %v12516_v37  ;;  %v12538_v51 = vand.u32 4294901760, %v2115_v61  ;;  %v2022_v17 = vmax.f32 %v10533_v0, 0.0  ;;  %v12540_v10 = vand.u32 4294901760, %v2424_v22  ;;  %v12543_v16 = vand.u32 4294901760, %v12522_v15 }
 0x261   :  { %v12546_v3 = vsub.f32 %v2118_v41, %v12530_v6  ;;  %v2021_v12 = vmax.f32 %v10534_v38, 0.0  ;;  %v12548_v28 = vand.u32 4294901760, %v2434_v63  ;;  %v12551_v37 = vand.u32 4294901760, %v12514_v47  ;;  %v1983_v36 = vpop.f32.mrb[31].mxu0 }
 0x262   :  { %14283 = vst [vmem:[#allocation74_spill] sm:$0xff] %v12540_v10  ;;  %14284 = vst [vmem:[#allocation75_spill] sm:$0xff] %v12543_v16  ;;  %v12554_v13 = vsub.f32 %v2115_v61, %v12538_v51  ;;  %v2124_v0 = vsel %vm78_vm0, %v2022_v17, 0  ;;  %v10535_v22 = vadd.f32 %v9304_v48, %v12120_v14  ;;  %9346 = vmatprep.mubr.f32.mxu1 %v12540_v10  ;;  %9682 = vmatprep.mubr.f32.mxu0 %v12540_v10 }
 0x263   :  { %14285 = vst [vmem:[#allocation76_spill] sm:$0xff] %v12546_v3  ;;  %14286 = vst [vmem:[#allocation77_spill] sm:$0xff] %v12548_v28  ;;  %v2444_v38 = vsub.f32 %v12522_v15, %v12543_v16  ;;  %v12562_v41 = vand.u32 4294901760, %v2124_v0  ;;  %v2121_v63 = vsel %vm78_vm0, %v2021_v12, 0  ;;  %v10536_v32 = vadd.f32 %v12120_v14, %v1983_v36 }
 0x264   :  { %14287 = vst [vmem:[#allocation78_spill] sm:$0xff] %v12551_v37  ;;  %14288 = vst [vmem:[#allocation79_spill] sm:$0xff] %v12554_v13  ;;  %9347 = vmatmul.mubr.f32.gmra.mrb[22].mxu1 %v12548_v28  ;;  %9683 = vmatmul.mubr.f32.gmra.mrb[54].mxu0 %v12548_v28  ;;  %v2454_v61 = vsub.f32 %v12514_v47, %v12551_v37  ;;  %v12570_v17 = vand.u32 4294901760, %v2121_v63  ;;  %v2024_v48 = vmax.f32 %v10535_v22, 0.0  ;;  %v12575_v16 = vand.u32 4294901760, %v12554_v13 }
 0x265   :  { %v12572_v10 = vand.u32 4294901760, %v2444_v38  ;;  %v12578_v15 = vsub.f32 %v2124_v0, %v12562_v41  ;;  %v2023_v12 = vmax.f32 %v10536_v32, 0.0  ;;  %v12583_v36 = vand.u32 4294901760, %v12546_v3 }
 0x266   :  { %14290 = vst [vmem:[#allocation81_spill] sm:$0xff] %v12575_v16  ;;  %v12580_v14 = vand.u32 4294901760, %v2454_v61  ;;  %v12586_v28 = vsub.f32 %v2121_v63, %v12570_v17  ;;  %v2130_v37 = vsel %vm78_vm0, %v2024_v48, 0  ;;  %v2464_v22 = vsub.f32 %v12554_v13, %v12575_v16 }
 0x267   :  { %14289 = vst [vmem:[#allocation80_spill] sm:$0xff] %v12572_v10  ;;  %14291 = vst [vmem:[#allocation82_spill] sm:$0xff] %v12578_v15  ;;  %9349 = vmatprep.mubr.f32.mxu1 %v12572_v10  ;;  %9685 = vmatprep.mubr.f32.mxu0 %v12572_v10  ;;  %v12593_v0 = vand.u32 4294901760, %v2130_v37  ;;  %v2127_v32 = vsel %vm78_vm0, %v2023_v12, 0  ;;  %v2474_v38 = vsub.f32 %v12546_v3, %v12583_v36  ;;  %v12601_v63 = vand.u32 4294901760, %v12578_v15 }
 0x268   :  { %14292 = vst [vmem:[#allocation83_spill] sm:$0xff] %v12580_v14  ;;  %14293 = vst [vmem:[#allocation84_spill] sm:$0xff] %v12583_v36  ;;  %9350 = vmatmul.mubr.f32.gmra.mrb[24].mxu1 %v12580_v14  ;;  %9686 = vmatmul.mubr.f32.gmra.mrb[56].mxu0 %v12580_v14  ;;  %v12603_v61 = vand.u32 4294901760, %v2127_v32  ;;  %v12605_v48 = vand.u32 4294901760, %v2464_v22  ;;  %v12608_v10 = vand.u32 4294901760, %v12586_v28 }
 0x269   :  { %14294 = vst [vmem:[#allocation85_spill] sm:$0xff] %v12586_v28  ;;  %14295 = vst [vmem:[#allocation86_spill] sm:$0xff] %v12601_v63  ;;  %v12611_v16 = vsub.f32 %v2130_v37, %v12593_v0  ;;  %v12613_v12 = vand.u32 4294901760, %v2474_v38  ;;  %v2494_v14 = vsub.f32 %v12578_v15, %v12601_v63 }
 0x26a   :  { %14296 = vst [vmem:[#allocation87_spill] sm:$0xff] %v12605_v48  ;;  %14297 = vst [vmem:[#allocation88_spill] sm:$0xff] %v12608_v10  ;;  %v12618_v36 = vsub.f32 %v2127_v32, %v12603_v61  ;;  %9352 = vmatprep.mubr.f32.mxu1 %v12605_v48  ;;  %9688 = vmatprep.mubr.f32.mxu0 %v12605_v48  ;;  %v2484_v22 = vsub.f32 %v12586_v28, %v12608_v10 }
 0x26b   :  { %14298 = vst [vmem:[#allocation89_spill] sm:$0xff] %v12611_v16  ;;  %14299 = vst [vmem:[#allocation90_spill] sm:$0xff] %v12613_v12  ;;  %v12627_v37 = vand.u32 4294901760, %v12611_v16  ;;  %v12634_v32 = vand.u32 4294901760, %v2494_v14  ;;  %v10429_v14 = vpack.c.bf16 %v12104_v34, %v12102_v33 }
 0x26c   :  { %14300 = vst [vmem:[#allocation91_spill] sm:$0xff] %v12618_v36  ;;  %9353 = vmatmul.mubr.f32.gmra.mrb[26].mxu1 %v12613_v12  ;;  %9689 = vmatmul.mubr.f32.gmra.mrb[58].mxu0 %v12613_v12  ;;  %v12629_v38 = vand.u32 4294901760, %v2484_v22  ;;  %v12632_v63 = vand.u32 4294901760, %v12618_v36 }
 0x26d   :  { %14301 = vst [vmem:[#allocation92_spill] sm:$0xff] %v12627_v37  ;;  %v2514_v48 = vsub.f32 %v12611_v16, %v12627_v37 }
 0x26e   :  { %14302 = vst [vmem:[#allocation93_spill] sm:$0xff] %v12632_v63  ;;  %9355 = vmatprep.mubr.f32.mxu1 %v12629_v38  ;;  %9691 = vmatprep.mubr.f32.mxu0 %v12629_v38  ;;  %v2504_v12 = vsub.f32 %v12618_v36, %v12632_v63 }
 0x26f   :  { %v12646_v10 = vand.u32 4294901760, %v2514_v48  ;;  %v14305_v48 = vld [vmem:[#allocation4_spill] sm:$0xff] }
 0x270   :  { %9356 = vmatmul.mubr.f32.gmra.mrb[28].mxu1 %v12634_v32  ;;  %9692 = vmatmul.mubr.f32.gmra.mrb[60].mxu0 %v12634_v32  ;;  %v12644_v22 = vand.u32 4294901760, %v2504_v12  ;;  %v14306_v12 = vand.u32 4294901760, %v14305_v48  ;;  %v14312_v48 = vld [vmem:[#allocation19_spill] sm:$0xff] }
 0x272   :  { %9358 = vmatprep.mubr.f32.mxu1 %v12644_v22  ;;  %9694 = vmatprep.mubr.f32.mxu0 %v12644_v22 }
 0x274   :  { %9359 = vmatmul.mubr.f32.gmra.mrb[30].mxu1 %v12646_v10  ;;  %9695 = vmatmul.mubr.f32.gmra.mrb[62].mxu0 %v12646_v10 }
 0x275   :  { %9369 = vmatprep.mubr.f32.mxu1 %v12138_v39  ;;  %9705 = vmatprep.mubr.f32.mxu0 %v12138_v39 }
 0x278   :  { %9370 = vmatmul.mubr.f32.vlgmr.msra.gmra.mrb[0].mxu1 %v12134_v27  ;;  %9706 = vmatmul.mubr.f32.vlgmr.msra.gmra.mrb[32].mxu0 %v12134_v27 }
 0x279   :  { %9372 = vmatprep.mubr.f32.mxu1 %v12155_v49  ;;  %10380 = vmatpush3.bf16.msra.mxu1 %v12111_v56  ;;  %v14303_v56 = vand.u32 4294901760, %v12061_v43 }
 0x27a   :  { %9708 = vmatprep.mubr.f32.mxu0 %v12155_v49  ;;  %10382 = vmatprep.subr.bf16.mxu1 %v12115_v5 }
 0x27b   :  { %10428 = vmatpush3.bf16.msra.mxu0 %v12178_v21 }
 0x27c   :  { %9373 = vmatmul.mubr.f32.gmra.mrb[2].mxu1 %v12148_v24  ;;  %9709 = vmatmul.mubr.f32.gmra.mrb[34].mxu0 %v12148_v24 }
 0x27d   :  { %9375 = vmatprep.mubr.f32.mxu1 %v12180_v26  ;;  %9711 = vmatprep.mubr.f32.mxu0 %v12180_v26 }
 0x27e   :  { %10384 = vmatpush3.bf16.msra.mxu1 %v12115_v5  ;;  %10430 = vmatprep.subr.bf16.mxu0 %v10429_v14  ;;  %v14304_v5 = vand.u32 4294901760, %v12063_v4  ;;  %v14309_v4 = vld [vmem:[#allocation11_spill] sm:$0xff] }
 0x27f   :  { %10432 = vmatpush3.bf16.msra.mxu0 %v10429_v14  ;;  %10386 = vmatprep.subr.bf16.mxu1 %v12033_v62  ;;  %v14307_v14 = vld [vmem:[#allocation5_spill] sm:$0xff] }
 0x280   :  { %9376 = vmatmul.mubr.f32.gmra.mrb[4].mxu1 %v12172_v1  ;;  %9712 = vmatmul.mubr.f32.gmra.mrb[36].mxu0 %v12172_v1  ;;  %v12737_v21 = vpack.c.bf16 %v14304_v5, %v14303_v56  ;;  %v14308_v43 = vand.u32 4294901760, %v14307_v14  ;;  %v14310_v56 = vld [vmem:[#allocation25_spill] sm:$0xff]  ;;  %v14311_v5 = vld [vmem:[#allocation18_spill] sm:$0xff] }
 0x281   :  { %9378 = vmatprep.mubr.f32.mxu1 %v12212_v46  ;;  %9714 = vmatprep.mubr.f32.mxu0 %v12212_v46  ;;  %v14314_v14 = vld [vmem:[#allocation30_spill] sm:$0xff] }
 0x282   :  { %10434 = vmatprep.subr.bf16.mxu0 %v12035_v7 }
 0x284   :  { %9379 = vmatmul.mubr.f32.gmra.mrb[6].mxu1 %v12204_v52  ;;  %9715 = vmatmul.mubr.f32.gmra.mrb[38].mxu0 %v12204_v52 }
 0x285   :  { %9381 = vmatprep.mubr.f32.mxu1 %v12247_v18  ;;  %9717 = vmatprep.mubr.f32.mxu0 %v12247_v18 }
 0x288   :  { %9382 = vmatmul.mubr.f32.gmra.mrb[8].mxu1 %v12239_v40  ;;  %9718 = vmatmul.mubr.f32.gmra.mrb[40].mxu0 %v12239_v40 }
 0x289   :  { %9384 = vmatprep.mubr.f32.mxu1 %v12282_v25  ;;  %9720 = vmatprep.mubr.f32.mxu0 %v12282_v25 }
 0x28c   :  { %9385 = vmatmul.mubr.f32.gmra.mrb[10].mxu1 %v12274_v50  ;;  %9721 = vmatmul.mubr.f32.gmra.mrb[42].mxu0 %v12274_v50 }
 0x28d   :  { %9387 = vmatprep.mubr.f32.mxu1 %v12314_v31  ;;  %9723 = vmatprep.mubr.f32.mxu0 %v12314_v31 }
 0x290   :  { %9388 = vmatmul.mubr.f32.gmra.mrb[12].mxu1 %v12306_v59  ;;  %9724 = vmatmul.mubr.f32.gmra.mrb[44].mxu0 %v12306_v59 }
 0x291   :  { %9390 = vmatprep.mubr.f32.mxu1 %v12346_v11  ;;  %9726 = vmatprep.mubr.f32.mxu0 %v12346_v11 }
 0x294   :  { %9391 = vmatmul.mubr.f32.gmra.mrb[14].mxu1 %v12338_v60  ;;  %9727 = vmatmul.mubr.f32.gmra.mrb[46].mxu0 %v12338_v60 }
 0x295   :  { %9393 = vmatprep.mubr.f32.mxu1 %v12378_v23  ;;  %9729 = vmatprep.mubr.f32.mxu0 %v12378_v23 }
 0x298   :  { %9394 = vmatmul.mubr.f32.gmra.mrb[16].mxu1 %v12370_v53  ;;  %9730 = vmatmul.mubr.f32.gmra.mrb[48].mxu0 %v12370_v53 }
 0x299   :  { %9396 = vmatprep.mubr.f32.mxu1 %v12410_v19  ;;  %9732 = vmatprep.mubr.f32.mxu0 %v12410_v19 }
 0x29c   :  { %9397 = vmatmul.mubr.f32.gmra.mrb[18].mxu1 %v12402_v55  ;;  %9733 = vmatmul.mubr.f32.gmra.mrb[50].mxu0 %v12402_v55 }
 0x29d   :  { %9399 = vmatprep.mubr.f32.mxu1 %v12442_v29  ;;  %9735 = vmatprep.mubr.f32.mxu0 %v12442_v29 }
 0x2a0   :  { %9400 = vmatmul.mubr.f32.gmra.mrb[20].mxu1 %v12434_v30  ;;  %9736 = vmatmul.mubr.f32.gmra.mrb[52].mxu0 %v12434_v30 }
 0x2a1   :  { %9402 = vmatprep.mubr.f32.mxu1 %v12474_v9  ;;  %9738 = vmatprep.mubr.f32.mxu0 %v12474_v9 }
 0x2a4   :  { %9403 = vmatmul.mubr.f32.gmra.mrb[22].mxu1 %v12466_v57  ;;  %9739 = vmatmul.mubr.f32.gmra.mrb[54].mxu0 %v12466_v57 }
 0x2a5   :  { %9405 = vmatprep.mubr.f32.mxu1 %v12506_v44  ;;  %9741 = vmatprep.mubr.f32.mxu0 %v12506_v44 }
 0x2a8   :  { %9406 = vmatmul.mubr.f32.gmra.mrb[24].mxu1 %v12498_v35  ;;  %9742 = vmatmul.mubr.f32.gmra.mrb[56].mxu0 %v12498_v35 }
 0x2a9   :  { %9408 = vmatprep.mubr.f32.mxu1 %v12538_v51  ;;  %9744 = vmatprep.mubr.f32.mxu0 %v12538_v51 }
 0x2ac   :  { %9409 = vmatmul.mubr.f32.gmra.mrb[26].mxu1 %v12530_v6  ;;  %9745 = vmatmul.mubr.f32.gmra.mrb[58].mxu0 %v12530_v6 }
 0x2ad   :  { %9411 = vmatprep.mubr.f32.mxu1 %v12570_v17  ;;  %9747 = vmatprep.mubr.f32.mxu0 %v12570_v17 }
 0x2b0   :  { %9412 = vmatmul.mubr.f32.gmra.mrb[28].mxu1 %v12562_v41  ;;  %9748 = vmatmul.mubr.f32.gmra.mrb[60].mxu0 %v12562_v41 }
 0x2b1   :  { %9414 = vmatprep.mubr.f32.mxu1 %v12603_v61  ;;  %9750 = vmatprep.mubr.f32.mxu0 %v12603_v61 }
 0x2b4   :  { %9415 = vmatmul.mubr.f32.gmra.mrb[30].mxu1 %v12593_v0  ;;  %9751 = vmatmul.mubr.f32.gmra.mrb[62].mxu0 %v12593_v0 }
 0x2b5   :  { %9425 = vmatprep.mubr.f32.mxu1 %v12144_v45  ;;  %9761 = vmatprep.mubr.f32.mxu0 %v12144_v45 }
 0x2b8   :  { %9426 = vmatmul.mubr.f32.vlgmr.msra.gmra.mrb[0].mxu1 %v12141_v58  ;;  %9762 = vmatmul.mubr.f32.vlgmr.msra.gmra.mrb[32].mxu0 %v12141_v58 }
 0x2b9   :  { %9428 = vmatprep.mubr.f32.mxu1 %v12166_v20  ;;  %10388 = vmatpush3.bf16.msra.mxu1 %v12033_v62 }
 0x2ba   :  { %9764 = vmatprep.mubr.f32.mxu0 %v12166_v20  ;;  %10390 = vmatprep.subr.bf16.mxu1 %v12053_v54  ;;  %v12749_v20 = vpack.c.bf16 %v14308_v43, %v14306_v12  ;;  %v14313_v12 = vld [vmem:[#allocation32_spill] sm:$0xff] }
 0x2bb   :  { %10436 = vmatpush3.bf16.msra.mxu0 %v12035_v7  ;;  %v14315_v43 = vld [vmem:[#allocation24_spill] sm:$0xff] }
 0x2bc   :  { %9429 = vmatmul.mubr.f32.gmra.mrb[2].mxu1 %v12161_v8  ;;  %9765 = vmatmul.mubr.f32.gmra.mrb[34].mxu0 %v12161_v8 }
 0x2bd   :  { %9431 = vmatprep.mubr.f32.mxu1 %v12196_v42  ;;  %9767 = vmatprep.mubr.f32.mxu0 %v12196_v42 }
 0x2be   :  { %10392 = vmatpush3.bf16.msra.mxu1 %v12053_v54  ;;  %10438 = vmatprep.subr.bf16.mxu0 %v12055_v2 }
 0x2bf   :  { %10440 = vmatpush3.bf16.msra.mxu0 %v12055_v2  ;;  %10394 = vmatprep.subr.bf16.mxu1 %v12737_v21 }
 0x2c0   :  { %9432 = vmatmul.mubr.f32.gmra.mrb[4].mxu1 %v14309_v4  ;;  %9768 = vmatmul.mubr.f32.gmra.mrb[36].mxu0 %v14309_v4 }
 0x2c1   :  { %9434 = vmatprep.mubr.f32.mxu1 %v14310_v56  ;;  %9770 = vmatprep.mubr.f32.mxu0 %v14310_v56  ;;  %v14316_v56 = vld [vmem:[#allocation37_spill] sm:$0xff] }
 0x2c2   :  { %10442 = vmatprep.subr.bf16.mxu0 %v12749_v20 }
 0x2c4   :  { %9435 = vmatmul.mubr.f32.gmra.mrb[6].mxu1 %v14311_v5  ;;  %9771 = vmatmul.mubr.f32.gmra.mrb[38].mxu0 %v14311_v5  ;;  %v14317_v5 = vld [vmem:[#allocation34_spill] sm:$0xff] }
 0x2c5   :  { %9437 = vmatprep.mubr.f32.mxu1 %v14312_v48  ;;  %9773 = vmatprep.mubr.f32.mxu0 %v14312_v48  ;;  %v14318_v48 = vld [vmem:[#allocation43_spill] sm:$0xff] }
 0x2c8   :  { %9438 = vmatmul.mubr.f32.gmra.mrb[8].mxu1 %v14313_v12  ;;  %9774 = vmatmul.mubr.f32.gmra.mrb[40].mxu0 %v14313_v12  ;;  %v14319_v12 = vld [vmem:[#allocation40_spill] sm:$0xff] }
 0x2c9   :  { %9440 = vmatprep.mubr.f32.mxu1 %v14314_v14  ;;  %9776 = vmatprep.mubr.f32.mxu0 %v14314_v14  ;;  %v14320_v14 = vld [vmem:[#allocation49_spill] sm:$0xff] }
 0x2cc   :  { %9441 = vmatmul.mubr.f32.gmra.mrb[10].mxu1 %v14315_v43  ;;  %9777 = vmatmul.mubr.f32.gmra.mrb[42].mxu0 %v14315_v43  ;;  %v14321_v43 = vld [vmem:[#allocation46_spill] sm:$0xff] }
 0x2cd   :  { %9443 = vmatprep.mubr.f32.mxu1 %v14316_v56  ;;  %9779 = vmatprep.mubr.f32.mxu0 %v14316_v56  ;;  %v14322_v56 = vld [vmem:[#allocation55_spill] sm:$0xff] }
 0x2d0   :  { %9444 = vmatmul.mubr.f32.gmra.mrb[12].mxu1 %v14317_v5  ;;  %9780 = vmatmul.mubr.f32.gmra.mrb[44].mxu0 %v14317_v5  ;;  %v14323_v5 = vld [vmem:[#allocation52_spill] sm:$0xff] }
 0x2d1   :  { %9446 = vmatprep.mubr.f32.mxu1 %v14318_v48  ;;  %9782 = vmatprep.mubr.f32.mxu0 %v14318_v48  ;;  %v14324_v48 = vld [vmem:[#allocation61_spill] sm:$0xff] }
 0x2d4   :  { %9447 = vmatmul.mubr.f32.gmra.mrb[14].mxu1 %v14319_v12  ;;  %9783 = vmatmul.mubr.f32.gmra.mrb[46].mxu0 %v14319_v12  ;;  %v14325_v12 = vld [vmem:[#allocation58_spill] sm:$0xff] }
 0x2d5   :  { %9449 = vmatprep.mubr.f32.mxu1 %v14320_v14  ;;  %9785 = vmatprep.mubr.f32.mxu0 %v14320_v14  ;;  %v14326_v14 = vld [vmem:[#allocation67_spill] sm:$0xff] }
 0x2d8   :  { %9450 = vmatmul.mubr.f32.gmra.mrb[16].mxu1 %v14321_v43  ;;  %9786 = vmatmul.mubr.f32.gmra.mrb[48].mxu0 %v14321_v43  ;;  %v14327_v43 = vld [vmem:[#allocation64_spill] sm:$0xff] }
 0x2d9   :  { %9452 = vmatprep.mubr.f32.mxu1 %v14322_v56  ;;  %9788 = vmatprep.mubr.f32.mxu0 %v14322_v56  ;;  %v14328_v56 = vld [vmem:[#allocation73_spill] sm:$0xff] }
 0x2dc   :  { %9453 = vmatmul.mubr.f32.gmra.mrb[18].mxu1 %v14323_v5  ;;  %9789 = vmatmul.mubr.f32.gmra.mrb[50].mxu0 %v14323_v5 }
 0x2dd   :  { %9455 = vmatprep.mubr.f32.mxu1 %v14324_v48  ;;  %9791 = vmatprep.mubr.f32.mxu0 %v14324_v48 }
 0x2e0   :  { %9456 = vmatmul.mubr.f32.gmra.mrb[20].mxu1 %v14325_v12  ;;  %9792 = vmatmul.mubr.f32.gmra.mrb[52].mxu0 %v14325_v12 }
 0x2e1   :  { %9458 = vmatprep.mubr.f32.mxu1 %v14326_v14  ;;  %9794 = vmatprep.mubr.f32.mxu0 %v14326_v14  ;;  %v14334_v14 = vld [vmem:[#allocation6_spill] sm:$0xff] }
 0x2e4   :  { %9459 = vmatmul.mubr.f32.gmra.mrb[22].mxu1 %v14327_v43  ;;  %9795 = vmatmul.mubr.f32.gmra.mrb[54].mxu0 %v14327_v43 }
 0x2e5   :  { %9461 = vmatprep.mubr.f32.mxu1 %v14328_v56  ;;  %9797 = vmatprep.mubr.f32.mxu0 %v14328_v56  ;;  %v14332_v56 = vld [vmem:[#allocation3_spill] sm:$0xff] }
 0x2e8   :  { %9462 = vmatmul.mubr.f32.gmra.mrb[24].mxu1 %v12514_v47  ;;  %9798 = vmatmul.mubr.f32.gmra.mrb[56].mxu0 %v12514_v47 }
 0x2e9   :  { %9464 = vmatprep.mubr.f32.mxu1 %v12554_v13  ;;  %9800 = vmatprep.mubr.f32.mxu0 %v12554_v13  ;;  %v14329_v13 = vld [vmem:[#allocation7_spill] sm:$0xff] }
 0x2ec   :  { %9465 = vmatmul.mubr.f32.gmra.mrb[26].mxu1 %v12546_v3  ;;  %9801 = vmatmul.mubr.f32.gmra.mrb[58].mxu0 %v12546_v3  ;;  %v14330_v3 = vld [vmem:[#allocation2_spill] sm:$0xff] }
 0x2ed   :  { %9467 = vmatprep.mubr.f32.mxu1 %v12586_v28  ;;  %9803 = vmatprep.mubr.f32.mxu0 %v12586_v28  ;;  %v14331_v47 = vand.u32 4294901760, %v14330_v3  ;;  %v14333_v28 = vand.u32 4294901760, %v14332_v56  ;;  %v14338_v3 = vld [vmem:[#allocation13_spill] sm:$0xff]  ;;  %v14348_v56 = vld [vmem:[#allocation42_spill] sm:$0xff] }
 0x2ef   :  { %v10397_v43 = vpack.c.bf16 %v14333_v28, %v14331_v47  ;;  %v14339_v47 = vld [vmem:[#allocation17_spill] sm:$0xff]  ;;  %v14340_v28 = vld [vmem:[#allocation23_spill] sm:$0xff] }
 0x2f0   :  { %9468 = vmatmul.mubr.f32.gmra.mrb[28].mxu1 %v12578_v15  ;;  %9804 = vmatmul.mubr.f32.gmra.mrb[60].mxu0 %v12578_v15  ;;  %v14335_v15 = vld [vmem:[#allocation10_spill] sm:$0xff] }
 0x2f1   :  { %9470 = vmatprep.mubr.f32.mxu1 %v12618_v36  ;;  %9806 = vmatprep.mubr.f32.mxu0 %v12618_v36 }
 0x2f4   :  { %9471 = vmatmul.mubr.f32.gmra.mrb[30].mxu1 %v12611_v16  ;;  %9807 = vmatmul.mubr.f32.gmra.mrb[62].mxu0 %v12611_v16  ;;  %v14336_v16 = vand.u32 4294901760, %v12102_v33  ;;  %v14341_v33 = vld [vmem:[#allocation29_spill] sm:$0xff] }
 0x2f5   :  { %9481 = vmatprep.mubr.f32.mxu1 %v14329_v13  ;;  %9817 = vmatprep.mubr.f32.mxu0 %v14329_v13  ;;  %v14337_v13 = vand.u32 4294901760, %v12104_v34  ;;  %v14342_v34 = vld [vmem:[#allocation16_spill] sm:$0xff] }
 0x2f7   :  { %v10445_v36 = vpack.c.bf16 %v14337_v13, %v14336_v16  ;;  %v14344_v16 = vld [vmem:[#allocation28_spill] sm:$0xff]  ;;  %v14345_v13 = vld [vmem:[#allocation33_spill] sm:$0xff] }
 0x2f8   :  { %9482 = vmatmul.mubr.f32.vlgmr.msra.gmra.mrb[0].mxu1 %v14334_v14  ;;  %9818 = vmatmul.mubr.f32.vlgmr.msra.gmra.mrb[32].mxu0 %v14334_v14 }
 0x2f9   :  { %9484 = vmatprep.mubr.f32.mxu1 %v14335_v15  ;;  %10396 = vmatpush3.bf16.msra.mxu1 %v12737_v21  ;;  %v14347_v21 = vld [vmem:[#allocation39_spill] sm:$0xff] }
 0x2fa   :  { %9820 = vmatprep.mubr.f32.mxu0 %v14335_v15  ;;  %10398 = vmatprep.subr.bf16.mxu1 %v10397_v43  ;;  %v14370_v15 = vld [vmem:[#allocation27_spill] sm:$0xff] }
 0x2fb   :  { %10444 = vmatpush3.bf16.msra.mxu0 %v12749_v20  ;;  %v14343_v20 = vld [vmem:[#allocation22_spill] sm:$0xff] }
 0x2fc   :  { %9485 = vmatmul.mubr.f32.gmra.mrb[2].mxu1 %v14338_v3  ;;  %9821 = vmatmul.mubr.f32.gmra.mrb[34].mxu0 %v14338_v3  ;;  %v14369_v3 = vld [vmem:[#allocation21_spill] sm:$0xff] }
 0x2fd   :  { %9487 = vmatprep.mubr.f32.mxu1 %v14339_v47  ;;  %9823 = vmatprep.mubr.f32.mxu0 %v14339_v47  ;;  %v14367_v47 = vld [vmem:[#allocation12_spill] sm:$0xff] }
 0x2fe   :  { %10400 = vmatpush3.bf16.msra.mxu1 %v10397_v43  ;;  %10446 = vmatprep.subr.bf16.mxu0 %v10445_v36  ;;  %v14349_v43 = vld [vmem:[#allocation45_spill] sm:$0xff] }
 0x2ff   :  { %10448 = vmatpush3.bf16.msra.mxu0 %v10445_v36  ;;  %10402 = vmatprep.subr.bf16.mxu1 %v12033_v62  ;;  %v14346_v36 = vld [vmem:[#allocation36_spill] sm:$0xff] }
 0x300   :  { %9488 = vmatmul.mubr.f32.gmra.mrb[4].mxu1 %v14340_v28  ;;  %9824 = vmatmul.mubr.f32.gmra.mrb[36].mxu0 %v14340_v28  ;;  %v14366_v28 = vld [vmem:[#allocation9_spill] sm:$0xff] }
 0x301   :  { %9490 = vmatprep.mubr.f32.mxu1 %v14341_v33  ;;  %9826 = vmatprep.mubr.f32.mxu0 %v14341_v33 }
 0x302   :  { %10450 = vmatprep.subr.bf16.mxu0 %v12035_v7 }
 0x304   :  { %9491 = vmatmul.mubr.f32.gmra.mrb[6].mxu1 %v14342_v34  ;;  %9827 = vmatmul.mubr.f32.gmra.mrb[38].mxu0 %v14342_v34 }
 0x305   :  { %9493 = vmatprep.mubr.f32.mxu1 %v14343_v20  ;;  %9829 = vmatprep.mubr.f32.mxu0 %v14343_v20 }
 0x308   :  { %9494 = vmatmul.mubr.f32.gmra.mrb[8].mxu1 %v14344_v16  ;;  %9830 = vmatmul.mubr.f32.gmra.mrb[40].mxu0 %v14344_v16  ;;  %v14350_v16 = vld [vmem:[#allocation48_spill] sm:$0xff] }
 0x309   :  { %9496 = vmatprep.mubr.f32.mxu1 %v14345_v13  ;;  %9832 = vmatprep.mubr.f32.mxu0 %v14345_v13  ;;  %v14351_v13 = vld [vmem:[#allocation51_spill] sm:$0xff] }
 0x30c   :  { %9497 = vmatmul.mubr.f32.gmra.mrb[10].mxu1 %v14346_v36  ;;  %9833 = vmatmul.mubr.f32.gmra.mrb[42].mxu0 %v14346_v36  ;;  %v14352_v36 = vld [vmem:[#allocation54_spill] sm:$0xff] }
 0x30d   :  { %9499 = vmatprep.mubr.f32.mxu1 %v14347_v21  ;;  %9835 = vmatprep.mubr.f32.mxu0 %v14347_v21  ;;  %v14353_v21 = vld [vmem:[#allocation57_spill] sm:$0xff] }
 0x310   :  { %9500 = vmatmul.mubr.f32.gmra.mrb[12].mxu1 %v14348_v56  ;;  %9836 = vmatmul.mubr.f32.gmra.mrb[44].mxu0 %v14348_v56  ;;  %v14354_v56 = vld [vmem:[#allocation60_spill] sm:$0xff] }
 0x311   :  { %9502 = vmatprep.mubr.f32.mxu1 %v14349_v43  ;;  %9838 = vmatprep.mubr.f32.mxu0 %v14349_v43  ;;  %v14355_v43 = vld [vmem:[#allocation63_spill] sm:$0xff] }
 0x314   :  { %9503 = vmatmul.mubr.f32.gmra.mrb[14].mxu1 %v14350_v16  ;;  %9839 = vmatmul.mubr.f32.gmra.mrb[46].mxu0 %v14350_v16  ;;  %v14356_v16 = vld [vmem:[#allocation66_spill] sm:$0xff] }
 0x315   :  { %9505 = vmatprep.mubr.f32.mxu1 %v14351_v13  ;;  %9841 = vmatprep.mubr.f32.mxu0 %v14351_v13  ;;  %v14357_v13 = vld [vmem:[#allocation69_spill] sm:$0xff] }
 0x318   :  { %9506 = vmatmul.mubr.f32.gmra.mrb[16].mxu1 %v14352_v36  ;;  %9842 = vmatmul.mubr.f32.gmra.mrb[48].mxu0 %v14352_v36  ;;  %v14358_v36 = vld [vmem:[#allocation72_spill] sm:$0xff] }
 0x319   :  { %9508 = vmatprep.mubr.f32.mxu1 %v14353_v21  ;;  %9844 = vmatprep.mubr.f32.mxu0 %v14353_v21  ;;  %v14359_v21 = vld [vmem:[#allocation75_spill] sm:$0xff] }
 0x31c   :  { %9509 = vmatmul.mubr.f32.gmra.mrb[18].mxu1 %v14354_v56  ;;  %9845 = vmatmul.mubr.f32.gmra.mrb[50].mxu0 %v14354_v56  ;;  %v14360_v56 = vld [vmem:[#allocation78_spill] sm:$0xff] }
 0x31d   :  { %9511 = vmatprep.mubr.f32.mxu1 %v14355_v43  ;;  %9847 = vmatprep.mubr.f32.mxu0 %v14355_v43  ;;  %v14361_v43 = vld [vmem:[#allocation81_spill] sm:$0xff] }
 0x320   :  { %9512 = vmatmul.mubr.f32.gmra.mrb[20].mxu1 %v14356_v16  ;;  %9848 = vmatmul.mubr.f32.gmra.mrb[52].mxu0 %v14356_v16  ;;  %v14362_v16 = vld [vmem:[#allocation84_spill] sm:$0xff] }
 0x321   :  { %9514 = vmatprep.mubr.f32.mxu1 %v14357_v13  ;;  %9850 = vmatprep.mubr.f32.mxu0 %v14357_v13  ;;  %v14363_v13 = vld [vmem:[#allocation88_spill] sm:$0xff] }
 0x324   :  { %9515 = vmatmul.mubr.f32.gmra.mrb[22].mxu1 %v14358_v36  ;;  %9851 = vmatmul.mubr.f32.gmra.mrb[54].mxu0 %v14358_v36  ;;  %v14364_v36 = vld [vmem:[#allocation86_spill] sm:$0xff] }
 0x325   :  { %9517 = vmatprep.mubr.f32.mxu1 %v14359_v21  ;;  %9853 = vmatprep.mubr.f32.mxu0 %v14359_v21 }
 0x328   :  { %9518 = vmatmul.mubr.f32.gmra.mrb[24].mxu1 %v14360_v56  ;;  %9854 = vmatmul.mubr.f32.gmra.mrb[56].mxu0 %v14360_v56 }
 0x329   :  { %9520 = vmatprep.mubr.f32.mxu1 %v14361_v43  ;;  %9856 = vmatprep.mubr.f32.mxu0 %v14361_v43 }
 0x32c   :  { %9521 = vmatmul.mubr.f32.gmra.mrb[26].mxu1 %v14362_v16  ;;  %9857 = vmatmul.mubr.f32.gmra.mrb[58].mxu0 %v14362_v16  ;;  %v12887_v16 = vld [vmem:[%s13798_s7] sm:$0xff] }
 0x32d   :  { %9523 = vmatprep.mubr.f32.mxu1 %v14363_v13  ;;  %9859 = vmatprep.mubr.f32.mxu0 %v14363_v13  ;;  %v12892_v13 = vld [vmem:[%s13798_s7 + $0x8] sm:$0xff] }
 0x330   :  { %9524 = vmatmul.mubr.f32.gmra.mrb[28].mxu1 %v14364_v36  ;;  %9860 = vmatmul.mubr.f32.gmra.mrb[60].mxu0 %v14364_v36  ;;  %v5987_v36 = vand.u32 4294901760, %v12892_v13 }
 0x331   :  { %9526 = vmatprep.mubr.f32.mxu1 %v12632_v63  ;;  %9862 = vmatprep.mubr.f32.mxu0 %v12632_v63  ;;  %v5984_v63 = vand.u32 4294901760, %v12887_v16 }
 0x334   :  { %9527 = vmatmul.mubr.f32.gmra.mrb[30].mxu1 %v12627_v37  ;;  %9863 = vmatmul.mubr.f32.gmra.mrb[62].mxu0 %v12627_v37  ;;  %v12905_v37 = vpack.c.bf16 %v5987_v36, %v5984_v63 }
 0x335   :  { %9537 = vmatprep.mubr.f32.mxu1 %v12138_v39  ;;  %9873 = vmatprep.mubr.f32.mxu0 %v12138_v39 }
 0x338   :  { %9538 = vmatmul.mubr.f32.vlgmr.msra.gmra.mrb[0].mxu1 %v12134_v27  ;;  %9874 = vmatmul.mubr.f32.vlgmr.msra.gmra.mrb[32].mxu0 %v12134_v27 }
 0x339   :  { %9540 = vmatprep.mubr.f32.mxu1 %v12155_v49  ;;  %10404 = vmatpush3.bf16.msra.mxu1 %v12033_v62  ;;  %v12960_v62 = vsub.f32 %v12887_v16, %v5984_v63  ;;  %v5974_v63 = vld [vmem:[%s13798_s7 + $0x10] sm:$0xff]  ;;  %v5975_v16 = vld [vmem:[%s13798_s7 + $0x18] sm:$0xff] }
 0x33a   :  { %9876 = vmatprep.mubr.f32.mxu0 %v12155_v49  ;;  %10406 = vmatprep.subr.bf16.mxu1 %v12053_v54 }
 0x33b   :  { %10452 = vmatpush3.bf16.msra.mxu0 %v12035_v7  ;;  %v12963_v7 = vsub.f32 %v12892_v13, %v5987_v36  ;;  %v5990_v13 = vand.u32 4294901760, %v5974_v63  ;;  %v5993_v36 = vand.u32 4294901760, %v5975_v16 }
 0x33c   :  { %9541 = vmatmul.mubr.f32.gmra.mrb[2].mxu1 %v12148_v24  ;;  %9877 = vmatmul.mubr.f32.gmra.mrb[34].mxu0 %v12148_v24 }
 0x33d   :  { %9543 = vmatprep.mubr.f32.mxu1 %v12180_v26  ;;  %9879 = vmatprep.mubr.f32.mxu0 %v12180_v26  ;;  %v14365_v43 = vand.u32 4294901760, %v12963_v7  ;;  %v12991_v21 = vpack.c.bf16 %v5993_v36, %v5990_v13 }
 0x33e   :  { %10408 = vmatpush3.bf16.msra.mxu1 %v12053_v54  ;;  %10454 = vmatprep.subr.bf16.mxu0 %v12055_v2  ;;  %v14089_v54 = vand.u32 4294901760, %v12960_v62 }
 0x33f   :  { %10456 = vmatpush3.bf16.msra.mxu0 %v12055_v2  ;;  %10458 = vmatprep.subr.bf16.mxu1 %v12905_v37  ;;  %v6383_v56 = vsub.f32 %v12963_v7, %v14365_v43 }
 0x340   :  { %9544 = vmatmul.mubr.f32.gmra.mrb[4].mxu1 %v12172_v1  ;;  %9880 = vmatmul.mubr.f32.gmra.mrb[36].mxu0 %v12172_v1  ;;  %v6376_v2 = vsub.f32 %v12960_v62, %v14089_v54  ;;  %v12997_v54 = vpack.c.bf16 %v12963_v7, %v12960_v62 }
 0x341   :  { %9546 = vmatprep.mubr.f32.mxu1 %v12212_v46  ;;  %9882 = vmatprep.mubr.f32.mxu0 %v12212_v46  ;;  %v6384_v34 = vand.u32 4294901760, %v6383_v56 }
 0x342   :  { %v6377_v20 = vand.u32 4294901760, %v6376_v2 }
 0x344   :  { %9547 = vmatmul.mubr.f32.gmra.mrb[6].mxu1 %v12204_v52  ;;  %9883 = vmatmul.mubr.f32.gmra.mrb[38].mxu0 %v12204_v52  ;;  %v13003_v43 = vpack.c.bf16 %v6384_v34, %v6377_v20  ;;  %v13035_v34 = vsub.f32 %v5974_v63, %v5990_v13  ;;  %v13037_v20 = vsub.f32 %v5975_v16, %v5993_v36 }
 0x345   :  { %9549 = vmatprep.mubr.f32.mxu1 %v12247_v18  ;;  %9885 = vmatprep.mubr.f32.mxu0 %v12247_v18 }
 0x346   :  { %v13043_v56 = vpack.c.bf16 %v13037_v20, %v13035_v34  ;;  %v14092_v2 = vand.u32 4294901760, %v13035_v34  ;;  %v14094_v63 = vand.u32 4294901760, %v13037_v20 }
 0x348   :  { %9550 = vmatmul.mubr.f32.gmra.mrb[8].mxu1 %v12239_v40  ;;  %9886 = vmatmul.mubr.f32.gmra.mrb[40].mxu0 %v12239_v40  ;;  %v6390_v16 = vsub.f32 %v13035_v34, %v14092_v2  ;;  %v6397_v13 = vsub.f32 %v13037_v20, %v14094_v63  ;;  %v14368_v63 = vld [vmem:[#allocation14_spill] sm:$0xff] }
 0x349   :  { %9552 = vmatprep.mubr.f32.mxu1 %v12282_v25  ;;  %9888 = vmatprep.mubr.f32.mxu0 %v12282_v25 }
 0x34a   :  { %v6391_v36 = vand.u32 4294901760, %v6390_v16  ;;  %v6398_v33 = vand.u32 4294901760, %v6397_v13  ;;  %v14371_v16 = vld [vmem:[#allocation15_spill] sm:$0xff]  ;;  %v14372_v13 = vld [vmem:[#allocation20_spill] sm:$0xff] }
 0x34c   :  { %9553 = vmatmul.mubr.f32.gmra.mrb[10].mxu1 %v12274_v50  ;;  %9889 = vmatmul.mubr.f32.gmra.mrb[42].mxu0 %v12274_v50  ;;  %v10469_v2 = vpack.c.bf16 %v6398_v33, %v6391_v36  ;;  %v14374_v33 = vld [vmem:[#allocation31_spill] sm:$0xff]  ;;  %v14381_v36 = vld [vmem:[#allocation53_spill] sm:$0xff] }
 0x34d   :  { %9555 = vmatprep.mubr.f32.mxu1 %v12314_v31  ;;  %9891 = vmatprep.mubr.f32.mxu0 %v12314_v31 }
 0x350   :  { %9556 = vmatmul.mubr.f32.gmra.mrb[12].mxu1 %v12306_v59  ;;  %9892 = vmatmul.mubr.f32.gmra.mrb[44].mxu0 %v12306_v59 }
 0x351   :  { %9558 = vmatprep.mubr.f32.mxu1 %v12346_v11  ;;  %9894 = vmatprep.mubr.f32.mxu0 %v12346_v11 }
 0x354   :  { %9559 = vmatmul.mubr.f32.gmra.mrb[14].mxu1 %v12338_v60  ;;  %9895 = vmatmul.mubr.f32.gmra.mrb[46].mxu0 %v12338_v60 }
 0x355   :  { %9561 = vmatprep.mubr.f32.mxu1 %v12378_v23  ;;  %9897 = vmatprep.mubr.f32.mxu0 %v12378_v23 }
 0x358   :  { %9562 = vmatmul.mubr.f32.gmra.mrb[16].mxu1 %v12370_v53  ;;  %9898 = vmatmul.mubr.f32.gmra.mrb[48].mxu0 %v12370_v53 }
 0x359   :  { %9564 = vmatprep.mubr.f32.mxu1 %v12410_v19  ;;  %9900 = vmatprep.mubr.f32.mxu0 %v12410_v19 }
 0x35c   :  { %9565 = vmatmul.mubr.f32.gmra.mrb[18].mxu1 %v12402_v55  ;;  %9901 = vmatmul.mubr.f32.gmra.mrb[50].mxu0 %v12402_v55 }
 0x35d   :  { %9567 = vmatprep.mubr.f32.mxu1 %v12442_v29  ;;  %9903 = vmatprep.mubr.f32.mxu0 %v12442_v29 }
 0x360   :  { %9568 = vmatmul.mubr.f32.gmra.mrb[20].mxu1 %v12434_v30  ;;  %9904 = vmatmul.mubr.f32.gmra.mrb[52].mxu0 %v12434_v30 }
 0x361   :  { %9570 = vmatprep.mubr.f32.mxu1 %v12474_v9  ;;  %9906 = vmatprep.mubr.f32.mxu0 %v12474_v9 }
 0x364   :  { %9571 = vmatmul.mubr.f32.gmra.mrb[22].mxu1 %v12466_v57  ;;  %9907 = vmatmul.mubr.f32.gmra.mrb[54].mxu0 %v12466_v57 }
 0x365   :  { %9573 = vmatprep.mubr.f32.mxu1 %v12506_v44  ;;  %9909 = vmatprep.mubr.f32.mxu0 %v12506_v44 }
 0x368   :  { %9574 = vmatmul.mubr.f32.gmra.mrb[24].mxu1 %v12498_v35  ;;  %9910 = vmatmul.mubr.f32.gmra.mrb[56].mxu0 %v12498_v35 }
 0x369   :  { %9576 = vmatprep.mubr.f32.mxu1 %v12538_v51  ;;  %9912 = vmatprep.mubr.f32.mxu0 %v12538_v51 }
 0x36c   :  { %9577 = vmatmul.mubr.f32.gmra.mrb[26].mxu1 %v12530_v6  ;;  %9913 = vmatmul.mubr.f32.gmra.mrb[58].mxu0 %v12530_v6 }
 0x36d   :  { %9579 = vmatprep.mubr.f32.mxu1 %v12570_v17  ;;  %9915 = vmatprep.mubr.f32.mxu0 %v12570_v17 }
 0x370   :  { %9580 = vmatmul.mubr.f32.gmra.mrb[28].mxu1 %v12562_v41  ;;  %9916 = vmatmul.mubr.f32.gmra.mrb[60].mxu0 %v12562_v41 }
 0x371   :  { %9582 = vmatprep.mubr.f32.mxu1 %v12603_v61  ;;  %9918 = vmatprep.mubr.f32.mxu0 %v12603_v61 }
 0x374   :  { %9583 = vmatmul.mubr.f32.gmra.mrb[30].mxu1 %v12593_v0  ;;  %9919 = vmatmul.mubr.f32.gmra.mrb[62].mxu0 %v12593_v0 }
 0x375   :  { %9593 = vmatprep.mubr.f32.mxu1 %v12138_v39  ;;  %9929 = vmatprep.mubr.f32.mxu0 %v12138_v39 }
 0x378   :  { %9594 = vmatmul.mubr.f32.vlgmr.msra.gmra.mrb[0].mxu1 %v12134_v27  ;;  %9930 = vmatmul.mubr.f32.vlgmr.msra.gmra.mrb[32].mxu0 %v12134_v27 }
 0x379   :  { %9596 = vmatprep.mubr.f32.mxu1 %v12155_v49  ;;  %9932 = vmatprep.mubr.f32.mxu0 %v12155_v49 }
 0x37a   :  { %10460 = vmatpush3.bf16.msra.mxu1 %v12905_v37 }
 0x37b   :  { %10462 = vmatprep.subr.bf16.mxu1 %v12991_v21 }
 0x37c   :  { %9597 = vmatmul.mubr.f32.gmra.mrb[2].mxu1 %v12148_v24  ;;  %9933 = vmatmul.mubr.f32.gmra.mrb[34].mxu0 %v12148_v24 }
 0x37d   :  { %9599 = vmatprep.mubr.f32.mxu1 %v12180_v26  ;;  %9935 = vmatprep.mubr.f32.mxu0 %v12180_v26 }
 0x37e   :  { %10464 = vmatpush3.bf16.msra.mxu1 %v12991_v21 }
 0x37f   :  { %10466 = vmatprep.subr.bf16.mxu1 %v13003_v43 }
 0x380   :  { %9600 = vmatmul.mubr.f32.gmra.mrb[4].mxu1 %v12172_v1  ;;  %9936 = vmatmul.mubr.f32.gmra.mrb[36].mxu0 %v12172_v1 }
 0x381   :  { %9602 = vmatprep.mubr.f32.mxu1 %v12212_v46  ;;  %9938 = vmatprep.mubr.f32.mxu0 %v12212_v46 }
 0x384   :  { %9603 = vmatmul.mubr.f32.gmra.mrb[6].mxu1 %v12204_v52  ;;  %9939 = vmatmul.mubr.f32.gmra.mrb[38].mxu0 %v12204_v52 }
 0x385   :  { %9605 = vmatprep.mubr.f32.mxu1 %v12247_v18  ;;  %9941 = vmatprep.mubr.f32.mxu0 %v12247_v18 }
 0x388   :  { %9606 = vmatmul.mubr.f32.gmra.mrb[8].mxu1 %v12239_v40  ;;  %9942 = vmatmul.mubr.f32.gmra.mrb[40].mxu0 %v12239_v40 }
 0x389   :  { %9608 = vmatprep.mubr.f32.mxu1 %v12282_v25  ;;  %9944 = vmatprep.mubr.f32.mxu0 %v12282_v25 }
 0x38c   :  { %9609 = vmatmul.mubr.f32.gmra.mrb[10].mxu1 %v12274_v50  ;;  %9945 = vmatmul.mubr.f32.gmra.mrb[42].mxu0 %v12274_v50 }
 0x38d   :  { %9611 = vmatprep.mubr.f32.mxu1 %v12314_v31  ;;  %9947 = vmatprep.mubr.f32.mxu0 %v12314_v31 }
 0x390   :  { %9612 = vmatmul.mubr.f32.gmra.mrb[12].mxu1 %v12306_v59  ;;  %9948 = vmatmul.mubr.f32.gmra.mrb[44].mxu0 %v12306_v59 }
 0x391   :  { %9614 = vmatprep.mubr.f32.mxu1 %v12346_v11  ;;  %9950 = vmatprep.mubr.f32.mxu0 %v12346_v11 }
 0x394   :  { %9615 = vmatmul.mubr.f32.gmra.mrb[14].mxu1 %v12338_v60  ;;  %9951 = vmatmul.mubr.f32.gmra.mrb[46].mxu0 %v12338_v60 }
 0x395   :  { %9617 = vmatprep.mubr.f32.mxu1 %v12378_v23  ;;  %9953 = vmatprep.mubr.f32.mxu0 %v12378_v23 }
 0x398   :  { %9618 = vmatmul.mubr.f32.gmra.mrb[16].mxu1 %v12370_v53  ;;  %9954 = vmatmul.mubr.f32.gmra.mrb[48].mxu0 %v12370_v53 }
 0x399   :  { %9620 = vmatprep.mubr.f32.mxu1 %v12410_v19  ;;  %9956 = vmatprep.mubr.f32.mxu0 %v12410_v19 }
 0x39c   :  { %9621 = vmatmul.mubr.f32.gmra.mrb[18].mxu1 %v12402_v55  ;;  %9957 = vmatmul.mubr.f32.gmra.mrb[50].mxu0 %v12402_v55 }
 0x39d   :  { %9623 = vmatprep.mubr.f32.mxu1 %v12442_v29  ;;  %9959 = vmatprep.mubr.f32.mxu0 %v12442_v29 }
 0x3a0   :  { %9624 = vmatmul.mubr.f32.gmra.mrb[20].mxu1 %v12434_v30  ;;  %9960 = vmatmul.mubr.f32.gmra.mrb[52].mxu0 %v12434_v30 }
 0x3a1   :  { %9626 = vmatprep.mubr.f32.mxu1 %v12474_v9  ;;  %9962 = vmatprep.mubr.f32.mxu0 %v12474_v9 }
 0x3a4   :  { %9627 = vmatmul.mubr.f32.gmra.mrb[22].mxu1 %v12466_v57  ;;  %9963 = vmatmul.mubr.f32.gmra.mrb[54].mxu0 %v12466_v57 }
 0x3a5   :  { %9629 = vmatprep.mubr.f32.mxu1 %v12506_v44  ;;  %9965 = vmatprep.mubr.f32.mxu0 %v12506_v44 }
 0x3a8   :  { %9630 = vmatmul.mubr.f32.gmra.mrb[24].mxu1 %v12498_v35  ;;  %9966 = vmatmul.mubr.f32.gmra.mrb[56].mxu0 %v12498_v35 }
 0x3a9   :  { %9632 = vmatprep.mubr.f32.mxu1 %v12538_v51  ;;  %9968 = vmatprep.mubr.f32.mxu0 %v12538_v51 }
 0x3ac   :  { %9633 = vmatmul.mubr.f32.gmra.mrb[26].mxu1 %v12530_v6  ;;  %9969 = vmatmul.mubr.f32.gmra.mrb[58].mxu0 %v12530_v6 }
 0x3ad   :  { %9635 = vmatprep.mubr.f32.mxu1 %v12570_v17  ;;  %9971 = vmatprep.mubr.f32.mxu0 %v12570_v17 }
 0x3b0   :  { %9636 = vmatmul.mubr.f32.gmra.mrb[28].mxu1 %v12562_v41  ;;  %9972 = vmatmul.mubr.f32.gmra.mrb[60].mxu0 %v12562_v41 }
 0x3b1   :  { %9638 = vmatprep.mubr.f32.mxu1 %v12603_v61  ;;  %9974 = vmatprep.mubr.f32.mxu0 %v12603_v61 }
 0x3b4   :  { %9639 = vmatmul.mubr.f32.gmra.mrb[30].mxu1 %v12593_v0  ;;  %9975 = vmatmul.mubr.f32.gmra.mrb[62].mxu0 %v12593_v0 }
 0x3b5   :  { %9985 = vmatprep.mubr.f32.mxu1 %v14366_v28  ;;  %v14373_v28 = vld [vmem:[#allocation26_spill] sm:$0xff] }
 0x3b8   :  { %9986 = vmatmul.mubr.f32.vlgmr.msra.gmra.mrb[32].mxu1 %v14367_v47  ;;  %v14375_v47 = vld [vmem:[#allocation35_spill] sm:$0xff] }
 0x3b9   :  { %9988 = vmatprep.mubr.f32.mxu1 %v14368_v63  ;;  %10468 = vmatpush3.bf16.msra.mxu1 %v13003_v43  ;;  %v14376_v63 = vld [vmem:[#allocation38_spill] sm:$0xff]  ;;  %v14377_v43 = vld [vmem:[#allocation41_spill] sm:$0xff] }
 0x3ba   :  { %10470 = vmatprep.subr.bf16.mxu1 %v10469_v2 }
 0x3bc   :  { %9989 = vmatmul.mubr.f32.gmra.mrb[34].mxu1 %v14369_v3  ;;  %v14378_v3 = vld [vmem:[#allocation44_spill] sm:$0xff] }
 0x3bd   :  { %9991 = vmatprep.mubr.f32.mxu1 %v14370_v15  ;;  %10472 = vmatpush3.bf16.msra.mxu1 %v10469_v2  ;;  %v14379_v15 = vld [vmem:[#allocation47_spill] sm:$0xff]  ;;  %v14380_v2 = vld [vmem:[#allocation50_spill] sm:$0xff] }
 0x3be   :  { %10474 = vmatprep.subr.bf16.mxu1 %v12997_v54 }
 0x3c0   :  { %9992 = vmatmul.mubr.f32.gmra.mrb[36].mxu1 %v14371_v16  ;;  %v14382_v16 = vld [vmem:[#allocation56_spill] sm:$0xff] }
 0x3c1   :  { %9994 = vmatprep.mubr.f32.mxu1 %v14372_v13  ;;  %v14383_v13 = vld [vmem:[#allocation59_spill] sm:$0xff] }
 0x3c4   :  { %9995 = vmatmul.mubr.f32.gmra.mrb[38].mxu1 %v14373_v28  ;;  %v14384_v28 = vld [vmem:[#allocation62_spill] sm:$0xff] }
 0x3c5   :  { %9997 = vmatprep.mubr.f32.mxu1 %v14374_v33  ;;  %v14385_v33 = vld [vmem:[#allocation65_spill] sm:$0xff] }
 0x3c8   :  { %9998 = vmatmul.mubr.f32.gmra.mrb[40].mxu1 %v14375_v47  ;;  %v14386_v47 = vld [vmem:[#allocation68_spill] sm:$0xff] }
 0x3c9   :  { %10000 = vmatprep.mubr.f32.mxu1 %v14376_v63  ;;  %v14387_v63 = vld [vmem:[#allocation71_spill] sm:$0xff] }
 0x3cc   :  { %10001 = vmatmul.mubr.f32.gmra.mrb[42].mxu1 %v14377_v43  ;;  %v14388_v43 = vld [vmem:[#allocation74_spill] sm:$0xff] }
 0x3cd   :  { %10003 = vmatprep.mubr.f32.mxu1 %v14378_v3  ;;  %v14389_v3 = vld [vmem:[#allocation77_spill] sm:$0xff] }
 0x3d0   :  { %10004 = vmatmul.mubr.f32.gmra.mrb[44].mxu1 %v14379_v15  ;;  %v14390_v15 = vld [vmem:[#allocation80_spill] sm:$0xff] }
 0x3d1   :  { %10006 = vmatprep.mubr.f32.mxu1 %v14380_v2  ;;  %v14391_v2 = vld [vmem:[#allocation83_spill] sm:$0xff] }
 0x3d4   :  { %10007 = vmatmul.mubr.f32.gmra.mrb[46].mxu1 %v14381_v36  ;;  %v14392_v36 = vld [vmem:[#allocation87_spill] sm:$0xff] }
 0x3d5   :  { %10009 = vmatprep.mubr.f32.mxu1 %v14382_v16  ;;  %v14393_v16 = vld [vmem:[#allocation90_spill] sm:$0xff] }
 0x3d8   :  { %10010 = vmatmul.mubr.f32.gmra.mrb[48].mxu1 %v14383_v13 }
 0x3d9   :  { %10012 = vmatprep.mubr.f32.mxu1 %v14384_v28 }
 0x3dc   :  { %10013 = vmatmul.mubr.f32.gmra.mrb[50].mxu1 %v14385_v33 }
 0x3dd   :  { %10015 = vmatprep.mubr.f32.mxu1 %v14386_v47 }
 0x3e0   :  { %10016 = vmatmul.mubr.f32.gmra.mrb[52].mxu1 %v14387_v63  ;;  %v14402_v63 = vld [vmem:[#allocation24_spill] sm:$0xff] }
 0x3e1   :  { %10018 = vmatprep.mubr.f32.mxu1 %v14388_v43 }
 0x3e4   :  { %10019 = vmatmul.mubr.f32.gmra.mrb[54].mxu1 %v14389_v3 }
 0x3e5   :  { %10021 = vmatprep.mubr.f32.mxu1 %v14390_v15  ;;  %v14403_v15 = vld [vmem:[#allocation37_spill] sm:$0xff] }
 0x3e8   :  { %10022 = vmatmul.mubr.f32.gmra.mrb[56].mxu1 %v14391_v2 }
 0x3e9   :  { %10024 = vmatprep.mubr.f32.mxu1 %v14392_v36 }
 0x3ec   :  { %10025 = vmatmul.mubr.f32.gmra.mrb[58].mxu1 %v14393_v16 }
 0x3ed   :  { %10027 = vmatprep.mubr.f32.mxu1 %v12629_v38  ;;  %v14395_v38 = vand.u32 4294901760, %v12960_v62  ;;  %v14400_v62 = vld [vmem:[#allocation32_spill] sm:$0xff] }
 0x3f0   :  { %10028 = vmatmul.mubr.f32.gmra.mrb[60].mxu1 %v12634_v32  ;;  %v14396_v32 = vand.u32 4294901760, %v12963_v7  ;;  %v14401_v7 = vld [vmem:[#allocation30_spill] sm:$0xff] }
 0x3f1   :  { %10030 = vmatprep.mubr.f32.mxu1 %v12644_v22 }
 0x3f2   :  { %v13160_v22 = vpack.c.bf16 %v14396_v32, %v14395_v38 }
 0x3f4   :  { %10031 = vmatmul.mubr.f32.gmra.mrb[62].mxu1 %v12646_v10  ;;  %v14394_v10 = vld [vmem:[#allocation8_spill] sm:$0xff] }
 0x3f5   :  { %10041 = vmatprep.mubr.f32.mxu1 %v12138_v39 }
 0x3f8   :  { %10042 = vmatmul.mubr.f32.vlgmr.msra.gmra.mrb[32].mxu1 %v12134_v27 }
 0x3f9   :  { %10044 = vmatprep.mubr.f32.mxu1 %v12155_v49  ;;  %10476 = vmatpush3.bf16.msra.mxu1 %v12997_v54  ;;  %v14399_v54 = vld [vmem:[#allocation19_spill] sm:$0xff] }
 0x3fa   :  { %10478 = vmatprep.subr.bf16.mxu1 %v13043_v56 }
 0x3fc   :  { %10045 = vmatmul.mubr.f32.gmra.mrb[34].mxu1 %v12148_v24 }
 0x3fd   :  { %10047 = vmatprep.mubr.f32.mxu1 %v12180_v26  ;;  %10480 = vmatpush3.bf16.msra.mxu1 %v13043_v56 }
 0x3fe   :  { %10482 = vmatprep.subr.bf16.mxu1 %v12905_v37 }
 0x400   :  { %10048 = vmatmul.mubr.f32.gmra.mrb[36].mxu1 %v12172_v1 }
 0x401   :  { %10050 = vmatprep.mubr.f32.mxu1 %v12212_v46 }
 0x404   :  { %10051 = vmatmul.mubr.f32.gmra.mrb[38].mxu1 %v12204_v52 }
 0x405   :  { %10053 = vmatprep.mubr.f32.mxu1 %v12247_v18 }
 0x408   :  { %10054 = vmatmul.mubr.f32.gmra.mrb[40].mxu1 %v12239_v40 }
 0x409   :  { %10056 = vmatprep.mubr.f32.mxu1 %v12282_v25 }
 0x40c   :  { %10057 = vmatmul.mubr.f32.gmra.mrb[42].mxu1 %v12274_v50 }
 0x40d   :  { %10059 = vmatprep.mubr.f32.mxu1 %v12314_v31 }
 0x410   :  { %10060 = vmatmul.mubr.f32.gmra.mrb[44].mxu1 %v12306_v59 }
 0x411   :  { %10062 = vmatprep.mubr.f32.mxu1 %v12346_v11 }
 0x414   :  { %10063 = vmatmul.mubr.f32.gmra.mrb[46].mxu1 %v12338_v60 }
 0x415   :  { %10065 = vmatprep.mubr.f32.mxu1 %v12378_v23 }
 0x418   :  { %10066 = vmatmul.mubr.f32.gmra.mrb[48].mxu1 %v12370_v53 }
 0x419   :  { %10068 = vmatprep.mubr.f32.mxu1 %v12410_v19 }
 0x41c   :  { %10069 = vmatmul.mubr.f32.gmra.mrb[50].mxu1 %v12402_v55 }
 0x41d   :  { %10071 = vmatprep.mubr.f32.mxu1 %v12442_v29 }
 0x420   :  { %10072 = vmatmul.mubr.f32.gmra.mrb[52].mxu1 %v12434_v30 }
 0x421   :  { %10074 = vmatprep.mubr.f32.mxu1 %v12474_v9 }
 0x424   :  { %10075 = vmatmul.mubr.f32.gmra.mrb[54].mxu1 %v12466_v57 }
 0x425   :  { %10077 = vmatprep.mubr.f32.mxu1 %v12506_v44 }
 0x428   :  { %10078 = vmatmul.mubr.f32.gmra.mrb[56].mxu1 %v12498_v35 }
 0x429   :  { %10080 = vmatprep.mubr.f32.mxu1 %v12538_v51 }
 0x42c   :  { %10081 = vmatmul.mubr.f32.gmra.mrb[58].mxu1 %v12530_v6 }
 0x42d   :  { %10083 = vmatprep.mubr.f32.mxu1 %v12570_v17 }
 0x430   :  { %10084 = vmatmul.mubr.f32.gmra.mrb[60].mxu1 %v12562_v41 }
 0x431   :  { %10086 = vmatprep.mubr.f32.mxu1 %v12603_v61 }
 0x434   :  { %10087 = vmatmul.mubr.f32.gmra.mrb[62].mxu1 %v12593_v0 }
 0x435   :  { %10097 = vmatprep.mubr.f32.mxu1 %v12144_v45  ;;  %v14398_v45 = vld [vmem:[#allocation18_spill] sm:$0xff] }
 0x438   :  { %10098 = vmatmul.mubr.f32.vlgmr.msra.gmra.mrb[32].mxu1 %v12141_v58  ;;  %v14397_v58 = vld [vmem:[#allocation25_spill] sm:$0xff] }
 0x439   :  { %10100 = vmatprep.mubr.f32.mxu1 %v14394_v10  ;;  %10484 = vmatpush3.bf16.msra.mxu1 %v12905_v37 }
 0x43a   :  { %10486 = vmatprep.subr.bf16.mxu1 %v12991_v21 }
 0x43c   :  { %10101 = vmatmul.mubr.f32.gmra.mrb[34].mxu1 %v12161_v8  ;;  %v13175_v8 = vld [vmem:[%s13799_s4] ss:$0 sm:$0xff] }
 0x43d   :  { %10103 = vmatprep.mubr.f32.mxu1 %v12196_v42  ;;  %10488 = vmatpush3.bf16.msra.mxu1 %v12991_v21  ;;  %v13180_v42 = vld [vmem:[%s13800_s6] ss:$0 sm:$0xff] }
 0x43e   :  { %10490 = vmatprep.subr.bf16.mxu1 %v13160_v22 }
 0x440   :  { %10104 = vmatmul.mubr.f32.gmra.mrb[36].mxu1 %v14309_v4 }
 0x441   :  { %10106 = vmatprep.mubr.f32.mxu1 %v14397_v58 }
 0x444   :  { %10107 = vmatmul.mubr.f32.gmra.mrb[38].mxu1 %v14398_v45 }
 0x445   :  { %10109 = vmatprep.mubr.f32.mxu1 %v14399_v54  ;;  %v14404_v54 = vld [vmem:[#allocation34_spill] sm:$0xff] }
 0x448   :  { %10110 = vmatmul.mubr.f32.gmra.mrb[40].mxu1 %v14400_v62 }
 0x449   :  { %10112 = vmatprep.mubr.f32.mxu1 %v14401_v7 }
 0x44b   :  { %v9595_v4 = vpop.f32.mrb[0].mxu1  ;;  %v9931_v56 = vpop.f32.mrb[32].mxu0 }
 0x44c   :  { %v10537_v13 = vadd.f32 %v9595_v4, %v13175_v8  ;;  %v10569_v28 = vadd.f32 %v9931_v56, %v13180_v42  ;;  %v3760_v33 = vpop.f32.mrb[1].mxu1  ;;  %v5621_v47 = vpop.f32.mrb[33].mxu0  ;;  %10113 = vmatmul.mubr.f32.gmra.mrb[42].mxu1 %v14402_v63  ;;  %v14405_v4 = vld [vmem:[#allocation43_spill] sm:$0xff] }
 0x44d   :  { %v10538_v43 = vadd.f32 %v13175_v8, %v3760_v33  ;;  %v10570_v3 = vadd.f32 %v13180_v42, %v5621_v47  ;;  %10115 = vmatprep.mubr.f32.mxu1 %v14403_v15  ;;  %v14406_v15 = vld [vmem:[#allocation40_spill] sm:$0xff] }
 0x44e   :  { %3951 = vst.msk [vmem:[%s13801_s9 + $0x8] sm:$0xff] %vm78_vm0, %v10537_v13  ;;  %v8042_v2 = vpack.c.bf16 %v10569_v28, %v10569_v28 }
 0x44f   :  { %3950 = vst.msk [vmem:[%s13801_s9] sm:$0xff] %vm78_vm0, %v10538_v43  ;;  %v8041_v36 = vpack.c.bf16 %v10570_v3, %v10570_v3  ;;  %v9598_v16 = vpop.f32.mrb[2].mxu1  ;;  %v9934_v10 = vpop.f32.mrb[34].mxu0 }
 0x450   :  { %5941 = vst.msk [vmem:[%s13802_s10 + $0x4] sm:$0xf] %vm5939_vm1, %v8042_v2  ;;  %v10539_v38 = vadd.f32 %v9598_v16, %v13175_v8  ;;  %v10571_v32 = vadd.f32 %v9934_v10, %v13180_v42  ;;  %v3772_v58 = vpop.f32.mrb[3].mxu1  ;;  %v5633_v45 = vpop.f32.mrb[35].mxu0  ;;  %10116 = vmatmul.mubr.f32.gmra.mrb[44].mxu1 %v14404_v54  ;;  %v14407_v16 = vld [vmem:[#allocation49_spill] sm:$0xff] }
 0x451   :  { %5940 = vst.msk [vmem:[%s13802_s10] sm:$0xf] %vm5939_vm1, %v8041_v36  ;;  %v10540_v62 = vadd.f32 %v13175_v8, %v3772_v58  ;;  %v10572_v7 = vadd.f32 %v13180_v42, %v5633_v45  ;;  %10118 = vmatprep.mubr.f32.mxu1 %v14405_v4  ;;  %v14408_v4 = vld [vmem:[#allocation46_spill] sm:$0xff] }
 0x452   :  { %3953 = vst.msk [vmem:[%s13801_s9 + $0x18] sm:$0xff] %vm78_vm0, %v10539_v38  ;;  %v8044_v56 = vpack.c.bf16 %v10571_v32, %v10571_v32 }
 0x453   :  { %3952 = vst.msk [vmem:[%s13801_s9 + $0x10] sm:$0xff] %vm78_vm0, %v10540_v62  ;;  %v8043_v13 = vpack.c.bf16 %v10572_v7, %v10572_v7  ;;  %v9601_v28 = vpop.f32.mrb[4].mxu1  ;;  %v9937_v33 = vpop.f32.mrb[36].mxu0 }
 0x454   :  { %5943 = vst.msk [vmem:[%s13802_s10 + $0xc] sm:$0xf] %vm5939_vm1, %v8044_v56  ;;  %v10541_v47 = vadd.f32 %v9601_v28, %v13175_v8  ;;  %v10573_v63 = vadd.f32 %v9937_v33, %v13180_v42  ;;  %v3784_v43 = vpop.f32.mrb[5].mxu1  ;;  %v5645_v3 = vpop.f32.mrb[37].mxu0  ;;  %10119 = vmatmul.mubr.f32.gmra.mrb[46].mxu1 %v14406_v15  ;;  %v14409_v28 = vld [vmem:[#allocation55_spill] sm:$0xff] }
 0x455   :  { %5942 = vst.msk [vmem:[%s13802_s10 + $0x8] sm:$0xf] %vm5939_vm1, %v8043_v13  ;;  %v10542_v2 = vadd.f32 %v13175_v8, %v3784_v43  ;;  %v10574_v36 = vadd.f32 %v13180_v42, %v5645_v3  ;;  %10121 = vmatprep.mubr.f32.mxu1 %v14407_v16 }
 0x456   :  { %3955 = vst.msk [vmem:[%s13801_s9 + $0x28] sm:$0xff] %vm78_vm0, %v10541_v47  ;;  %v8046_v10 = vpack.c.bf16 %v10573_v63, %v10573_v63 }
 0x457   :  { %3954 = vst.msk [vmem:[%s13801_s9 + $0x20] sm:$0xff] %vm78_vm0, %v10542_v2  ;;  %v8045_v38 = vpack.c.bf16 %v10574_v36, %v10574_v36  ;;  %v9604_v32 = vpop.f32.mrb[6].mxu1  ;;  %v9940_v58 = vpop.f32.mrb[38].mxu0 }
 0x458   :  { %5945 = vst.msk [vmem:[%s13802_s10 + $0x14] sm:$0xf] %vm5939_vm1, %v8046_v10  ;;  %v10543_v45 = vadd.f32 %v9604_v32, %v13175_v8  ;;  %v10575_v54 = vadd.f32 %v9940_v58, %v13180_v42  ;;  %v3796_v62 = vpop.f32.mrb[7].mxu1  ;;  %v5657_v7 = vpop.f32.mrb[39].mxu0  ;;  %10122 = vmatmul.mubr.f32.gmra.mrb[48].mxu1 %v14408_v4 }
 0x459   :  { %5944 = vst.msk [vmem:[%s13802_s10 + $0x10] sm:$0xf] %vm5939_vm1, %v8045_v38  ;;  %v10544_v56 = vadd.f32 %v13175_v8, %v3796_v62  ;;  %v10576_v13 = vadd.f32 %v13180_v42, %v5657_v7  ;;  %10124 = vmatprep.mubr.f32.mxu1 %v14409_v28 }
 0x45a   :  { %3957 = vst.msk [vmem:[%s13801_s9 + $0x38] sm:$0xff] %vm78_vm0, %v10543_v45  ;;  %v8048_v33 = vpack.c.bf16 %v10575_v54, %v10575_v54 }
 0x45b   :  { %3956 = vst.msk [vmem:[%s13801_s9 + $0x30] sm:$0xff] %vm78_vm0, %v10544_v56  ;;  %v8047_v47 = vpack.c.bf16 %v10576_v13, %v10576_v13  ;;  %v9607_v63 = vpop.f32.mrb[8].mxu1  ;;  %v9943_v43 = vpop.f32.mrb[40].mxu0  ;;  %v14410_v56 = vld [vmem:[#allocation67_spill] sm:$0xff] }
 0x45c   :  { %5947 = vst.msk [vmem:[%s13802_s10 + $0x1c] sm:$0xf] %vm5939_vm1, %v8048_v33  ;;  %v10545_v3 = vadd.f32 %v9607_v63, %v13175_v8  ;;  %v10577_v15 = vadd.f32 %v9943_v43, %v13180_v42  ;;  %v3808_v2 = vpop.f32.mrb[9].mxu1  ;;  %v5669_v36 = vpop.f32.mrb[41].mxu0  ;;  %10125 = vmatmul.mubr.f32.gmra.mrb[50].mxu1 %v14323_v5 }
 0x45d   :  { %5946 = vst.msk [vmem:[%s13802_s10 + $0x18] sm:$0xf] %vm5939_vm1, %v8047_v47  ;;  %v10546_v16 = vadd.f32 %v13175_v8, %v3808_v2  ;;  %v10578_v10 = vadd.f32 %v13180_v42, %v5669_v36  ;;  %10127 = vmatprep.mubr.f32.mxu1 %v14324_v48 }
 0x45e   :  { %3959 = vst.msk [vmem:[%s13801_s9 + $0x48] sm:$0xff] %vm78_vm0, %v10545_v3  ;;  %v8050_v38 = vpack.c.bf16 %v10577_v15, %v10577_v15  ;;  %v14411_v15 = vld [vmem:[#allocation64_spill] sm:$0xff] }
 0x45f   :  { %3958 = vst.msk [vmem:[%s13801_s9 + $0x40] sm:$0xff] %vm78_vm0, %v10546_v16  ;;  %v8049_v5 = vpack.c.bf16 %v10578_v10, %v10578_v10  ;;  %v9610_v32 = vpop.f32.mrb[10].mxu1  ;;  %v9946_v58 = vpop.f32.mrb[42].mxu0  ;;  %v14412_v16 = vld [vmem:[#allocation73_spill] sm:$0xff] }
 0x460   :  { %5949 = vst.msk [vmem:[%s13802_s10 + $0x24] sm:$0xf] %vm5939_vm1, %v8050_v38  ;;  %v10547_v48 = vadd.f32 %v9610_v32, %v13175_v8  ;;  %v10579_v45 = vadd.f32 %v9946_v58, %v13180_v42  ;;  %v3820_v54 = vpop.f32.mrb[11].mxu1  ;;  %v5681_v62 = vpop.f32.mrb[43].mxu0  ;;  %10128 = vmatmul.mubr.f32.gmra.mrb[52].mxu1 %v14325_v12 }
 0x461   :  { %5948 = vst.msk [vmem:[%s13802_s10 + $0x20] sm:$0xf] %vm5939_vm1, %v8049_v5  ;;  %v10548_v7 = vadd.f32 %v13175_v8, %v3820_v54  ;;  %v10580_v4 = vadd.f32 %v13180_v42, %v5681_v62  ;;  %10130 = vmatprep.mubr.f32.mxu1 %v14410_v56  ;;  %v14413_v62 = vld [vmem:[#allocation70_spill] sm:$0xff]  ;;  %v14414_v56 = vld [vmem:[#allocation79_spill] sm:$0xff] }
 0x462   :  { %3961 = vst.msk [vmem:[%s13801_s9 + $0x58] sm:$0xff] %vm78_vm0, %v10547_v48  ;;  %v8052_v13 = vpack.c.bf16 %v10579_v45, %v10579_v45 }
 0x463   :  { %3960 = vst.msk [vmem:[%s13801_s9 + $0x50] sm:$0xff] %vm78_vm0, %v10548_v7  ;;  %v8051_v12 = vpack.c.bf16 %v10580_v4, %v10580_v4  ;;  %v9613_v28 = vpop.f32.mrb[12].mxu1  ;;  %v9949_v33 = vpop.f32.mrb[44].mxu0 }
 0x464   :  { %5951 = vst.msk [vmem:[%s13802_s10 + $0x2c] sm:$0xf] %vm5939_vm1, %v8052_v13  ;;  %v10549_v47 = vadd.f32 %v9613_v28, %v13175_v8  ;;  %v10581_v63 = vadd.f32 %v9949_v33, %v13180_v42  ;;  %v3832_v43 = vpop.f32.mrb[13].mxu1  ;;  %v5693_v3 = vpop.f32.mrb[45].mxu0  ;;  %10131 = vmatmul.mubr.f32.gmra.mrb[54].mxu1 %v14411_v15  ;;  %v14415_v15 = vld [vmem:[#allocation76_spill] sm:$0xff] }
 0x465   :  { %5950 = vst.msk [vmem:[%s13802_s10 + $0x28] sm:$0xf] %vm5939_vm1, %v8051_v12  ;;  %v10550_v2 = vadd.f32 %v13175_v8, %v3832_v43  ;;  %v10582_v36 = vadd.f32 %v13180_v42, %v5693_v3  ;;  %10133 = vmatprep.mubr.f32.mxu1 %v14412_v16  ;;  %v14416_v16 = vld [vmem:[#allocation85_spill] sm:$0xff] }
 0x466   :  { %3963 = vst.msk [vmem:[%s13801_s9 + $0x68] sm:$0xff] %vm78_vm0, %v10549_v47  ;;  %v8054_v10 = vpack.c.bf16 %v10581_v63, %v10581_v63 }
 0x467   :  { %3962 = vst.msk [vmem:[%s13801_s9 + $0x60] sm:$0xff] %vm78_vm0, %v10550_v2  ;;  %v8053_v38 = vpack.c.bf16 %v10582_v36, %v10582_v36  ;;  %v9616_v5 = vpop.f32.mrb[14].mxu1  ;;  %v9952_v32 = vpop.f32.mrb[46].mxu0 }
 0x468   :  { %5953 = vst.msk [vmem:[%s13802_s10 + $0x34] sm:$0xf] %vm5939_vm1, %v8054_v10  ;;  %v10551_v58 = vadd.f32 %v9616_v5, %v13175_v8  ;;  %v10583_v48 = vadd.f32 %v9952_v32, %v13180_v42  ;;  %v3844_v45 = vpop.f32.mrb[15].mxu1  ;;  %v5705_v54 = vpop.f32.mrb[47].mxu0  ;;  %10134 = vmatmul.mubr.f32.gmra.mrb[56].mxu1 %v14413_v62  ;;  %v14417_v62 = vld [vmem:[#allocation82_spill] sm:$0xff] }
 0x469   :  { %5952 = vst.msk [vmem:[%s13802_s10 + $0x30] sm:$0xf] %vm5939_vm1, %v8053_v38  ;;  %v10552_v7 = vadd.f32 %v13175_v8, %v3844_v45  ;;  %v10584_v4 = vadd.f32 %v13180_v42, %v5705_v54  ;;  %10136 = vmatprep.mubr.f32.mxu1 %v14414_v56  ;;  %v14418_v56 = vld [vmem:[#allocation91_spill] sm:$0xff] }
 0x46a   :  { %3965 = vst.msk [vmem:[%s13801_s9 + $0x78] sm:$0xff] %vm78_vm0, %v10551_v58  ;;  %v8056_v13 = vpack.c.bf16 %v10583_v48, %v10583_v48 }
 0x46b   :  { %3964 = vst.msk [vmem:[%s13801_s9 + $0x70] sm:$0xff] %vm78_vm0, %v10552_v7  ;;  %v8055_v12 = vpack.c.bf16 %v10584_v4, %v10584_v4  ;;  %v9619_v28 = vpop.f32.mrb[16].mxu1  ;;  %v9955_v33 = vpop.f32.mrb[48].mxu0 }
 0x46c   :  { %5955 = vst.msk [vmem:[%s13802_s10 + $0x3c] sm:$0xf] %vm5939_vm1, %v8056_v13  ;;  %v10553_v47 = vadd.f32 %v9619_v28, %v13175_v8  ;;  %v10585_v63 = vadd.f32 %v9955_v33, %v13180_v42  ;;  %v3856_v43 = vpop.f32.mrb[17].mxu1  ;;  %v5717_v3 = vpop.f32.mrb[49].mxu0  ;;  %10137 = vmatmul.mubr.f32.gmra.mrb[58].mxu1 %v14415_v15  ;;  %v14419_v15 = vld [vmem:[#allocation89_spill] sm:$0xff] }
 0x46d   :  { %5954 = vst.msk [vmem:[%s13802_s10 + $0x38] sm:$0xf] %vm5939_vm1, %v8055_v12  ;;  %v10554_v2 = vadd.f32 %v13175_v8, %v3856_v43  ;;  %v10586_v36 = vadd.f32 %v13180_v42, %v5717_v3  ;;  %10139 = vmatprep.mubr.f32.mxu1 %v14416_v16  ;;  %v14420_v16 = vld [vmem:[#allocation7_spill] sm:$0xff] }
 0x46e   :  { %3967 = vst.msk [vmem:[%s13801_s9 + $0x88] sm:$0xff] %vm78_vm0, %v10553_v47  ;;  %v8058_v10 = vpack.c.bf16 %v10585_v63, %v10585_v63 }
 0x46f   :  { %3966 = vst.msk [vmem:[%s13801_s9 + $0x80] sm:$0xff] %vm78_vm0, %v10554_v2  ;;  %v8057_v38 = vpack.c.bf16 %v10586_v36, %v10586_v36  ;;  %v9622_v5 = vpop.f32.mrb[18].mxu1  ;;  %v9958_v32 = vpop.f32.mrb[50].mxu0 }
 0x470   :  { %5957 = vst.msk [vmem:[%s13802_s10 + $0x44] sm:$0xf] %vm5939_vm1, %v8058_v10  ;;  %v10555_v58 = vadd.f32 %v9622_v5, %v13175_v8  ;;  %v10587_v48 = vadd.f32 %v9958_v32, %v13180_v42  ;;  %v3868_v45 = vpop.f32.mrb[19].mxu1  ;;  %v5729_v54 = vpop.f32.mrb[51].mxu0  ;;  %10140 = vmatmul.mubr.f32.gmra.mrb[60].mxu1 %v14417_v62  ;;  %v14422_v5 = vand.u32 4294901760, %v13037_v20 }
 0x471   :  { %5956 = vst.msk [vmem:[%s13802_s10 + $0x40] sm:$0xf] %vm5939_vm1, %v8057_v38  ;;  %v10556_v7 = vadd.f32 %v13175_v8, %v3868_v45  ;;  %v10588_v4 = vadd.f32 %v13180_v42, %v5729_v54  ;;  %10142 = vmatprep.mubr.f32.mxu1 %v14418_v56  ;;  %v14421_v38 = vand.u32 4294901760, %v13035_v34  ;;  %v14423_v56 = vld [vmem:[#allocation10_spill] sm:$0xff] }
 0x472   :  { %3969 = vst.msk [vmem:[%s13801_s9 + $0x98] sm:$0xff] %vm78_vm0, %v10555_v58  ;;  %v8060_v13 = vpack.c.bf16 %v10587_v48, %v10587_v48 }
 0x473   :  { %3968 = vst.msk [vmem:[%s13801_s9 + $0x90] sm:$0xff] %vm78_vm0, %v10556_v7  ;;  %v8059_v12 = vpack.c.bf16 %v10588_v4, %v10588_v4  ;;  %v9625_v28 = vpop.f32.mrb[20].mxu1  ;;  %v9961_v33 = vpop.f32.mrb[52].mxu0  ;;  %v10493_v32 = vpack.c.bf16 %v14422_v5, %v14421_v38 }
 0x474   :  { %5959 = vst.msk [vmem:[%s13802_s10 + $0x4c] sm:$0xf] %vm5939_vm1, %v8060_v13  ;;  %v10557_v47 = vadd.f32 %v9625_v28, %v13175_v8  ;;  %v10589_v63 = vadd.f32 %v9961_v33, %v13180_v42  ;;  %v3880_v43 = vpop.f32.mrb[21].mxu1  ;;  %v5741_v3 = vpop.f32.mrb[53].mxu0  ;;  %10143 = vmatmul.mubr.f32.gmra.mrb[62].mxu1 %v14419_v15 }
 0x475   :  { %5958 = vst.msk [vmem:[%s13802_s10 + $0x48] sm:$0xf] %vm5939_vm1, %v8059_v12  ;;  %v10558_v2 = vadd.f32 %v13175_v8, %v3880_v43  ;;  %v10590_v36 = vadd.f32 %v13180_v42, %v5741_v3  ;;  %10153 = vmatprep.mubr.f32.mxu1 %v14420_v16  ;;  %v14424_v43 = vld [vmem:[#allocation13_spill] sm:$0xff] }
 0x476   :  { %3971 = vst.msk [vmem:[%s13801_s9 + $0xa8] sm:$0xff] %vm78_vm0, %v10557_v47  ;;  %v8062_v10 = vpack.c.bf16 %v10589_v63, %v10589_v63 }
 0x477   :  { %3970 = vst.msk [vmem:[%s13801_s9 + $0xa0] sm:$0xff] %vm78_vm0, %v10558_v2  ;;  %v8061_v58 = vpack.c.bf16 %v10590_v36, %v10590_v36  ;;  %v9628_v48 = vpop.f32.mrb[22].mxu1  ;;  %v9964_v45 = vpop.f32.mrb[54].mxu0  ;;  %v14425_v2 = vld [vmem:[#allocation17_spill] sm:$0xff] }
 0x478   :  { %5961 = vst.msk [vmem:[%s13802_s10 + $0x54] sm:$0xf] %vm5939_vm1, %v8062_v10  ;;  %v10559_v54 = vadd.f32 %v9628_v48, %v13175_v8  ;;  %v10591_v34 = vadd.f32 %v9964_v45, %v13180_v42  ;;  %v3892_v62 = vpop.f32.mrb[23].mxu1  ;;  %v5753_v20 = vpop.f32.mrb[55].mxu0  ;;  %10154 = vmatmul.mubr.f32.vlgmr.msra.gmra.mrb[32].mxu1 %v14334_v14  ;;  %v14426_v45 = vld [vmem:[#allocation23_spill] sm:$0xff] }
 0x479   :  { %5960 = vst.msk [vmem:[%s13802_s10 + $0x50] sm:$0xf] %vm5939_vm1, %v8061_v58  ;;  %v10560_v7 = vadd.f32 %v13175_v8, %v3892_v62  ;;  %v10592_v4 = vadd.f32 %v13180_v42, %v5753_v20  ;;  %10156 = vmatprep.mubr.f32.mxu1 %v14423_v56  ;;  %10492 = vmatpush3.bf16.msra.mxu1 %v13160_v22  ;;  %v14427_v62 = vld [vmem:[#allocation29_spill] sm:$0xff] }
 0x47a   :  { %3973 = vst.msk [vmem:[%s13801_s9 + $0xb8] sm:$0xff] %vm78_vm0, %v10559_v54  ;;  %v8064_v13 = vpack.c.bf16 %v10591_v34, %v10591_v34  ;;  %10494 = vmatprep.subr.bf16.mxu1 %v10493_v32 }
 0x47b   :  { %3972 = vst.msk [vmem:[%s13801_s9 + $0xb0] sm:$0xff] %vm78_vm0, %v10560_v7  ;;  %v8063_v14 = vpack.c.bf16 %v10592_v4, %v10592_v4  ;;  %v9631_v12 = vpop.f32.mrb[24].mxu1  ;;  %v9967_v28 = vpop.f32.mrb[56].mxu0 }
 0x47c   :  { %5963 = vst.msk [vmem:[%s13802_s10 + $0x5c] sm:$0xf] %vm5939_vm1, %v8064_v13  ;;  %v10561_v22 = vadd.f32 %v9631_v12, %v13175_v8  ;;  %v10593_v33 = vadd.f32 %v9967_v28, %v13180_v42  ;;  %v3904_v47 = vpop.f32.mrb[25].mxu1  ;;  %v5765_v63 = vpop.f32.mrb[57].mxu0  ;;  %10157 = vmatmul.mubr.f32.gmra.mrb[34].mxu1 %v14424_v43 }
 0x47d   :  { %5962 = vst.msk [vmem:[%s13802_s10 + $0x58] sm:$0xf] %vm5939_vm1, %v8063_v14  ;;  %v10562_v3 = vadd.f32 %v13175_v8, %v3904_v47  ;;  %v10594_v15 = vadd.f32 %v13180_v42, %v5765_v63  ;;  %10159 = vmatprep.mubr.f32.mxu1 %v14425_v2  ;;  %10496 = vmatpush3.bf16.msra.mxu1 %v10493_v32  ;;  %v14429_v63 = vld [vmem:[#allocation22_spill] sm:$0xff] }
 0x47e   :  { %3975 = vst.msk [vmem:[%s13801_s9 + $0xc8] sm:$0xff] %vm78_vm0, %v10561_v22  ;;  %v8066_v36 = vpack.c.bf16 %v10593_v33, %v10593_v33  ;;  %10498 = vmatprep.subr.bf16.mxu1 %v12905_v37  ;;  %v14428_v22 = vld [vmem:[#allocation16_spill] sm:$0xff] }
 0x47f   :  { %3974 = vst.msk [vmem:[%s13801_s9 + $0xc0] sm:$0xff] %vm78_vm0, %v10562_v3  ;;  %v8065_v16 = vpack.c.bf16 %v10594_v15, %v10594_v15  ;;  %v9634_v10 = vpop.f32.mrb[26].mxu1  ;;  %v9970_v38 = vpop.f32.mrb[58].mxu0 }
 0x480   :  { %5965 = vst.msk [vmem:[%s13802_s10 + $0x64] sm:$0xf] %vm5939_vm1, %v8066_v36  ;;  %v10563_v5 = vadd.f32 %v9634_v10, %v13175_v8  ;;  %v10595_v32 = vadd.f32 %v9970_v38, %v13180_v42  ;;  %v3916_v58 = vpop.f32.mrb[27].mxu1  ;;  %v5777_v48 = vpop.f32.mrb[59].mxu0  ;;  %10160 = vmatmul.mubr.f32.gmra.mrb[36].mxu1 %v14426_v45 }
 0x481   :  { %5964 = vst.msk [vmem:[%s13802_s10 + $0x60] sm:$0xf] %vm5939_vm1, %v8065_v16  ;;  %v10564_v54 = vadd.f32 %v13175_v8, %v3916_v58  ;;  %v10596_v34 = vadd.f32 %v13180_v42, %v5777_v48  ;;  %10162 = vmatprep.mubr.f32.mxu1 %v14427_v62  ;;  %v14431_v48 = vld [vmem:[#allocation33_spill] sm:$0xff] }
 0x482   :  { %3977 = vst.msk [vmem:[%s13801_s9 + $0xd8] sm:$0xff] %vm78_vm0, %v10563_v5  ;;  %v8068_v20 = vpack.c.bf16 %v10595_v32, %v10595_v32  ;;  %v14430_v5 = vld [vmem:[#allocation28_spill] sm:$0xff]  ;;  %v14435_v62 = vld [vmem:[#allocation45_spill] sm:$0xff] }
 0x483   :  { %3976 = vst.msk [vmem:[%s13801_s9 + $0xd0] sm:$0xff] %vm78_vm0, %v10564_v54  ;;  %v8067_v7 = vpack.c.bf16 %v10596_v34, %v10596_v34  ;;  %v9637_v4 = vpop.f32.mrb[28].mxu1  ;;  %v9973_v56 = vpop.f32.mrb[60].mxu0  ;;  %v14434_v34 = vld [vmem:[#allocation42_spill] sm:$0xff] }
 0x484   :  { %5967 = vst.msk [vmem:[%s13802_s10 + $0x6c] sm:$0xf] %vm5939_vm1, %v8068_v20  ;;  %v10565_v13 = vadd.f32 %v9637_v4, %v13175_v8  ;;  %v10597_v14 = vadd.f32 %v9973_v56, %v13180_v42  ;;  %v3928_v12 = vpop.f32.mrb[29].mxu1  ;;  %v5789_v28 = vpop.f32.mrb[61].mxu0  ;;  %10163 = vmatmul.mubr.f32.gmra.mrb[38].mxu1 %v14428_v22  ;;  %v14436_v20 = vld [vmem:[#allocation48_spill] sm:$0xff]  ;;  %v14438_v4 = vld [vmem:[#allocation54_spill] sm:$0xff] }
 0x485   :  { %5966 = vst.msk [vmem:[%s13802_s10 + $0x68] sm:$0xf] %vm5939_vm1, %v8067_v7  ;;  %v10566_v33 = vadd.f32 %v13175_v8, %v3928_v12  ;;  %v10598_v47 = vadd.f32 %v13180_v42, %v5789_v28  ;;  %10165 = vmatprep.mubr.f32.mxu1 %v14429_v63  ;;  %v14437_v7 = vld [vmem:[#allocation51_spill] sm:$0xff]  ;;  %v14439_v56 = vld [vmem:[#allocation57_spill] sm:$0xff]  ;;  %v14442_v12 = vld [vmem:[#allocation66_spill] sm:$0xff] }
 0x486   :  { %3979 = vst.msk [vmem:[%s13801_s9 + $0xe8] sm:$0xff] %vm78_vm0, %v10565_v13  ;;  %v8070_v43 = vpack.c.bf16 %v10597_v14, %v10597_v14  ;;  %v14440_v13 = vld [vmem:[#allocation60_spill] sm:$0xff]  ;;  %v14441_v14 = vld [vmem:[#allocation63_spill] sm:$0xff]  ;;  %v14443_v28 = vld [vmem:[#allocation69_spill] sm:$0xff] }
 0x487   :  { %3978 = vst.msk [vmem:[%s13801_s9 + $0xe0] sm:$0xff] %vm78_vm0, %v10566_v33  ;;  %v8069_v3 = vpack.c.bf16 %v10598_v47, %v10598_v47  ;;  %v9640_v15 = vpop.f32.mrb[30].mxu1  ;;  %v9976_v2 = vpop.f32.mrb[62].mxu0  ;;  %v14444_v22 = vld [vmem:[#allocation72_spill] sm:$0xff]  ;;  %v14445_v33 = vld [vmem:[#allocation75_spill] sm:$0xff]  ;;  %v14446_v47 = vld [vmem:[#allocation78_spill] sm:$0xff] }
 0x488   :  { %5969 = vst.msk [vmem:[%s13802_s10 + $0x74] sm:$0xf] %vm5939_vm1, %v8070_v43  ;;  %v10567_v36 = vadd.f32 %v9640_v15, %v13175_v8  ;;  %v10599_v16 = vadd.f32 %v9976_v2, %v13180_v42  ;;  %v3940_v10 = vpop.f32.mrb[31].mxu1  ;;  %v5801_v38 = vpop.f32.mrb[63].mxu0  ;;  %10166 = vmatmul.mubr.f32.gmra.mrb[40].mxu1 %v14430_v5  ;;  %v14447_v63 = vld [vmem:[#allocation81_spill] sm:$0xff]  ;;  %v14448_v43 = vld [vmem:[#allocation84_spill] sm:$0xff] }
 0x489   :  { %5968 = vst.msk [vmem:[%s13802_s10 + $0x70] sm:$0xf] %vm5939_vm1, %v8069_v3  ;;  %v10568_v32 = vadd.f32 %v13175_v8, %v3940_v10  ;;  %v10600_v58 = vadd.f32 %v13180_v42, %v5801_v38  ;;  %10168 = vmatprep.mubr.f32.mxu1 %v14431_v48  ;;  %v14432_v8 = vld [vmem:[#allocation36_spill] sm:$0xff]  ;;  %v14433_v42 = vld [vmem:[#allocation39_spill] sm:$0xff]  ;;  %v14450_v15 = vld [vmem:[#allocation86_spill] sm:$0xff] }
 0x48a   :  { %3981 = vst.msk [vmem:[%s13801_s9 + $0xf8] sm:$0xff] %vm78_vm0, %v10567_v36  ;;  %v8072_v45 = vpack.c.bf16 %v10599_v16, %v10599_v16  ;;  %v14449_v3 = vld [vmem:[#allocation88_spill] sm:$0xff]  ;;  %v14451_v2 = vld [vmem:[#allocation93_spill] sm:$0xff] }
 0x48b   :  { %3980 = vst.msk [vmem:[%s13801_s9 + $0xf0] sm:$0xff] %vm78_vm0, %v10568_v32  ;;  %v8071_v54 = vpack.c.bf16 %v10600_v58, %v10600_v58  ;;  %v14452_v36 = vld [vmem:[#allocation92_spill] sm:$0xff] }
 0x48c   :  { %5971 = vst.msk [vmem:[%s13802_s10 + $0x7c] sm:$0xf] %vm5939_vm1, %v8072_v45  ;;  %10169 = vmatmul.mubr.f32.gmra.mrb[42].mxu1 %v14432_v8 }
 0x48d   :  { %5970 = vst.msk [vmem:[%s13802_s10 + $0x78] sm:$0xf] %vm5939_vm1, %v8071_v54  ;;  %10171 = vmatprep.mubr.f32.mxu1 %v14433_v42 }
 0x490   :  { %10172 = vmatmul.mubr.f32.gmra.mrb[44].mxu1 %v14434_v34 }
 0x491   :  { %10174 = vmatprep.mubr.f32.mxu1 %v14435_v62 }
 0x494   :  { %10175 = vmatmul.mubr.f32.gmra.mrb[46].mxu1 %v14436_v20 }
 0x495   :  { %10177 = vmatprep.mubr.f32.mxu1 %v14437_v7 }
 0x498   :  { %10178 = vmatmul.mubr.f32.gmra.mrb[48].mxu1 %v14438_v4 }
 0x499   :  { %10180 = vmatprep.mubr.f32.mxu1 %v14439_v56 }
 0x49c   :  { %10181 = vmatmul.mubr.f32.gmra.mrb[50].mxu1 %v14440_v13 }
 0x49d   :  { %10183 = vmatprep.mubr.f32.mxu1 %v14441_v14 }
 0x4a0   :  { %10184 = vmatmul.mubr.f32.gmra.mrb[52].mxu1 %v14442_v12 }
 0x4a1   :  { %10186 = vmatprep.mubr.f32.mxu1 %v14443_v28 }
 0x4a4   :  { %10187 = vmatmul.mubr.f32.gmra.mrb[54].mxu1 %v14444_v22 }
 0x4a5   :  { %10189 = vmatprep.mubr.f32.mxu1 %v14445_v33 }
 0x4a8   :  { %10190 = vmatmul.mubr.f32.gmra.mrb[56].mxu1 %v14446_v47 }
 0x4a9   :  { %10192 = vmatprep.mubr.f32.mxu1 %v14447_v63 }
 0x4ac   :  { %10193 = vmatmul.mubr.f32.gmra.mrb[58].mxu1 %v14448_v43 }
 0x4ad   :  { %10195 = vmatprep.mubr.f32.mxu1 %v14449_v3 }
 0x4b0   :  { %10196 = vmatmul.mubr.f32.gmra.mrb[60].mxu1 %v14450_v15 }
 0x4b1   :  { %10198 = vmatprep.mubr.f32.mxu1 %v14451_v2 }
 0x4b4   :  { %10199 = vmatmul.mubr.f32.gmra.mrb[62].mxu1 %v14452_v36 }
 0x4b5   :  { %10209 = vmatprep.mubr.f32.mxu1 %v12138_v39 }
 0x4b8   :  { %10210 = vmatmul.mubr.f32.vlgmr.msra.gmra.mrb[32].mxu1 %v12134_v27 }
 0x4b9   :  { %10212 = vmatprep.mubr.f32.mxu1 %v12155_v49  ;;  %10500 = vmatpush3.bf16.msra.mxu1 %v12905_v37 }
 0x4ba   :  { %10502 = vmatprep.subr.bf16.mxu1 %v12991_v21 }
 0x4bc   :  { %10213 = vmatmul.mubr.f32.gmra.mrb[34].mxu1 %v12148_v24 }
 0x4bd   :  { %10215 = vmatprep.mubr.f32.mxu1 %v12180_v26  ;;  %10504 = vmatpush3.bf16.msra.mxu1 %v12991_v21 }
 0x4c0   :  { %10216 = vmatmul.mubr.f32.gmra.mrb[36].mxu1 %v12172_v1 }
 0x4c1   :  { %10218 = vmatprep.mubr.f32.mxu1 %v12212_v46 }
 0x4c4   :  { %10219 = vmatmul.mubr.f32.gmra.mrb[38].mxu1 %v12204_v52 }
 0x4c5   :  { %10221 = vmatprep.mubr.f32.mxu1 %v12247_v18 }
 0x4c8   :  { %10222 = vmatmul.mubr.f32.gmra.mrb[40].mxu1 %v12239_v40 }
 0x4c9   :  { %10224 = vmatprep.mubr.f32.mxu1 %v12282_v25 }
 0x4cc   :  { %10225 = vmatmul.mubr.f32.gmra.mrb[42].mxu1 %v12274_v50 }
 0x4cd   :  { %10227 = vmatprep.mubr.f32.mxu1 %v12314_v31 }
 0x4d0   :  { %10228 = vmatmul.mubr.f32.gmra.mrb[44].mxu1 %v12306_v59 }
 0x4d1   :  { %10230 = vmatprep.mubr.f32.mxu1 %v12346_v11 }
 0x4d4   :  { %10231 = vmatmul.mubr.f32.gmra.mrb[46].mxu1 %v12338_v60 }
 0x4d5   :  { %10233 = vmatprep.mubr.f32.mxu1 %v12378_v23 }
 0x4d8   :  { %10234 = vmatmul.mubr.f32.gmra.mrb[48].mxu1 %v12370_v53 }
 0x4d9   :  { %10236 = vmatprep.mubr.f32.mxu1 %v12410_v19 }
 0x4dc   :  { %10237 = vmatmul.mubr.f32.gmra.mrb[50].mxu1 %v12402_v55 }
 0x4dd   :  { %10239 = vmatprep.mubr.f32.mxu1 %v12442_v29 }
 0x4e0   :  { %10240 = vmatmul.mubr.f32.gmra.mrb[52].mxu1 %v12434_v30 }
 0x4e1   :  { %10242 = vmatprep.mubr.f32.mxu1 %v12474_v9 }
 0x4e4   :  { %10243 = vmatmul.mubr.f32.gmra.mrb[54].mxu1 %v12466_v57 }
 0x4e5   :  { %10245 = vmatprep.mubr.f32.mxu1 %v12506_v44 }
 0x4e8   :  { %10246 = vmatmul.mubr.f32.gmra.mrb[56].mxu1 %v12498_v35 }
 0x4e9   :  { %10248 = vmatprep.mubr.f32.mxu1 %v12538_v51 }
 0x4ec   :  { %10249 = vmatmul.mubr.f32.gmra.mrb[58].mxu1 %v12530_v6 }
 0x4ed   :  { %10251 = vmatprep.mubr.f32.mxu1 %v12570_v17 }
 0x4f0   :  { %10252 = vmatmul.mubr.f32.gmra.mrb[60].mxu1 %v12562_v41 }
 0x4f1   :  { %10254 = vmatprep.mubr.f32.mxu1 %v12603_v61 }
 0x4f4   :  { %10255 = vmatmul.mubr.f32.gmra.mrb[62].mxu1 %v12593_v0 }
 0x4f5   :  { %10265 = vmatprep.mubr.f32.mxu1 %v12138_v39 }
 0x4f8   :  { %10266 = vmatmul.mubr.f32.vlgmr.msra.gmra.mrb[32].mxu1 %v12134_v27  ;;  %v13631_v27 = vld [vmem:[%s13803_s8] ss:$0 sm:$0xff] }
 0x4f9   :  { %10268 = vmatprep.mubr.f32.mxu1 %v12155_v49 }
 0x4fc   :  { %10269 = vmatmul.mubr.f32.gmra.mrb[34].mxu1 %v12148_v24 }
 0x4fd   :  { %10271 = vmatprep.mubr.f32.mxu1 %v12180_v26 }
 0x500   :  { %10272 = vmatmul.mubr.f32.gmra.mrb[36].mxu1 %v12172_v1 }
 0x501   :  { %10274 = vmatprep.mubr.f32.mxu1 %v12212_v46 }
 0x504   :  { %10275 = vmatmul.mubr.f32.gmra.mrb[38].mxu1 %v12204_v52 }
 0x505   :  { %10277 = vmatprep.mubr.f32.mxu1 %v12247_v18 }
 0x508   :  { %10278 = vmatmul.mubr.f32.gmra.mrb[40].mxu1 %v12239_v40 }
 0x509   :  { %10280 = vmatprep.mubr.f32.mxu1 %v12282_v25 }
 0x50c   :  { %10281 = vmatmul.mubr.f32.gmra.mrb[42].mxu1 %v12274_v50 }
 0x50d   :  { %10283 = vmatprep.mubr.f32.mxu1 %v12314_v31 }
 0x510   :  { %10284 = vmatmul.mubr.f32.gmra.mrb[44].mxu1 %v12306_v59 }
 0x511   :  { %10286 = vmatprep.mubr.f32.mxu1 %v12346_v11 }
 0x514   :  { %10287 = vmatmul.mubr.f32.gmra.mrb[46].mxu1 %v12338_v60 }
 0x515   :  { %10289 = vmatprep.mubr.f32.mxu1 %v12378_v23 }
 0x518   :  { %10290 = vmatmul.mubr.f32.gmra.mrb[48].mxu1 %v12370_v53 }
 0x519   :  { %10292 = vmatprep.mubr.f32.mxu1 %v12410_v19 }
 0x51c   :  { %10293 = vmatmul.mubr.f32.gmra.mrb[50].mxu1 %v12402_v55 }
 0x51d   :  { %10295 = vmatprep.mubr.f32.mxu1 %v12442_v29 }
 0x520   :  { %10296 = vmatmul.mubr.f32.gmra.mrb[52].mxu1 %v12434_v30 }
 0x521   :  { %10298 = vmatprep.mubr.f32.mxu1 %v12474_v9 }
 0x524   :  { %10299 = vmatmul.mubr.f32.gmra.mrb[54].mxu1 %v12466_v57 }
 0x525   :  { %10301 = vmatprep.mubr.f32.mxu1 %v12506_v44 }
 0x528   :  { %10302 = vmatmul.mubr.f32.gmra.mrb[56].mxu1 %v12498_v35 }
 0x529   :  { %10304 = vmatprep.mubr.f32.mxu1 %v12538_v51 }
 0x52c   :  { %10305 = vmatmul.mubr.f32.gmra.mrb[58].mxu1 %v12530_v6 }
 0x52d   :  { %10307 = vmatprep.mubr.f32.mxu1 %v12570_v17 }
 0x530   :  { %10308 = vmatmul.mubr.f32.gmra.mrb[60].mxu1 %v12562_v41 }
 0x531   :  { %10310 = vmatprep.mubr.f32.mxu1 %v12603_v61 }
 0x534   :  { %10311 = vmatmul.mubr.f32.gmra.mrb[62].mxu1 %v12593_v0 }
 0x5cb   :  { %v10267_v39 = vpop.f32.mrb[32].mxu1 }
 0x5cc   :  { %v10601_v24 = vadd.f32 %v10267_v39, %v13631_v27  ;;  %v7611_v49 = vpop.f32.mrb[33].mxu1 }
 0x5cd   :  { %v10602_v1 = vadd.f32 %v13631_v27, %v7611_v49 }
 0x5ce   :  { %v8074_v26 = vpack.c.bf16 %v10601_v24, %v10601_v24 }
 0x5cf   :  { %v8073_v52 = vpack.c.bf16 %v10602_v1, %v10602_v1  ;;  %v10270_v46 = vpop.f32.mrb[34].mxu1 }
 0x5d0   :  { %7930 = vst.msk [vmem:[%s13804_s11 + $0x4] sm:$0xf] %vm5939_vm1, %v8074_v26  ;;  %v10603_v40 = vadd.f32 %v10270_v46, %v13631_v27  ;;  %v7623_v18 = vpop.f32.mrb[35].mxu1 }
 0x5d1   :  { %7929 = vst.msk [vmem:[%s13804_s11] sm:$0xf] %vm5939_vm1, %v8073_v52  ;;  %v10604_v50 = vadd.f32 %v13631_v27, %v7623_v18 }
 0x5d2   :  { %v8076_v25 = vpack.c.bf16 %v10603_v40, %v10603_v40 }
 0x5d3   :  { %v8075_v59 = vpack.c.bf16 %v10604_v50, %v10604_v50  ;;  %v10273_v31 = vpop.f32.mrb[36].mxu1 }
 0x5d4   :  { %7932 = vst.msk [vmem:[%s13804_s11 + $0xc] sm:$0xf] %vm5939_vm1, %v8076_v25  ;;  %v10605_v60 = vadd.f32 %v10273_v31, %v13631_v27  ;;  %v7635_v11 = vpop.f32.mrb[37].mxu1 }
 0x5d5   :  { %7931 = vst.msk [vmem:[%s13804_s11 + $0x8] sm:$0xf] %vm5939_vm1, %v8075_v59  ;;  %v10606_v53 = vadd.f32 %v13631_v27, %v7635_v11 }
 0x5d6   :  { %v8078_v23 = vpack.c.bf16 %v10605_v60, %v10605_v60 }
 0x5d7   :  { %v8077_v55 = vpack.c.bf16 %v10606_v53, %v10606_v53  ;;  %v10276_v19 = vpop.f32.mrb[38].mxu1 }
 0x5d8   :  { %7934 = vst.msk [vmem:[%s13804_s11 + $0x14] sm:$0xf] %vm5939_vm1, %v8078_v23  ;;  %v10607_v30 = vadd.f32 %v10276_v19, %v13631_v27  ;;  %v7647_v29 = vpop.f32.mrb[39].mxu1 }
 0x5d9   :  { %7933 = vst.msk [vmem:[%s13804_s11 + $0x10] sm:$0xf] %vm5939_vm1, %v8077_v55  ;;  %v10608_v57 = vadd.f32 %v13631_v27, %v7647_v29 }
 0x5da   :  { %v8080_v9 = vpack.c.bf16 %v10607_v30, %v10607_v30 }
 0x5db   :  { %v8079_v35 = vpack.c.bf16 %v10608_v57, %v10608_v57  ;;  %v10279_v44 = vpop.f32.mrb[40].mxu1 }
 0x5dc   :  { %7936 = vst.msk [vmem:[%s13804_s11 + $0x1c] sm:$0xf] %vm5939_vm1, %v8080_v9  ;;  %v10609_v6 = vadd.f32 %v10279_v44, %v13631_v27  ;;  %v7659_v51 = vpop.f32.mrb[41].mxu1 }
 0x5dd   :  { %7935 = vst.msk [vmem:[%s13804_s11 + $0x18] sm:$0xf] %vm5939_vm1, %v8079_v35  ;;  %v10610_v41 = vadd.f32 %v13631_v27, %v7659_v51 }
 0x5de   :  { %v8082_v17 = vpack.c.bf16 %v10609_v6, %v10609_v6 }
 0x5df   :  { %v8081_v0 = vpack.c.bf16 %v10610_v41, %v10610_v41  ;;  %v10282_v61 = vpop.f32.mrb[42].mxu1 }
 0x5e0   :  { %7938 = vst.msk [vmem:[%s13804_s11 + $0x24] sm:$0xf] %vm5939_vm1, %v8082_v17  ;;  %v10611_v37 = vadd.f32 %v10282_v61, %v13631_v27  ;;  %v7671_v21 = vpop.f32.mrb[43].mxu1 }
 0x5e1   :  { %7937 = vst.msk [vmem:[%s13804_s11 + $0x20] sm:$0xf] %vm5939_vm1, %v8081_v0  ;;  %v10612_v16 = vadd.f32 %v13631_v27, %v7671_v21 }
 0x5e2   :  { %v8084_v10 = vpack.c.bf16 %v10611_v37, %v10611_v37 }
 0x5e3   :  { %v8083_v38 = vpack.c.bf16 %v10612_v16, %v10612_v16  ;;  %v10285_v5 = vpop.f32.mrb[44].mxu1 }
 0x5e4   :  { %7940 = vst.msk [vmem:[%s13804_s11 + $0x2c] sm:$0xf] %vm5939_vm1, %v8084_v10  ;;  %v10613_v32 = vadd.f32 %v10285_v5, %v13631_v27  ;;  %v7683_v58 = vpop.f32.mrb[45].mxu1 }
 0x5e5   :  { %7939 = vst.msk [vmem:[%s13804_s11 + $0x28] sm:$0xf] %vm5939_vm1, %v8083_v38  ;;  %v10614_v48 = vadd.f32 %v13631_v27, %v7683_v58 }
 0x5e6   :  { %v8086_v45 = vpack.c.bf16 %v10613_v32, %v10613_v32 }
 0x5e7   :  { %v8085_v54 = vpack.c.bf16 %v10614_v48, %v10614_v48  ;;  %v10288_v8 = vpop.f32.mrb[46].mxu1 }
 0x5e8   :  { %7942 = vst.msk [vmem:[%s13804_s11 + $0x34] sm:$0xf] %vm5939_vm1, %v8086_v45  ;;  %v10615_v42 = vadd.f32 %v10288_v8, %v13631_v27  ;;  %v7695_v34 = vpop.f32.mrb[47].mxu1 }
 0x5e9   :  { %7941 = vst.msk [vmem:[%s13804_s11 + $0x30] sm:$0xf] %vm5939_vm1, %v8085_v54  ;;  %v10616_v62 = vadd.f32 %v13631_v27, %v7695_v34 }
 0x5ea   :  { %v8088_v20 = vpack.c.bf16 %v10615_v42, %v10615_v42 }
 0x5eb   :  { %v8087_v7 = vpack.c.bf16 %v10616_v62, %v10616_v62  ;;  %v10291_v4 = vpop.f32.mrb[48].mxu1 }
 0x5ec   :  { %7944 = vst.msk [vmem:[%s13804_s11 + $0x3c] sm:$0xf] %vm5939_vm1, %v8088_v20  ;;  %v10617_v56 = vadd.f32 %v10291_v4, %v13631_v27  ;;  %v7707_v13 = vpop.f32.mrb[49].mxu1 }
 0x5ed   :  { %7943 = vst.msk [vmem:[%s13804_s11 + $0x38] sm:$0xf] %vm5939_vm1, %v8087_v7  ;;  %v10618_v14 = vadd.f32 %v13631_v27, %v7707_v13 }
 0x5ee   :  { %v8090_v12 = vpack.c.bf16 %v10617_v56, %v10617_v56 }
 0x5ef   :  { %v8089_v28 = vpack.c.bf16 %v10618_v14, %v10618_v14  ;;  %v10294_v22 = vpop.f32.mrb[50].mxu1 }
 0x5f0   :  { %7946 = vst.msk [vmem:[%s13804_s11 + $0x44] sm:$0xf] %vm5939_vm1, %v8090_v12  ;;  %v10619_v33 = vadd.f32 %v10294_v22, %v13631_v27  ;;  %v7719_v47 = vpop.f32.mrb[51].mxu1 }
 0x5f1   :  { %7945 = vst.msk [vmem:[%s13804_s11 + $0x40] sm:$0xf] %vm5939_vm1, %v8089_v28  ;;  %v10620_v63 = vadd.f32 %v13631_v27, %v7719_v47 }
 0x5f2   :  { %v8092_v43 = vpack.c.bf16 %v10619_v33, %v10619_v33 }
 0x5f3   :  { %v8091_v3 = vpack.c.bf16 %v10620_v63, %v10620_v63  ;;  %v10297_v15 = vpop.f32.mrb[52].mxu1 }
 0x5f4   :  { %7948 = vst.msk [vmem:[%s13804_s11 + $0x4c] sm:$0xf] %vm5939_vm1, %v8092_v43  ;;  %v10621_v2 = vadd.f32 %v10297_v15, %v13631_v27  ;;  %v7731_v36 = vpop.f32.mrb[53].mxu1 }
 0x5f5   :  { %7947 = vst.msk [vmem:[%s13804_s11 + $0x48] sm:$0xf] %vm5939_vm1, %v8091_v3  ;;  %v10622_v39 = vadd.f32 %v13631_v27, %v7731_v36 }
 0x5f6   :  { %v8094_v24 = vpack.c.bf16 %v10621_v2, %v10621_v2 }
 0x5f7   :  { %v8093_v49 = vpack.c.bf16 %v10622_v39, %v10622_v39  ;;  %v10300_v1 = vpop.f32.mrb[54].mxu1 }
 0x5f8   :  { %7950 = vst.msk [vmem:[%s13804_s11 + $0x54] sm:$0xf] %vm5939_vm1, %v8094_v24  ;;  %v10623_v26 = vadd.f32 %v10300_v1, %v13631_v27  ;;  %v7743_v52 = vpop.f32.mrb[55].mxu1 }
 0x5f9   :  { %7949 = vst.msk [vmem:[%s13804_s11 + $0x50] sm:$0xf] %vm5939_vm1, %v8093_v49  ;;  %v10624_v46 = vadd.f32 %v13631_v27, %v7743_v52 }
 0x5fa   :  { %v8096_v40 = vpack.c.bf16 %v10623_v26, %v10623_v26 }
 0x5fb   :  { %v8095_v18 = vpack.c.bf16 %v10624_v46, %v10624_v46  ;;  %v10303_v50 = vpop.f32.mrb[56].mxu1 }
 0x5fc   :  { %7952 = vst.msk [vmem:[%s13804_s11 + $0x5c] sm:$0xf] %vm5939_vm1, %v8096_v40  ;;  %v10625_v25 = vadd.f32 %v10303_v50, %v13631_v27  ;;  %v7755_v59 = vpop.f32.mrb[57].mxu1 }
 0x5fd   :  { %7951 = vst.msk [vmem:[%s13804_s11 + $0x58] sm:$0xf] %vm5939_vm1, %v8095_v18  ;;  %v10626_v31 = vadd.f32 %v13631_v27, %v7755_v59 }
 0x5fe   :  { %v8098_v60 = vpack.c.bf16 %v10625_v25, %v10625_v25 }
 0x5ff   :  { %v8097_v11 = vpack.c.bf16 %v10626_v31, %v10626_v31  ;;  %v10306_v53 = vpop.f32.mrb[58].mxu1 }
 0x600   :  { %7954 = vst.msk [vmem:[%s13804_s11 + $0x64] sm:$0xf] %vm5939_vm1, %v8098_v60  ;;  %v10627_v23 = vadd.f32 %v10306_v53, %v13631_v27  ;;  %v7767_v55 = vpop.f32.mrb[59].mxu1 }
 0x601   :  { %7953 = vst.msk [vmem:[%s13804_s11 + $0x60] sm:$0xf] %vm5939_vm1, %v8097_v11  ;;  %v10628_v19 = vadd.f32 %v13631_v27, %v7767_v55 }
 0x602   :  { %v8100_v30 = vpack.c.bf16 %v10627_v23, %v10627_v23 }
 0x603   :  { %v8099_v29 = vpack.c.bf16 %v10628_v19, %v10628_v19  ;;  %v10309_v57 = vpop.f32.mrb[60].mxu1 }
 0x604   :  { %7956 = vst.msk [vmem:[%s13804_s11 + $0x6c] sm:$0xf] %vm5939_vm1, %v8100_v30  ;;  %v10629_v9 = vadd.f32 %v10309_v57, %v13631_v27  ;;  %v7779_v35 = vpop.f32.mrb[61].mxu1 }
 0x605   :  { %7955 = vst.msk [vmem:[%s13804_s11 + $0x68] sm:$0xf] %vm5939_vm1, %v8099_v29  ;;  %v10630_v44 = vadd.f32 %v13631_v27, %v7779_v35 }
 0x606   :  { %v8102_v6 = vpack.c.bf16 %v10629_v9, %v10629_v9 }
 0x607   :  { %v8101_v51 = vpack.c.bf16 %v10630_v44, %v10630_v44  ;;  %v10312_v41 = vpop.f32.mrb[62].mxu1 }
 0x608   :  { %7958 = vst.msk [vmem:[%s13804_s11 + $0x74] sm:$0xf] %vm5939_vm1, %v8102_v6  ;;  %v10631_v17 = vadd.f32 %v10312_v41, %v13631_v27  ;;  %v7791_v0 = vpop.f32.mrb[63].mxu1 }
 0x609   :  { %7957 = vst.msk [vmem:[%s13804_s11 + $0x70] sm:$0xf] %vm5939_vm1, %v8101_v51  ;;  %v10632_v61 = vadd.f32 %v13631_v27, %v7791_v0 }
 0x60a   :  { %v8104_v37 = vpack.c.bf16 %v10631_v17, %v10631_v17 }
 0x60b   :  { %v8103_v21 = vpack.c.bf16 %v10632_v61, %v10632_v61 }
 0x60c   :  { %7960 = vst.msk [vmem:[%s13804_s11 + $0x7c] sm:$0xf] %vm5939_vm1, %v8104_v37 }
 0x60d   :  { %7959 = vst.msk [vmem:[%s13804_s11 + $0x78] sm:$0xf] %vm5939_vm1, %v8103_v21 }

</bundles_post_ra>
